<compile_context>
chip_gen: v7x
topology: tpu7x:2x2x1
jax: 0.10.0
libtpu: 0.0.40
codegen_flags: <defaults>
</compile_context>

<pallas_src>
import functools

import jax
import jax.numpy as jnp
from jax import lax
from jax.experimental import pallas as pl
from jax.experimental.pallas import tpu as pltpu

LANE = 128
# Explicit scoped-VMEM budget: safe on v7x's 64 MiB physical VMEM (and on
# v5e/v6e's 128 MiB); our tiles use only a few MiB of it.
VMEM_LIMIT_BYTES = 48 * 1024 * 1024


def _round_up(n, m=LANE):
    return (n + m - 1) // m * m


# ----------------------------------------------------------------------------
# Pallas kernels
# ----------------------------------------------------------------------------
def _conv_tanh_pool_kernel(a_ref, w_ref, b_ref, o_ref):
    """Fused conv-as-matmul + 2x2 maxpool + bias + tanh.

    a: (4*TM, K)  bf16  im2col patches; four TM-row slabs = 2x2 pool slots
    w: (K, Np)    bf16  conv weight, out-channels zero-padded to 128 lanes
    b: (1, Np)    f32
    o: (TM, Np)   bf16  pooled activations, rows ordered (batch, y, x)
    """
    tm = o_ref.shape[0]
    # One stacked MXU matmul over all four pool slots (single weight push,
    # one long M pass instead of 4 short ones).
    acc = jnp.dot(a_ref[...], w_ref[...], preferred_element_type=jnp.float32)
    # Max-pool on the raw accumulator: static, sublane-aligned slices (tm % 8 == 0).
    pooled = jnp.maximum(
        jnp.maximum(acc[0 * tm:1 * tm], acc[1 * tm:2 * tm]),
        jnp.maximum(acc[2 * tm:3 * tm], acc[3 * tm:4 * tm]))
    # Bias + tanh applied once AFTER the max (tanh monotone, bias shared across
    # the 4 slots => identical to tanh-then-max).  Store bf16.
    o_ref[...] = jnp.tanh(pooled + b_ref[...]).astype(o_ref.dtype)


def conv_tanh_pool(a, w, b, *, tile_m=512):
    """a: (4, Mp, K) patches -> (Mp, Np) bf16 pooled activations."""
    U, Mp, K = a.shape
    Kw, Np = w.shape
    assert U == 4 and Kw == K
    tm = min(tile_m, _round_up(Mp, 8))            # sublane-aligned tile
    mp_pad = _round_up(Mp, tm)
    nt = mp_pad // tm
    if mp_pad != Mp:
        a = jnp.pad(a, ((0, 0), (0, mp_pad - Mp), (0, 0)))
    # Tile-major layout: each grid step reads one contiguous (4*tm, K) slab,
    # so the kernel needs no in-kernel relayout.  This transpose fuses into
    # the im2col gather XLA already performs.
    a = a.reshape(4, nt, tm, K).transpose(1, 0, 2, 3).reshape(nt * 4 * tm, K)

    out = pl.pallas_call(
        _conv_tanh_pool_kernel,
        out_shape=jax.ShapeDtypeStruct((mp_pad, Np), jnp.bfloat16),
        grid=(nt,),
        in_specs=[
            pl.BlockSpec((4 * tm, K), lambda i: (i, 0)),   # streamed patches
            pl.BlockSpec((K, Np), lambda i: (0, 0)),        # VMEM-resident weight
            pl.BlockSpec((1, Np), lambda i: (0, 0)),        # VMEM-resident bias
        ],
        out_specs=pl.BlockSpec((tm, Np), lambda i: (i, 0)),
        compiler_params=pltpu.CompilerParams(
            dimension_semantics=("parallel",),              # 2 TCs on v7x
            vmem_limit_bytes=VMEM_LIMIT_BYTES),
    )(a, w, b)
    return out[:Mp] if mp_pad != Mp else out


def _classifier_kernel(x_ref, w1_ref, b1_ref, w2_ref, b2_ref, w3_ref, b3_ref,
                       logits_ref, probas_ref, *, num_classes):
    """fc1+tanh -> fc2+tanh -> fc3 -> softmax, fully fused (weights VMEM-resident)."""
    x = x_ref[...]                                           # bf16 (TB, K1)
    h = jnp.dot(x, w1_ref[...], preferred_element_type=jnp.float32) + b1_ref[...]
    h = jnp.tanh(h).astype(jnp.bfloat16)
    h = jnp.dot(h, w2_ref[...], preferred_element_type=jnp.float32) + b2_ref[...]
    h = jnp.tanh(h).astype(jnp.bfloat16)
    logits = jnp.dot(h, w3_ref[...], preferred_element_type=jnp.float32) + b3_ref[...]

    # softmax over the first `num_classes` lanes; the rest are zero padding.
    lane = lax.broadcasted_iota(jnp.int32, logits.shape, 1)
    valid = lane < num_classes
    lm = jnp.where(valid, logits, jnp.float32(-1e30))
    m = jnp.max(lm, axis=-1, keepdims=True)
    e = jnp.where(valid, jnp.exp(lm - m), jnp.float32(0.0))
    s = jnp.sum(e, axis=-1, keepdims=True)
    probas = e * pl.reciprocal(s, approx=False)              # exact normalization

    logits_ref[...] = logits
    probas_ref[...] = probas


def classifier_head(x, w1, b1, w2, b2, w3, b3, *, num_classes, tile_b=256):
    B, K1 = x.shape
    tb = min(tile_b, _round_up(B, 8))
    b_pad = _round_up(B, tb)
    if b_pad != B:
        x = jnp.pad(x, ((0, b_pad - B), (0, 0)))
    Np = w3.shape[1]
    kernel = functools.partial(_classifier_kernel, num_classes=num_classes)
    logits, probas = pl.pallas_call(
        kernel,
        out_shape=(jax.ShapeDtypeStruct((b_pad, Np), jnp.float32),
                   jax.ShapeDtypeStruct((b_pad, Np), jnp.float32)),
        grid=(b_pad // tb,),
        in_specs=[
            pl.BlockSpec((tb, K1), lambda i: (i, 0)),        # streamed activations
            pl.BlockSpec(w1.shape, lambda i: (0, 0)),
            pl.BlockSpec(b1.shape, lambda i: (0, 0)),
            pl.BlockSpec(w2.shape, lambda i: (0, 0)),
            pl.BlockSpec(b2.shape, lambda i: (0, 0)),
            pl.BlockSpec(w3.shape, lambda i: (0, 0)),
            pl.BlockSpec(b3.shape, lambda i: (0, 0)),
        ],
        out_specs=(pl.BlockSpec((tb, Np), lambda i: (i, 0)),
                   pl.BlockSpec((tb, Np), lambda i: (i, 0))),
        compiler_params=pltpu.CompilerParams(
            dimension_semantics=("parallel",),
            vmem_limit_bytes=VMEM_LIMIT_BYTES),
    )(x, w1, b1, w2, b2, w3, b3)
    return logits[:B], probas[:B]


# ----------------------------------------------------------------------------
# Plain-JAX glue: patch extraction & parameter layout conversion
# ----------------------------------------------------------------------------
def im2col_pool_order(x, k):
    """x: (B, H, W, C) NHWC -> patches (4, B*Po*Qo, k*k*C).

    Row r = b*Po*Qo + p*Qo + q corresponds to pooled output position (b, p, q);
    slot u in {0..3} selects conv-output pixel (2p + u//2, 2q + u%2) of its 2x2
    pooling window.  Patch columns are ordered (di, dj, c) to match the weight.
    """
    B, H, W, C = x.shape
    Ho, Wo = H - k + 1, W - k + 1
    Po, Qo = Ho // 2, Wo // 2
    cols = [x[:, di:di + Ho, dj:dj + Wo, :] for di in range(k) for dj in range(k)]
    p = jnp.stack(cols, axis=3)                       # (B, Ho, Wo, k*k, C)
    p = p.reshape(B, Po, 2, Qo, 2, k * k * C)
    p = jnp.transpose(p, (2, 4, 0, 1, 3, 5))          # (ui, uj, B, Po, Qo, kkC)
    return p.reshape(4, B * Po * Qo, k * k * C)


def _pad2(x, rows, cols):
    out = jnp.zeros((rows, cols), x.dtype)
    return out.at[:x.shape[0], :x.shape[1]].set(x)


def _pad_bias(b):
    b = b.reshape(1, -1).astype(jnp.float32)
    return _pad2(b, 1, _round_up(b.shape[1]))


def _conv_weight(wt):
    # PyTorch (Cout, Cin, k, k) -> (k*k*Cin, Cout_pad), rows ordered (di, dj, c).
    Cout, Cin, k, _ = wt.shape
    wm = jnp.transpose(wt, (2, 3, 1, 0)).reshape(k * k * Cin, Cout)
    return _pad2(wm, k * k * Cin, _round_up(Cout)).astype(jnp.bfloat16)


def _fc1_weight(wt, C2):
    # PyTorch (H1, C2*25) acting on channel-major flatten -> rows reordered to
    # the COMPACT (spatial, channel) order produced by the conv2->fc1 packing
    # (K drops from 25*128 to round_up(25*C2, 128)).
    H1, fc_in = wt.shape
    spatial = fc_in // C2
    wk = wt.T.reshape(C2, spatial, H1)                # torch col = c*spatial + s
    wk = jnp.transpose(wk, (1, 0, 2)).reshape(spatial * C2, H1)   # row = s*C2 + c
    return _pad2(wk, _round_up(spatial * C2), _round_up(H1)).astype(jnp.bfloat16)


def _fc_weight(wt, in_pad):
    # PyTorch (N, K) -> (K_pad, N_pad) matmul layout with zero-padded rows/cols.
    N, K = wt.shape
    return _pad2(wt.T, in_pad, _round_up(N)).astype(jnp.bfloat16)


def init_torch_params(key, num_classes, in_channels):
    """Random parameters in the original PyTorch layouts."""
    ks = jax.random.split(key, 10)
    C1, C2 = 6 * in_channels, 16 * in_channels
    H1, H2 = 120 * in_channels, 84 * in_channels
    fc_in = C2 * 5 * 5

    def w(k, shape):
        return (0.1 * jax.random.normal(k, shape)).astype(jnp.float32)

    return {
        "conv1_w": w(ks[0], (C1, in_channels, 5, 5)), "conv1_b": w(ks[1], (C1,)),
        "conv2_w": w(ks[2], (C2, C1, 5, 5)),          "conv2_b": w(ks[3], (C2,)),
        "fc1_w": w(ks[4], (H1, fc_in)), "fc1_b": w(ks[5], (H1,)),
        "fc2_w": w(ks[6], (H2, H1)),    "fc2_b": w(ks[7], (H2,)),
        "fc3_w": w(ks[8], (num_classes, H2)), "fc3_b": w(ks[9], (num_classes,)),
    }


def convert_params(tp, in_channels):
    """PyTorch-layout params -> kernel-layout (bf16 weights, 128-lane padded)."""
    C2 = 16 * in_channels
    H1, H2 = 120 * in_channels, 84 * in_channels
    return {
        "w1": _conv_weight(tp["conv1_w"]), "b1": _pad_bias(tp["conv1_b"]),
        "w2": _conv_weight(tp["conv2_w"]), "b2": _pad_bias(tp["conv2_b"]),
        "fc1_w": _fc1_weight(tp["fc1_w"], C2),            "fc1_b": _pad_bias(tp["fc1_b"]),
        "fc2_w": _fc_weight(tp["fc2_w"], _round_up(H1)),  "fc2_b": _pad_bias(tp["fc2_b"]),
        "fc3_w": _fc_weight(tp["fc3_w"], _round_up(H2)),  "fc3_b": _pad_bias(tp["fc3_b"]),
    }


# ----------------------------------------------------------------------------
# Forward pass
# ----------------------------------------------------------------------------
def lenet5_forward(x, params, *, num_classes):
    """x: (B, Cin, 32, 32) NCHW (PyTorch convention). Returns (logits, probas)."""
    B, Cin, H, W = x.shape
    assert H == 32 and W == 32, "LeNet5 classifier head implies 32x32 input"
    xh = jnp.transpose(x, (0, 2, 3, 1)).astype(jnp.float32)   # NHWC
    C1, C2 = 6 * Cin, 16 * Cin

    # conv1 + pool + bias + tanh  (fused kernel, bf16 output)
    a1 = im2col_pool_order(xh, 5).astype(jnp.bfloat16)        # (4, B*14*14, 25*Cin)
    y1 = conv_tanh_pool(a1, params["w1"], params["b1"])       # (B*14*14, 128) bf16
    P1 = (H - 4) // 2
    h1 = y1[:, :C1].reshape(B, P1, P1, C1)                    # real channels only

    # conv2 + pool + bias + tanh  (same fused kernel; input already bf16)
    a2 = im2col_pool_order(h1, 5)                             # (4, B*5*5, 25*C1) bf16
    y2 = conv_tanh_pool(a2, params["w2"], params["b2"])       # (B*5*5, 128) bf16

    # Compact conv2 -> fc1 interface: keep only the C2 real channels so fc1's
    # K dimension is round_up(25*C2, 128) instead of 25*128.
    spatial = ((P1 - 4) // 2) ** 2                            # 25
    feats = y2.reshape(B, spatial, -1)[:, :, :C2].reshape(B, spatial * C2)
    K1 = params["fc1_w"].shape[0]
    feats = jnp.pad(feats, ((0, 0), (0, K1 - spatial * C2))).astype(jnp.bfloat16)

    # fused classifier: fc1+tanh -> fc2+tanh -> fc3 -> softmax
    logits_pad, probas_pad = classifier_head(
        feats, params["fc1_w"], params["fc1_b"],
        params["fc2_w"], params["fc2_b"],
        params["fc3_w"], params["fc3_b"], num_classes=num_classes)
    return logits_pad[:, :num_classes], probas_pad[:, :num_classes]


def reference_forward(x, tp):
    """Plain-JAX (f32) mirror of the PyTorch LeNet5 forward, for validation."""
    dn = ("NCHW", "OIHW", "NCHW")
    y = lax.conv_general_dilated(x, tp["conv1_w"], (1, 1), "VALID", dimension_numbers=dn)
    y = jnp.tanh(y + tp["conv1_b"][None, :, None, None])
    y = lax.reduce_window(y, -jnp.inf, lax.max, (1, 1, 2, 2), (1, 1, 2, 2), "VALID")
    y = lax.conv_general_dilated(y, tp["conv2_w"], (1, 1), "VALID", dimension_numbers=dn)
    y = jnp.tanh(y + tp["conv2_b"][None, :, None, None])
    y = lax.reduce_window(y, -jnp.inf, lax.max, (1, 1, 2, 2), (1, 1, 2, 2), "VALID")
    y = y.reshape(y.shape[0], -1)                              # torch.flatten(x, 1)
    y = jnp.tanh(y @ tp["fc1_w"].T + tp["fc1_b"])
    y = jnp.tanh(y @ tp["fc2_w"].T + tp["fc2_b"])
    logits = y @ tp["fc3_w"].T + tp["fc3_b"]
    return logits, jax.nn.softmax(logits, axis=1)


if __name__ == "__main__":
    # LeNet5(num_classes=10, grayscale=True): in_channels=1, input must be 32x32.
    num_classes = 10
    in_channels = 1
    batch = 8          # small, but enough rows (8*14*14=1568) to exercise the M grid

    key = jax.random.PRNGKey(0)
    k_x, k_p = jax.random.split(key)
    x = jax.random.normal(k_x, (batch, in_channels, 32, 32), dtype=jnp.float32)

    torch_params = init_torch_params(k_p, num_classes, in_channels)
    params = convert_params(torch_params, in_channels)

    fwd = jax.jit(functools.partial(lenet5_forward, num_classes=num_classes))
    logits, probas = fwd(x, params)
    logits, probas = jax.block_until_ready((logits, probas))

    assert logits.shape == (batch, num_classes)
    assert probas.shape == (batch, num_classes)
    assert bool(jnp.all(jnp.isfinite(logits)))
    assert bool(jnp.allclose(jnp.sum(probas, axis=1), 1.0, atol=5e-3))

    # Cross-check against a plain-JAX reference of the PyTorch module
    # (loose tolerance: kernel matmuls run in bf16 with f32 accumulation and
    # bf16 intermediate activations).
    ref_logits, ref_probas = reference_forward(x, torch_params)
    assert float(jnp.max(jnp.abs(logits - ref_logits))) < 0.2
    assert float(jnp.max(jnp.abs(probas - ref_probas))) < 0.1

    print("KERNEL_OK")
</pallas_src>

<mosaic_0001>
module attributes {stable_mosaic.version = 11 : i64} {
  func.func @_conv_tanh_pool_kernel(%arg0: i32, %arg1: memref<2048x25xbf16, #tpu.memory_space<vmem>>, %arg2: memref<25x128xbf16, #tpu.memory_space<vmem>>, %arg3: memref<1x128xf32, #tpu.memory_space<vmem>>, %arg4: memref<512x128xbf16, #tpu.memory_space<vmem>>) attributes {dimension_semantics = [#tpu.dimension_semantics<parallel>], iteration_bounds = array<i64: 4>, scalar_prefetch = 0 : i64, scratch_operands = 0 : i64, tpu.core_type = #tpu.core_type<tc>, window_params = [{transform_indices = @transform_0, window_bounds = array<i64: 2048, 25>}, {pipeline_mode = #tpu.pipeline_mode<synchronous>, transform_indices = @transform_1, window_bounds = array<i64: 25, 128>}, {pipeline_mode = #tpu.pipeline_mode<synchronous>, transform_indices = @transform_2, window_bounds = array<i64: 1, 128>}, {transform_indices = @transform_3, window_bounds = array<i64: 512, 128>}]} {
    %c0 = arith.constant 0 : index
    %c0_0 = arith.constant 0 : index
    %0 = vector.load %arg1[%c0, %c0_0] : memref<2048x25xbf16, #tpu.memory_space<vmem>>, vector<2048x25xbf16>
    %c0_1 = arith.constant 0 : index
    %c0_2 = arith.constant 0 : index
    %1 = vector.load %arg2[%c0_1, %c0_2] : memref<25x128xbf16, #tpu.memory_space<vmem>>, vector<25x128xbf16>
    %cst = arith.constant dense<0.000000e+00> : vector<2048x128xf32>
    %2 = tpu.matmul %0, %1, %cst {dimension_numbers = #tpu.dot_dimension_numbers<[1], [0], [0], [1], [0, 0, 1, 1], [], []>} : vector<2048x25xbf16>, vector<25x128xbf16>, vector<2048x128xf32> -> vector<2048x128xf32>
    %3 = vector.extract_strided_slice %2 {offsets = [0, 0], sizes = [512, 128], strides = [1, 1]} : vector<2048x128xf32> to vector<512x128xf32>
    %4 = vector.extract_strided_slice %2 {offsets = [512, 0], sizes = [512, 128], strides = [1, 1]} : vector<2048x128xf32> to vector<512x128xf32>
    %5 = arith.maximumf %3, %4 : vector<512x128xf32>
    %6 = vector.extract_strided_slice %2 {offsets = [1024, 0], sizes = [512, 128], strides = [1, 1]} : vector<2048x128xf32> to vector<512x128xf32>
    %7 = vector.extract_strided_slice %2 {offsets = [1536, 0], sizes = [512, 128], strides = [1, 1]} : vector<2048x128xf32> to vector<512x128xf32>
    %8 = arith.maximumf %6, %7 : vector<512x128xf32>
    %9 = arith.maximumf %5, %8 : vector<512x128xf32>
    %c0_3 = arith.constant 0 : index
    %c0_4 = arith.constant 0 : index
    %10 = vector.load %arg3[%c0_3, %c0_4] : memref<1x128xf32, #tpu.memory_space<vmem>>, vector<1x128xf32>
    %11 = vector.broadcast %10 : vector<1x128xf32> to vector<512x128xf32>
    %12 = arith.addf %9, %11 : vector<512x128xf32>
    %13 = math.tanh %12 : vector<512x128xf32>
    %14 = arith.truncf %13 : vector<512x128xf32> to vector<512x128xbf16>
    %c0_5 = arith.constant 0 : index
    %c0_6 = arith.constant 0 : index
    %15 = vector.load %arg4[%c0_5, %c0_6] : memref<512x128xbf16, #tpu.memory_space<vmem>>, vector<512x128xbf16>
    tpu.vector_store %arg4[%c0_5, %c0_6], %14 {strides = array<i32>} : memref<512x128xbf16, #tpu.memory_space<vmem>>, vector<512x128xbf16>,
    return
  }
  func.func @transform_0(%arg0: i32) -> (i32, i32) {
    %c0_i32 = arith.constant 0 : i32
    %c0_i32_0 = arith.constant 0 : i32
    return %arg0, %c0_i32 : i32, i32
  }
  func.func @transform_1(%arg0: i32) -> (i32, i32) {
    %c0_i32 = arith.constant 0 : i32
    %c0_i32_0 = arith.constant 0 : i32
    %c0_i32_1 = arith.constant 0 : i32
    return %c0_i32, %c0_i32_0 : i32, i32
  }
  func.func @transform_2(%arg0: i32) -> (i32, i32) {
    %c0_i32 = arith.constant 0 : i32
    %c0_i32_0 = arith.constant 0 : i32
    %c0_i32_1 = arith.constant 0 : i32
    return %c0_i32, %c0_i32_0 : i32, i32
  }
  func.func @transform_3(%arg0: i32) -> (i32, i32) {
    %c0_i32 = arith.constant 0 : i32
    %c0_i32_0 = arith.constant 0 : i32
    return %arg0, %c0_i32 : i32, i32
  }
}

module attributes {stable_mosaic.version = 11 : i64} {
  func.func @_conv_tanh_pool_kernel(%arg0: i32, %arg1: memref<800x150xbf16, #tpu.memory_space<vmem>>, %arg2: memref<150x128xbf16, #tpu.memory_space<vmem>>, %arg3: memref<1x128xf32, #tpu.memory_space<vmem>>, %arg4: memref<200x128xbf16, #tpu.memory_space<vmem>>) attributes {dimension_semantics = [#tpu.dimension_semantics<parallel>], iteration_bounds = array<i64: 1>, scalar_prefetch = 0 : i64, scratch_operands = 0 : i64, tpu.core_type = #tpu.core_type<tc>, window_params = [{transform_indices = @transform_0, window_bounds = array<i64: 800, 150>}, {pipeline_mode = #tpu.pipeline_mode<synchronous>, transform_indices = @transform_1, window_bounds = array<i64: 150, 128>}, {pipeline_mode = #tpu.pipeline_mode<synchronous>, transform_indices = @transform_2, window_bounds = array<i64: 1, 128>}, {transform_indices = @transform_3, window_bounds = array<i64: 200, 128>}]} {
    %c0 = arith.constant 0 : index
    %c0_0 = arith.constant 0 : index
    %0 = vector.load %arg1[%c0, %c0_0] : memref<800x150xbf16, #tpu.memory_space<vmem>>, vector<800x150xbf16>
    %c0_1 = arith.constant 0 : index
    %c0_2 = arith.constant 0 : index
    %1 = vector.load %arg2[%c0_1, %c0_2] : memref<150x128xbf16, #tpu.memory_space<vmem>>, vector<150x128xbf16>
    %cst = arith.constant dense<0.000000e+00> : vector<800x128xf32>
    %2 = tpu.matmul %0, %1, %cst {dimension_numbers = #tpu.dot_dimension_numbers<[1], [0], [0], [1], [0, 0, 1, 1], [], []>} : vector<800x150xbf16>, vector<150x128xbf16>, vector<800x128xf32> -> vector<800x128xf32>
    %3 = vector.extract_strided_slice %2 {offsets = [0, 0], sizes = [200, 128], strides = [1, 1]} : vector<800x128xf32> to vector<200x128xf32>
    %4 = vector.extract_strided_slice %2 {offsets = [200, 0], sizes = [200, 128], strides = [1, 1]} : vector<800x128xf32> to vector<200x128xf32>
    %5 = arith.maximumf %3, %4 : vector<200x128xf32>
    %6 = vector.extract_strided_slice %2 {offsets = [400, 0], sizes = [200, 128], strides = [1, 1]} : vector<800x128xf32> to vector<200x128xf32>
    %7 = vector.extract_strided_slice %2 {offsets = [600, 0], sizes = [200, 128], strides = [1, 1]} : vector<800x128xf32> to vector<200x128xf32>
    %8 = arith.maximumf %6, %7 : vector<200x128xf32>
    %9 = arith.maximumf %5, %8 : vector<200x128xf32>
    %c0_3 = arith.constant 0 : index
    %c0_4 = arith.constant 0 : index
    %10 = vector.load %arg3[%c0_3, %c0_4] : memref<1x128xf32, #tpu.memory_space<vmem>>, vector<1x128xf32>
    %11 = vector.broadcast %10 : vector<1x128xf32> to vector<200x128xf32>
    %12 = arith.addf %9, %11 : vector<200x128xf32>
    %13 = math.tanh %12 : vector<200x128xf32>
    %14 = arith.truncf %13 : vector<200x128xf32> to vector<200x128xbf16>
    %c0_5 = arith.constant 0 : index
    %c0_6 = arith.constant 0 : index
    %15 = vector.load %arg4[%c0_5, %c0_6] : memref<200x128xbf16, #tpu.memory_space<vmem>>, vector<200x128xbf16>
    tpu.vector_store %arg4[%c0_5, %c0_6], %14 {strides = array<i32>} : memref<200x128xbf16, #tpu.memory_space<vmem>>, vector<200x128xbf16>,
    return
  }
  func.func @transform_0(%arg0: i32) -> (i32, i32) {
    %c0_i32 = arith.constant 0 : i32
    %c0_i32_0 = arith.constant 0 : i32
    return %arg0, %c0_i32 : i32, i32
  }
  func.func @transform_1(%arg0: i32) -> (i32, i32) {
    %c0_i32 = arith.constant 0 : i32
    %c0_i32_0 = arith.constant 0 : i32
    %c0_i32_1 = arith.constant 0 : i32
    return %c0_i32, %c0_i32_0 : i32, i32
  }
  func.func @transform_2(%arg0: i32) -> (i32, i32) {
    %c0_i32 = arith.constant 0 : i32
    %c0_i32_0 = arith.constant 0 : i32
    %c0_i32_1 = arith.constant 0 : i32
    return %c0_i32, %c0_i32_0 : i32, i32
  }
  func.func @transform_3(%arg0: i32) -> (i32, i32) {
    %c0_i32 = arith.constant 0 : i32
    %c0_i32_0 = arith.constant 0 : i32
    return %arg0, %c0_i32 : i32, i32
  }
}

module attributes {stable_mosaic.version = 11 : i64} {
  func.func @_classifier_kernel(%arg0: i32, %arg1: memref<8x512xbf16, #tpu.memory_space<vmem>>, %arg2: memref<512x128xbf16, #tpu.memory_space<vmem>>, %arg3: memref<1x128xf32, #tpu.memory_space<vmem>>, %arg4: memref<128x128xbf16, #tpu.memory_space<vmem>>, %arg5: memref<1x128xf32, #tpu.memory_space<vmem>>, %arg6: memref<128x128xbf16, #tpu.memory_space<vmem>>, %arg7: memref<1x128xf32, #tpu.memory_space<vmem>>, %arg8: memref<8x128xf32, #tpu.memory_space<vmem>>, %arg9: memref<8x128xf32, #tpu.memory_space<vmem>>) attributes {dimension_semantics = [#tpu.dimension_semantics<parallel>], iteration_bounds = array<i64: 1>, scalar_prefetch = 0 : i64, scratch_operands = 0 : i64, tpu.core_type = #tpu.core_type<tc>, window_params = [{transform_indices = @transform_0, window_bounds = array<i64: 8, 512>}, {pipeline_mode = #tpu.pipeline_mode<synchronous>, transform_indices = @transform_1, window_bounds = array<i64: 512, 128>}, {pipeline_mode = #tpu.pipeline_mode<synchronous>, transform_indices = @transform_2, window_bounds = array<i64: 1, 128>}, {pipeline_mode = #tpu.pipeline_mode<synchronous>, transform_indices = @transform_3, window_bounds = array<i64: 128, 128>}, {pipeline_mode = #tpu.pipeline_mode<synchronous>, transform_indices = @transform_4, window_bounds = array<i64: 1, 128>}, {pipeline_mode = #tpu.pipeline_mode<synchronous>, transform_indices = @transform_5, window_bounds = array<i64: 128, 128>}, {pipeline_mode = #tpu.pipeline_mode<synchronous>, transform_indices = @transform_6, window_bounds = array<i64: 1, 128>}, {transform_indices = @transform_7, window_bounds = array<i64: 8, 128>}, {transform_indices = @transform_8, window_bounds = array<i64: 8, 128>}]} {
    %c0 = arith.constant 0 : index
    %c0_0 = arith.constant 0 : index
    %0 = vector.load %arg1[%c0, %c0_0] : memref<8x512xbf16, #tpu.memory_space<vmem>>, vector<8x512xbf16>
    %c0_1 = arith.constant 0 : index
    %c0_2 = arith.constant 0 : index
    %1 = vector.load %arg2[%c0_1, %c0_2] : memref<512x128xbf16, #tpu.memory_space<vmem>>, vector<512x128xbf16>
    %cst = arith.constant dense<0.000000e+00> : vector<8x128xf32>
    %2 = tpu.matmul %0, %1, %cst {dimension_numbers = #tpu.dot_dimension_numbers<[1], [0], [0], [1], [0, 0, 1, 1], [], []>} : vector<8x512xbf16>, vector<512x128xbf16>, vector<8x128xf32> -> vector<8x128xf32>
    %c0_3 = arith.constant 0 : index
    %c0_4 = arith.constant 0 : index
    %3 = vector.load %arg3[%c0_3, %c0_4] : memref<1x128xf32, #tpu.memory_space<vmem>>, vector<1x128xf32>
    %4 = vector.broadcast %3 : vector<1x128xf32> to vector<8x128xf32>
    %5 = arith.addf %2, %4 : vector<8x128xf32>
    %6 = math.tanh %5 : vector<8x128xf32>
    %7 = arith.truncf %6 : vector<8x128xf32> to vector<8x128xbf16>
    %c0_5 = arith.constant 0 : index
    %c0_6 = arith.constant 0 : index
    %8 = vector.load %arg4[%c0_5, %c0_6] : memref<128x128xbf16, #tpu.memory_space<vmem>>, vector<128x128xbf16>
    %cst_7 = arith.constant dense<0.000000e+00> : vector<8x128xf32>
    %9 = tpu.matmul %7, %8, %cst_7 {dimension_numbers = #tpu.dot_dimension_numbers<[1], [0], [0], [1], [0, 0, 1, 1], [], []>} : vector<8x128xbf16>, vector<128x128xbf16>, vector<8x128xf32> -> vector<8x128xf32>
    %c0_8 = arith.constant 0 : index
    %c0_9 = arith.constant 0 : index
    %10 = vector.load %arg5[%c0_8, %c0_9] : memref<1x128xf32, #tpu.memory_space<vmem>>, vector<1x128xf32>
    %11 = vector.broadcast %10 : vector<1x128xf32> to vector<8x128xf32>
    %12 = arith.addf %9, %11 : vector<8x128xf32>
    %13 = math.tanh %12 : vector<8x128xf32>
    %14 = arith.truncf %13 : vector<8x128xf32> to vector<8x128xbf16>
    %c0_10 = arith.constant 0 : index
    %c0_11 = arith.constant 0 : index
    %15 = vector.load %arg6[%c0_10, %c0_11] : memref<128x128xbf16, #tpu.memory_space<vmem>>, vector<128x128xbf16>
    %cst_12 = arith.constant dense<0.000000e+00> : vector<8x128xf32>
    %16 = tpu.matmul %14, %15, %cst_12 {dimension_numbers = #tpu.dot_dimension_numbers<[1], [0], [0], [1], [0, 0, 1, 1], [], []>} : vector<8x128xbf16>, vector<128x128xbf16>, vector<8x128xf32> -> vector<8x128xf32>
    %c0_13 = arith.constant 0 : index
    %c0_14 = arith.constant 0 : index
    %17 = vector.load %arg7[%c0_13, %c0_14] : memref<1x128xf32, #tpu.memory_space<vmem>>, vector<1x128xf32>
    %18 = vector.broadcast %17 : vector<1x128xf32> to vector<8x128xf32>
    %19 = arith.addf %16, %18 : vector<8x128xf32>
    %20 = tpu.iota {dimensions = array<i32: 1>} : vector<8x128xi32>
    %c10_i32 = arith.constant 10 : i32
    %21 = vector.broadcast %c10_i32 : i32 to vector<8x128xi32>
    %22 = arith.cmpi slt, %20, %21 : vector<8x128xi32>
    %cst_15 = arith.constant -1.000000e+30 : f32
    %23 = vector.broadcast %cst_15 : f32 to vector<8x128xf32>
    %24 = arith.select %22, %19, %23 : vector<8x128xi1>, vector<8x128xf32>
    %cst_16 = arith.constant dense<0xFF800000> : vector<8xf32>
    %25 = vector.multi_reduction <maximumf>, %24, %cst_16 [1] : vector<8x128xf32> to vector<8xf32>
    %26 = vector.shape_cast %25 : vector<8xf32> to vector<8x1xf32>
    %27 = vector.broadcast %26 : vector<8x1xf32> to vector<8x128xf32>
    %28 = arith.subf %24, %27 : vector<8x128xf32>
    %29 = math.exp %28 : vector<8x128xf32>
    %cst_17 = arith.constant 0.000000e+00 : f32
    %30 = vector.broadcast %cst_17 : f32 to vector<8x128xf32>
    %31 = arith.select %22, %29, %30 : vector<8x128xi1>, vector<8x128xf32>
    %cst_18 = arith.constant dense<0.000000e+00> : vector<8xf32>
    %32 = vector.multi_reduction <add>, %31, %cst_18 [1] : vector<8x128xf32> to vector<8xf32>
    %33 = vector.shape_cast %32 : vector<8xf32> to vector<8x1xf32>
    %34 = tpu.reciprocal %33 : vector<8x1xf32> -> vector<8x1xf32>
    %35 = vector.broadcast %34 : vector<8x1xf32> to vector<8x128xf32>
    %36 = arith.mulf %31, %35 : vector<8x128xf32>
    %c0_19 = arith.constant 0 : index
    %c0_20 = arith.constant 0 : index
    %37 = vector.load %arg8[%c0_19, %c0_20] : memref<8x128xf32, #tpu.memory_space<vmem>>, vector<8x128xf32>
    tpu.vector_store %arg8[%c0_19, %c0_20], %19 {strides = array<i32>} : memref<8x128xf32, #tpu.memory_space<vmem>>, vector<8x128xf32>,
    %c0_21 = arith.constant 0 : index
    %c0_22 = arith.constant 0 : index
    %38 = vector.load %arg9[%c0_21, %c0_22] : memref<8x128xf32, #tpu.memory_space<vmem>>, vector<8x128xf32>
    tpu.vector_store %arg9[%c0_21, %c0_22], %36 {strides = array<i32>} : memref<8x128xf32, #tpu.memory_space<vmem>>, vector<8x128xf32>,
    return
  }
  func.func @transform_0(%arg0: i32) -> (i32, i32) {
    %c0_i32 = arith.constant 0 : i32
    %c0_i32_0 = arith.constant 0 : i32
    return %arg0, %c0_i32 : i32, i32
  }
  func.func @transform_1(%arg0: i32) -> (i32, i32) {
    %c0_i32 = arith.constant 0 : i32
    %c0_i32_0 = arith.constant 0 : i32
    %c0_i32_1 = arith.constant 0 : i32
    return %c0_i32, %c0_i32_0 : i32, i32
  }
  func.func @transform_2(%arg0: i32) -> (i32, i32) {
    %c0_i32 = arith.constant 0 : i32
    %c0_i32_0 = arith.constant 0 : i32
    %c0_i32_1 = arith.constant 0 : i32
    return %c0_i32, %c0_i32_0 : i32, i32
  }
  func.func @transform_3(%arg0: i32) -> (i32, i32) {
    %c0_i32 = arith.constant 0 : i32
    %c0_i32_0 = arith.constant 0 : i32
    %c0_i32_1 = arith.constant 0 : i32
    return %c0_i32, %c0_i32_0 : i32, i32
  }
  func.func @transform_4(%arg0: i32) -> (i32, i32) {
    %c0_i32 = arith.constant 0 : i32
    %c0_i32_0 = arith.constant 0 : i32
    %c0_i32_1 = arith.constant 0 : i32
    return %c0_i32, %c0_i32_0 : i32, i32
  }
  func.func @transform_5(%arg0: i32) -> (i32, i32) {
    %c0_i32 = arith.constant 0 : i32
    %c0_i32_0 = arith.constant 0 : i32
    %c0_i32_1 = arith.constant 0 : i32
    return %c0_i32, %c0_i32_0 : i32, i32
  }
  func.func @transform_6(%arg0: i32) -> (i32, i32) {
    %c0_i32 = arith.constant 0 : i32
    %c0_i32_0 = arith.constant 0 : i32
    %c0_i32_1 = arith.constant 0 : i32
    return %c0_i32, %c0_i32_0 : i32, i32
  }
  func.func @transform_7(%arg0: i32) -> (i32, i32) {
    %c0_i32 = arith.constant 0 : i32
    %c0_i32_0 = arith.constant 0 : i32
    return %arg0, %c0_i32 : i32, i32
  }
  func.func @transform_8(%arg0: i32) -> (i32, i32) {
    %c0_i32 = arith.constant 0 : i32
    %c0_i32_0 = arith.constant 0 : i32
    return %arg0, %c0_i32 : i32, i32
  }
}

</mosaic_0001>

<bundles_post_ra>
// kernel: lenet5_forward.3
= control target key start
LH: loop header
LB: loop body
LE: loop exit
PB: predicated region body
PF: predicated region fallthrough
CT: control target
= control target key end

     0   :  { %s4518_s12 = smov 0   ;;  %s5290_s0 = inlined_call_operand.vmem [shape: bf16[8192,25], index: 0, kind: input, shape index: {}]   ;;  %s5291_s1 = inlined_call_operand.vmem [shape: bf16[25,128], index: 1, kind: input, shape index: {}]   ;;  %s5292_s2 = inlined_call_operand.vmem [shape: f32[1,128], index: 2, kind: input, shape index: {}]   ;;  %s5293_s3 = inlined_call_operand.vmem [shape: bf16[2048,128], index: 3, kind: output, shape index: {}]  }
   0x1 LB: > { %s3238_s13 = sadd.s32 4294967295, %s4495_s12   ;;  %p3242_p0 = scmp.ge.s32.totalorder %s4495_s12, 1  ;;  %s4495_s12 = sphi %s4518_s12, %s13_s12  }
   0x2   : > { %p138_p1 = scmp.lt.s32.totalorder %s4495_s12, 5 }
   0x4   : > { %p139_p2 = pnand %p3242_p0, %p138_p1 }
   0x6   : > { %142 = sbr.rel (%p139_p2) target bundleno = 508 (0x1fc), region = 32 }
   0xd   : > { %v4230_v0 = vld [vmem:[%s5291_s1] sm:$0xff]   ;;  %vm1471_vm0 = vcmask 1043456   ;;  %v4231_v1 = vld [vmem:[%s5291_s1 + $0x8] sm:$0x1f]   ;;  %vm1472_vm1 = vcmask 1044480   ;;  %s3243_s18 = sshll.u32 %s3238_s13, 8 }
   0xe   : > { %3957 = vmatprep.subr.bf16.mxu0 %v4230_v0  ;;  %4217 = vmatprep.subr.bf16.mxu1 %v4230_v0  ;;  %v4497_v2 = vmov 65535   ;;  %p163_p3 = scmp.lt.s32.totalorder %s3243_s18, 1023  ;;  %vm1086_vm2 = vcmask 203776   ;;  %s3245_s25 = sshll.u32 %s3238_s13, 6 }
   0xf   : > { %3958 = vmatpush3.bf16.msra.mxu0 %v4230_v0  ;;  %4219 = vmatpush3.bf16.msra.mxu1 %v4230_v0  ;;  %v1473_v3 = vsel %vm1471_vm0, 4294967295, %v4497_v2  ;;  %p169_p4 = scmp.lt.s32.totalorder %s3245_s25, 255 }
  0x10   : > { %v1474_v4 = vsel %vm1472_vm1, %v1473_v3, 0  ;;  %s5453_s18 = smov (!%p163_p3, %s3243_s18), 1023 }
  0x11   : > { %v1476_v5 = vand.u32 %v4231_v1, %v1474_v4  ;;  %s3244_s19 = sshll.u32 %s5453_s18, 2  ;;  %s5455_s25 = smov (!%p169_p4, %s3245_s25), 255 }
  0x12   : > { %s4537_s22 = scalar_lea.vmem %s5290_s0, %s3244_s19  ;;  %s3246_s26 = sshll.u32 %s5455_s25, 2 }
  0x13   : > { %3959 = vmatprep.subr.bf16.mxu0 %v1476_v5  ;;  %4218 = vmatprep.subr.bf16.mxu1 %v1476_v5  ;;  %v4232_v6 = vld [vmem:[%s4537_s22] sm:$0xff]   ;;  %v4234_v8 = vld [vmem:[%s4537_s22 + $0x8] sm:$0xff]   ;;  %v4236_v10 = vld [vmem:[%s4537_s22 + $0x10] sm:$0xff]   ;;  %s5094_s29 = scalar_lea.vmem %s5293_s3, %s3246_s26 }
  0x14   : > { %3960 = vmatpush3.bf16.msra.mxu0 %v1476_v5  ;;  %4220 = vmatpush3.bf16.msra.mxu1 %v1476_v5  ;;  %v4233_v7 = vld [vmem:[%s4537_s22 + $0x200] sm:$0xff]   ;;  %v4235_v9 = vld [vmem:[%s4537_s22 + $0x208] sm:$0xff]   ;;  %v4237_v11 = vld [vmem:[%s4537_s22 + $0x210] sm:$0xff]  }
  0x15   : > { %3961 = vmatprep.mubr.msk.bf16.mxu0 %vm1086_vm2, %v4232_v6  ;;  %4089 = vmatprep.mubr.msk.bf16.mxu1 %vm1086_vm2, %v4233_v7  ;;  %v4238_v12 = vld [vmem:[%s4537_s22 + $0x18] sm:$0xff]   ;;  %v4240_v14 = vld [vmem:[%s4537_s22 + $0x20] sm:$0xff]   ;;  %v4242_v16 = vld [vmem:[%s4537_s22 + $0x28] sm:$0xff]  }
  0x16   : > { %v4239_v13 = vld [vmem:[%s4537_s22 + $0x218] sm:$0xff]   ;;  %v4241_v15 = vld [vmem:[%s4537_s22 + $0x220] sm:$0xff]   ;;  %v4243_v17 = vld [vmem:[%s4537_s22 + $0x228] sm:$0xff]  }
  0x17   : > { %3962 = vmatmul.mubr.msk.bf16.vlgmr.msra.gmra.mrb[0].mxu0 %vm1086_vm2, %v4234_v8  ;;  %4090 = vmatmul.mubr.msk.bf16.vlgmr.msra.gmra.mrb[0].mxu1 %vm1086_vm2, %v4235_v9  ;;  %v4244_v18 = vld [vmem:[%s4537_s22 + $0x30] sm:$0xff]   ;;  %v4246_v20 = vld [vmem:[%s4537_s22 + $0x38] sm:$0xff]   ;;  %v4248_v22 = vld [vmem:[%s4537_s22 + $0x40] sm:$0xff]  }
  0x18   : > { %3965 = vmatprep.mubr.msk.bf16.mxu0 %vm1086_vm2, %v4236_v10  ;;  %4093 = vmatprep.mubr.msk.bf16.mxu1 %vm1086_vm2, %v4237_v11  ;;  %v4245_v19 = vld [vmem:[%s4537_s22 + $0x230] sm:$0xff]   ;;  %v4247_v21 = vld [vmem:[%s4537_s22 + $0x238] sm:$0xff]   ;;  %v4249_v23 = vld [vmem:[%s4537_s22 + $0x240] sm:$0xff]  }
  0x19   : > { %v4250_v24 = vld [vmem:[%s4537_s22 + $0x48] sm:$0xff]   ;;  %v4252_v26 = vld [vmem:[%s4537_s22 + $0x50] sm:$0xff]   ;;  %v4254_v28 = vld [vmem:[%s4537_s22 + $0x58] sm:$0xff]  }
  0x1a   : > { %v4251_v25 = vld [vmem:[%s4537_s22 + $0x248] sm:$0xff]   ;;  %v4253_v27 = vld [vmem:[%s4537_s22 + $0x250] sm:$0xff]   ;;  %v4255_v29 = vld [vmem:[%s4537_s22 + $0x258] sm:$0xff]  }
  0x1b   : > { %v4256_v30 = vld [vmem:[%s4537_s22 + $0x60] sm:$0xff]   ;;  %v4258_v32 = vld [vmem:[%s4537_s22 + $0x68] sm:$0xff]   ;;  %v4260_v34 = vld [vmem:[%s4537_s22 + $0x70] sm:$0xff]  }
  0x1c   : > { %v4257_v31 = vld [vmem:[%s4537_s22 + $0x260] sm:$0xff]   ;;  %v4259_v33 = vld [vmem:[%s4537_s22 + $0x268] sm:$0xff]   ;;  %v4261_v35 = vld [vmem:[%s4537_s22 + $0x270] sm:$0xff]  }
  0x1d   : > { %v4262_v36 = vld [vmem:[%s4537_s22 + $0x78] sm:$0xff]   ;;  %v4264_v38 = vld [vmem:[%s4537_s22 + $0x80] sm:$0xff]   ;;  %v4266_v40 = vld [vmem:[%s4537_s22 + $0x88] sm:$0xff]  }
  0x1e   : > { %v4263_v37 = vld [vmem:[%s4537_s22 + $0x278] sm:$0xff]   ;;  %v4265_v39 = vld [vmem:[%s4537_s22 + $0x280] sm:$0xff]   ;;  %v4267_v41 = vld [vmem:[%s4537_s22 + $0x288] sm:$0xff]  }
  0x1f   : > { %3966 = vmatmul.mubr.msk.bf16.gmra.mrb[4].mxu0 %vm1086_vm2, %v4238_v12  ;;  %4094 = vmatmul.mubr.msk.bf16.gmra.mrb[4].mxu1 %vm1086_vm2, %v4239_v13  ;;  %v4268_v42 = vld [vmem:[%s4537_s22 + $0x90] sm:$0xff]   ;;  %v4270_v44 = vld [vmem:[%s4537_s22 + $0x98] sm:$0xff]   ;;  %v4272_v46 = vld [vmem:[%s4537_s22 + $0xa0] sm:$0xff]  }
  0x20   : > { %3969 = vmatprep.mubr.msk.bf16.mxu0 %vm1086_vm2, %v4240_v14  ;;  %4097 = vmatprep.mubr.msk.bf16.mxu1 %vm1086_vm2, %v4241_v15  ;;  %v4269_v43 = vld [vmem:[%s4537_s22 + $0x290] sm:$0xff]   ;;  %v4271_v45 = vld [vmem:[%s4537_s22 + $0x298] sm:$0xff]   ;;  %v4273_v47 = vld [vmem:[%s4537_s22 + $0x2a0] sm:$0xff]  }
  0x21   : > { %v4274_v48 = vld [vmem:[%s4537_s22 + $0xa8] sm:$0xff]   ;;  %v4276_v50 = vld [vmem:[%s4537_s22 + $0xb0] sm:$0xff]   ;;  %v4278_v52 = vld [vmem:[%s4537_s22 + $0xb8] sm:$0xff]  }
  0x22   : > { %v4275_v49 = vld [vmem:[%s4537_s22 + $0x2a8] sm:$0xff]   ;;  %v4277_v51 = vld [vmem:[%s4537_s22 + $0x2b0] sm:$0xff]   ;;  %v4279_v53 = vld [vmem:[%s4537_s22 + $0x2b8] sm:$0xff]  }
  0x23   : > { %v4280_v54 = vld [vmem:[%s4537_s22 + $0xc0] sm:$0xff]   ;;  %v4282_v56 = vld [vmem:[%s4537_s22 + $0xc8] sm:$0xff]   ;;  %v4284_v58 = vld [vmem:[%s4537_s22 + $0xd0] sm:$0xff]  }
  0x24   : > { %v4281_v55 = vld [vmem:[%s4537_s22 + $0x2c0] sm:$0xff]   ;;  %v4283_v57 = vld [vmem:[%s4537_s22 + $0x2c8] sm:$0xff]   ;;  %v4285_v59 = vld [vmem:[%s4537_s22 + $0x2d0] sm:$0xff]  }
  0x25   : > { %v4286_v60 = vld [vmem:[%s4537_s22 + $0xd8] sm:$0xff]   ;;  %v4288_v62 = vld [vmem:[%s4537_s22 + $0xe0] sm:$0xff]   ;;  %v4290_v0 = vld [vmem:[%s4537_s22 + $0xe8] sm:$0xff]  }
  0x26   : > { %v4287_v61 = vld [vmem:[%s4537_s22 + $0x2d8] sm:$0xff]   ;;  %v4289_v63 = vld [vmem:[%s4537_s22 + $0x2e0] sm:$0xff]   ;;  %v4291_v1 = vld [vmem:[%s4537_s22 + $0x2e8] sm:$0xff]  }
  0x27   : > { %3970 = vmatmul.mubr.msk.bf16.gmra.mrb[8].mxu0 %vm1086_vm2, %v4242_v16  ;;  %4098 = vmatmul.mubr.msk.bf16.gmra.mrb[8].mxu1 %vm1086_vm2, %v4243_v17  ;;  %v4292_v2 = vld [vmem:[%s4537_s22 + $0xf0] sm:$0xff]   ;;  %v4294_v4 = vld [vmem:[%s4537_s22 + $0xf8] sm:$0xff]   ;;  %v4296_v6 = vld [vmem:[%s4537_s22 + $0x100] sm:$0xff]  }
  0x28   : > { %3973 = vmatprep.mubr.msk.bf16.mxu0 %vm1086_vm2, %v4244_v18  ;;  %4101 = vmatprep.mubr.msk.bf16.mxu1 %vm1086_vm2, %v4245_v19  ;;  %v4293_v3 = vld [vmem:[%s4537_s22 + $0x2f0] sm:$0xff]   ;;  %v4295_v5 = vld [vmem:[%s4537_s22 + $0x2f8] sm:$0xff]   ;;  %v4297_v7 = vld [vmem:[%s4537_s22 + $0x300] sm:$0xff]  }
  0x29   : > { %v4298_v8 = vld [vmem:[%s4537_s22 + $0x108] sm:$0xff]   ;;  %v4300_v10 = vld [vmem:[%s4537_s22 + $0x110] sm:$0xff]   ;;  %v4302_v12 = vld [vmem:[%s4537_s22 + $0x118] sm:$0xff]  }
  0x2a   : > { %v4299_v9 = vld [vmem:[%s4537_s22 + $0x308] sm:$0xff]   ;;  %v4301_v11 = vld [vmem:[%s4537_s22 + $0x310] sm:$0xff]   ;;  %v4303_v13 = vld [vmem:[%s4537_s22 + $0x318] sm:$0xff]  }
  0x2b   : > { %v4304_v14 = vld [vmem:[%s4537_s22 + $0x120] sm:$0xff]   ;;  %v4306_v16 = vld [vmem:[%s4537_s22 + $0x128] sm:$0xff]   ;;  %v4308_v18 = vld [vmem:[%s4537_s22 + $0x130] sm:$0xff]  }
  0x2c   : > { %v4305_v15 = vld [vmem:[%s4537_s22 + $0x320] sm:$0xff]   ;;  %v4307_v17 = vld [vmem:[%s4537_s22 + $0x328] sm:$0xff]   ;;  %v4309_v19 = vld [vmem:[%s4537_s22 + $0x330] sm:$0xff]  }
  0x2f   : > { %3974 = vmatmul.mubr.msk.bf16.gmra.mrb[12].mxu0 %vm1086_vm2, %v4246_v20  ;;  %4102 = vmatmul.mubr.msk.bf16.gmra.mrb[12].mxu1 %vm1086_vm2, %v4247_v21  ;;  %v4310_v20 = vld [vmem:[%s4537_s22 + $0x138] sm:$0xff]  }
  0x30   : > { %3977 = vmatprep.mubr.msk.bf16.mxu0 %vm1086_vm2, %v4248_v22  ;;  %4105 = vmatprep.mubr.msk.bf16.mxu1 %vm1086_vm2, %v4249_v23  ;;  %v4311_v21 = vld [vmem:[%s4537_s22 + $0x338] sm:$0xff]   ;;  %v4312_v22 = vld [vmem:[%s4537_s22 + $0x140] sm:$0xff]  }
  0x31   : > { %v4313_v23 = vld [vmem:[%s4537_s22 + $0x340] sm:$0xff]  }
  0x37   : > { %3978 = vmatmul.mubr.msk.bf16.gmra.mrb[16].mxu0 %vm1086_vm2, %v4250_v24  ;;  %4106 = vmatmul.mubr.msk.bf16.gmra.mrb[16].mxu1 %vm1086_vm2, %v4251_v25  ;;  %v4314_v24 = vld [vmem:[%s4537_s22 + $0x148] sm:$0xff]  }
  0x38   : > { %3981 = vmatprep.mubr.msk.bf16.mxu0 %vm1086_vm2, %v4252_v26  ;;  %4109 = vmatprep.mubr.msk.bf16.mxu1 %vm1086_vm2, %v4253_v27  ;;  %v4315_v25 = vld [vmem:[%s4537_s22 + $0x348] sm:$0xff]   ;;  %v4316_v26 = vld [vmem:[%s4537_s22 + $0x150] sm:$0xff]  }
  0x39   : > { %v4317_v27 = vld [vmem:[%s4537_s22 + $0x350] sm:$0xff]  }
  0x3f   : > { %3982 = vmatmul.mubr.msk.bf16.gmra.mrb[20].mxu0 %vm1086_vm2, %v4254_v28  ;;  %4110 = vmatmul.mubr.msk.bf16.gmra.mrb[20].mxu1 %vm1086_vm2, %v4255_v29  ;;  %v4318_v28 = vld [vmem:[%s4537_s22 + $0x158] sm:$0xff]  }
  0x40   : > { %3985 = vmatprep.mubr.msk.bf16.mxu0 %vm1086_vm2, %v4256_v30  ;;  %4113 = vmatprep.mubr.msk.bf16.mxu1 %vm1086_vm2, %v4257_v31  ;;  %v4319_v29 = vld [vmem:[%s4537_s22 + $0x358] sm:$0xff]   ;;  %v4320_v30 = vld [vmem:[%s4537_s22 + $0x160] sm:$0xff]  }
  0x41   : > { %v4321_v31 = vld [vmem:[%s4537_s22 + $0x360] sm:$0xff]  }
  0x47   : > { %3986 = vmatmul.mubr.msk.bf16.gmra.mrb[24].mxu0 %vm1086_vm2, %v4258_v32  ;;  %4114 = vmatmul.mubr.msk.bf16.gmra.mrb[24].mxu1 %vm1086_vm2, %v4259_v33  ;;  %v4322_v32 = vld [vmem:[%s4537_s22 + $0x168] sm:$0xff]  }
  0x48   : > { %3989 = vmatprep.mubr.msk.bf16.mxu0 %vm1086_vm2, %v4260_v34  ;;  %4117 = vmatprep.mubr.msk.bf16.mxu1 %vm1086_vm2, %v4261_v35  ;;  %v4323_v33 = vld [vmem:[%s4537_s22 + $0x368] sm:$0xff]   ;;  %v4324_v34 = vld [vmem:[%s4537_s22 + $0x170] sm:$0xff]  }
  0x49   : > { %v4325_v35 = vld [vmem:[%s4537_s22 + $0x370] sm:$0xff]  }
  0x4f   : > { %3990 = vmatmul.mubr.msk.bf16.gmra.mrb[28].mxu0 %vm1086_vm2, %v4262_v36  ;;  %4118 = vmatmul.mubr.msk.bf16.gmra.mrb[28].mxu1 %vm1086_vm2, %v4263_v37  ;;  %v4326_v36 = vld [vmem:[%s4537_s22 + $0x178] sm:$0xff]  }
  0x50   : > { %3993 = vmatprep.mubr.msk.bf16.mxu0 %vm1086_vm2, %v4264_v38  ;;  %4121 = vmatprep.mubr.msk.bf16.mxu1 %vm1086_vm2, %v4265_v39  ;;  %v4327_v37 = vld [vmem:[%s4537_s22 + $0x378] sm:$0xff]   ;;  %v4328_v38 = vld [vmem:[%s4537_s22 + $0x180] sm:$0xff]  }
  0x51   : > { %v4329_v39 = vld [vmem:[%s4537_s22 + $0x380] sm:$0xff]  }
  0x57   : > { %3994 = vmatmul.mubr.msk.bf16.gmra.mrb[32].mxu0 %vm1086_vm2, %v4266_v40  ;;  %4122 = vmatmul.mubr.msk.bf16.gmra.mrb[32].mxu1 %vm1086_vm2, %v4267_v41  ;;  %v4330_v40 = vld [vmem:[%s4537_s22 + $0x188] sm:$0xff]  }
  0x58   : > { %3997 = vmatprep.mubr.msk.bf16.mxu0 %vm1086_vm2, %v4268_v42  ;;  %4125 = vmatprep.mubr.msk.bf16.mxu1 %vm1086_vm2, %v4269_v43  ;;  %v4331_v41 = vld [vmem:[%s4537_s22 + $0x388] sm:$0xff]   ;;  %v4332_v42 = vld [vmem:[%s4537_s22 + $0x190] sm:$0xff]  }
  0x59   : > { %v4333_v43 = vld [vmem:[%s4537_s22 + $0x390] sm:$0xff]  }
  0x5f   : > { %3998 = vmatmul.mubr.msk.bf16.gmra.mrb[36].mxu0 %vm1086_vm2, %v4270_v44  ;;  %4126 = vmatmul.mubr.msk.bf16.gmra.mrb[36].mxu1 %vm1086_vm2, %v4271_v45  ;;  %v4334_v44 = vld [vmem:[%s4537_s22 + $0x198] sm:$0xff]  }
  0x60   : > { %4001 = vmatprep.mubr.msk.bf16.mxu0 %vm1086_vm2, %v4272_v46  ;;  %4129 = vmatprep.mubr.msk.bf16.mxu1 %vm1086_vm2, %v4273_v47  ;;  %v4335_v45 = vld [vmem:[%s4537_s22 + $0x398] sm:$0xff]   ;;  %v4336_v46 = vld [vmem:[%s4537_s22 + $0x1a0] sm:$0xff]  }
  0x61   : > { %v4337_v47 = vld [vmem:[%s4537_s22 + $0x3a0] sm:$0xff]  }
  0x67   : > { %4002 = vmatmul.mubr.msk.bf16.gmra.mrb[40].mxu0 %vm1086_vm2, %v4274_v48  ;;  %4130 = vmatmul.mubr.msk.bf16.gmra.mrb[40].mxu1 %vm1086_vm2, %v4275_v49  ;;  %v4338_v48 = vld [vmem:[%s4537_s22 + $0x1a8] sm:$0xff]  }
  0x68   : > { %4005 = vmatprep.mubr.msk.bf16.mxu0 %vm1086_vm2, %v4276_v50  ;;  %4133 = vmatprep.mubr.msk.bf16.mxu1 %vm1086_vm2, %v4277_v51  ;;  %v4339_v49 = vld [vmem:[%s4537_s22 + $0x3a8] sm:$0xff]   ;;  %v4340_v50 = vld [vmem:[%s4537_s22 + $0x1b0] sm:$0xff]  }
  0x69   : > { %v4341_v51 = vld [vmem:[%s4537_s22 + $0x3b0] sm:$0xff]  }
  0x6f   : > { %4006 = vmatmul.mubr.msk.bf16.gmra.mrb[44].mxu0 %vm1086_vm2, %v4278_v52  ;;  %4134 = vmatmul.mubr.msk.bf16.gmra.mrb[44].mxu1 %vm1086_vm2, %v4279_v53 }
  0x70   : > { %4009 = vmatprep.mubr.msk.bf16.mxu0 %vm1086_vm2, %v4280_v54  ;;  %4137 = vmatprep.mubr.msk.bf16.mxu1 %vm1086_vm2, %v4281_v55  ;;  %v4342_v55 = vld [vmem:[%s4537_s22 + $0x1b8] sm:$0xff]  }
  0x77   : > { %4010 = vmatmul.mubr.msk.bf16.gmra.mrb[48].mxu0 %vm1086_vm2, %v4282_v56  ;;  %4138 = vmatmul.mubr.msk.bf16.gmra.mrb[48].mxu1 %vm1086_vm2, %v4283_v57 }
  0x78   : > { %4013 = vmatprep.mubr.msk.bf16.mxu0 %vm1086_vm2, %v4284_v58  ;;  %4141 = vmatprep.mubr.msk.bf16.mxu1 %vm1086_vm2, %v4285_v59  ;;  %v4343_v58 = vld [vmem:[%s4537_s22 + $0x3b8] sm:$0xff]   ;;  %v4344_v59 = vld [vmem:[%s4537_s22 + $0x1c0] sm:$0xff]  }
  0x7f   : > { %4014 = vmatmul.mubr.msk.bf16.gmra.mrb[52].mxu0 %vm1086_vm2, %v4286_v60  ;;  %4142 = vmatmul.mubr.msk.bf16.gmra.mrb[52].mxu1 %vm1086_vm2, %v4287_v61 }
  0x80   : > { %4017 = vmatprep.mubr.msk.bf16.mxu0 %vm1086_vm2, %v4288_v62  ;;  %4145 = vmatprep.mubr.msk.bf16.mxu1 %vm1086_vm2, %v4289_v63  ;;  %v4345_v62 = vld [vmem:[%s4537_s22 + $0x3c0] sm:$0xff]  }
  0x87   : > { %4018 = vmatmul.mubr.msk.bf16.gmra.mrb[56].mxu0 %vm1086_vm2, %v4290_v0  ;;  %4146 = vmatmul.mubr.msk.bf16.gmra.mrb[56].mxu1 %vm1086_vm2, %v4291_v1 }
  0x88   : > { %4021 = vmatprep.mubr.msk.bf16.mxu0 %vm1086_vm2, %v4292_v2  ;;  %4149 = vmatprep.mubr.msk.bf16.mxu1 %vm1086_vm2, %v4293_v3  ;;  %v4346_v3 = vld [vmem:[%s4537_s22 + $0x1c8] sm:$0xff]  }
  0x8f   : > { %4022 = vmatmul.mubr.msk.bf16.gmra.mrb[60].mxu0 %vm1086_vm2, %v4294_v4  ;;  %4150 = vmatmul.mubr.msk.bf16.gmra.mrb[60].mxu1 %vm1086_vm2, %v4295_v5 }
  0x90   : > { %4025 = vmatprep.mubr.msk.bf16.mxu0 %vm1086_vm2, %v4296_v6  ;;  %4153 = vmatprep.mubr.msk.bf16.mxu1 %vm1086_vm2, %v4297_v7  ;;  %v4347_v6 = vld [vmem:[%s4537_s22 + $0x3c8] sm:$0xff]   ;;  %v4348_v7 = vld [vmem:[%s4537_s22 + $0x1d0] sm:$0xff]  }
  0x97   : > { %4026 = vmatmul.mubr.msk.bf16.gmra.mrb[64].mxu0 %vm1086_vm2, %v4298_v8  ;;  %4154 = vmatmul.mubr.msk.bf16.gmra.mrb[64].mxu1 %vm1086_vm2, %v4299_v9 }
  0x98   : > { %4029 = vmatprep.mubr.msk.bf16.mxu0 %vm1086_vm2, %v4300_v10  ;;  %4157 = vmatprep.mubr.msk.bf16.mxu1 %vm1086_vm2, %v4301_v11  ;;  %v4349_v10 = vld [vmem:[%s4537_s22 + $0x3d0] sm:$0xff]  }
  0x9f   : > { %4030 = vmatmul.mubr.msk.bf16.gmra.mrb[68].mxu0 %vm1086_vm2, %v4302_v12  ;;  %4158 = vmatmul.mubr.msk.bf16.gmra.mrb[68].mxu1 %vm1086_vm2, %v4303_v13 }
  0xa0   : > { %4033 = vmatprep.mubr.msk.bf16.mxu0 %vm1086_vm2, %v4304_v14  ;;  %4161 = vmatprep.mubr.msk.bf16.mxu1 %vm1086_vm2, %v4305_v15  ;;  %v4350_v15 = vld [vmem:[%s4537_s22 + $0x1d8] sm:$0xff]  }
  0xa7   : > { %4034 = vmatmul.mubr.msk.bf16.gmra.mrb[72].mxu0 %vm1086_vm2, %v4306_v16  ;;  %4162 = vmatmul.mubr.msk.bf16.gmra.mrb[72].mxu1 %vm1086_vm2, %v4307_v17 }
  0xa8   : > { %4037 = vmatprep.mubr.msk.bf16.mxu0 %vm1086_vm2, %v4308_v18  ;;  %4165 = vmatprep.mubr.msk.bf16.mxu1 %vm1086_vm2, %v4309_v19  ;;  %v4351_v18 = vld [vmem:[%s4537_s22 + $0x3d8] sm:$0xff]   ;;  %v4352_v19 = vld [vmem:[%s4537_s22 + $0x1e0] sm:$0xff]  }
  0xaf   : > { %4038 = vmatmul.mubr.msk.bf16.gmra.mrb[76].mxu0 %vm1086_vm2, %v4310_v20  ;;  %4166 = vmatmul.mubr.msk.bf16.gmra.mrb[76].mxu1 %vm1086_vm2, %v4311_v21 }
  0xb0   : > { %4041 = vmatprep.mubr.msk.bf16.mxu0 %vm1086_vm2, %v4312_v22  ;;  %4169 = vmatprep.mubr.msk.bf16.mxu1 %vm1086_vm2, %v4313_v23  ;;  %v4353_v22 = vld [vmem:[%s4537_s22 + $0x3e0] sm:$0xff]  }
  0xb7   : > { %4042 = vmatmul.mubr.msk.bf16.gmra.mrb[80].mxu0 %vm1086_vm2, %v4314_v24  ;;  %4170 = vmatmul.mubr.msk.bf16.gmra.mrb[80].mxu1 %vm1086_vm2, %v4315_v25 }
  0xb8   : > { %4045 = vmatprep.mubr.msk.bf16.mxu0 %vm1086_vm2, %v4316_v26  ;;  %4173 = vmatprep.mubr.msk.bf16.mxu1 %vm1086_vm2, %v4317_v27  ;;  %v4354_v27 = vld [vmem:[%s4537_s22 + $0x1e8] sm:$0xff]  }
  0xbf   : > { %4046 = vmatmul.mubr.msk.bf16.gmra.mrb[84].mxu0 %vm1086_vm2, %v4318_v28  ;;  %4174 = vmatmul.mubr.msk.bf16.gmra.mrb[84].mxu1 %vm1086_vm2, %v4319_v29 }
  0xc0   : > { %4049 = vmatprep.mubr.msk.bf16.mxu0 %vm1086_vm2, %v4320_v30  ;;  %4177 = vmatprep.mubr.msk.bf16.mxu1 %vm1086_vm2, %v4321_v31  ;;  %v4355_v30 = vld [vmem:[%s4537_s22 + $0x3e8] sm:$0xff]   ;;  %v4356_v31 = vld [vmem:[%s4537_s22 + $0x1f0] sm:$0xff]  }
  0xc7   : > { %4050 = vmatmul.mubr.msk.bf16.gmra.mrb[88].mxu0 %vm1086_vm2, %v4322_v32  ;;  %4178 = vmatmul.mubr.msk.bf16.gmra.mrb[88].mxu1 %vm1086_vm2, %v4323_v33 }
  0xc8   : > { %4053 = vmatprep.mubr.msk.bf16.mxu0 %vm1086_vm2, %v4324_v34  ;;  %4181 = vmatprep.mubr.msk.bf16.mxu1 %vm1086_vm2, %v4325_v35  ;;  %v4357_v34 = vld [vmem:[%s4537_s22 + $0x3f0] sm:$0xff]  }
  0xcf   : > { %4054 = vmatmul.mubr.msk.bf16.gmra.mrb[92].mxu0 %vm1086_vm2, %v4326_v36  ;;  %4182 = vmatmul.mubr.msk.bf16.gmra.mrb[92].mxu1 %vm1086_vm2, %v4327_v37 }
  0xd0   : > { %4057 = vmatprep.mubr.msk.bf16.mxu0 %vm1086_vm2, %v4328_v38  ;;  %4185 = vmatprep.mubr.msk.bf16.mxu1 %vm1086_vm2, %v4329_v39  ;;  %v4358_v39 = vld [vmem:[%s4537_s22 + $0x1f8] sm:$0xff]  }
  0xd7   : > { %4058 = vmatmul.mubr.msk.bf16.gmra.mrb[96].mxu0 %vm1086_vm2, %v4330_v40  ;;  %4186 = vmatmul.mubr.msk.bf16.gmra.mrb[96].mxu1 %vm1086_vm2, %v4331_v41 }
  0xd8   : > { %4061 = vmatprep.mubr.msk.bf16.mxu0 %vm1086_vm2, %v4332_v42  ;;  %4189 = vmatprep.mubr.msk.bf16.mxu1 %vm1086_vm2, %v4333_v43  ;;  %v4359_v42 = vld [vmem:[%s4537_s22 + $0x3f8] sm:$0xff]  }
  0xdf   : > { %4062 = vmatmul.mubr.msk.bf16.gmra.mrb[100].mxu0 %vm1086_vm2, %v4334_v44  ;;  %4190 = vmatmul.mubr.msk.bf16.gmra.mrb[100].mxu1 %vm1086_vm2, %v4335_v45 }
  0xe0   : > { %4065 = vmatprep.mubr.msk.bf16.mxu0 %vm1086_vm2, %v4336_v46  ;;  %4193 = vmatprep.mubr.msk.bf16.mxu1 %vm1086_vm2, %v4337_v47 }
  0xe7   : > { %4066 = vmatmul.mubr.msk.bf16.gmra.mrb[104].mxu0 %vm1086_vm2, %v4338_v48  ;;  %4194 = vmatmul.mubr.msk.bf16.gmra.mrb[104].mxu1 %vm1086_vm2, %v4339_v49 }
  0xe8   : > { %4069 = vmatprep.mubr.msk.bf16.mxu0 %vm1086_vm2, %v4340_v50  ;;  %4197 = vmatprep.mubr.msk.bf16.mxu1 %vm1086_vm2, %v4341_v51 }
  0xea   : > { %v4759_v52 = vpop.f32.mrb[0].mxu0  ;;  %v4761_v53 = vpop.f32.mrb[0].mxu1 }
  0xeb   : > { %v4763_v54 = vpop.f32.mrb[1].mxu0  ;;  %v4766_v56 = vpop.f32.mrb[1].mxu1 }
  0xec   : > { %v4768_v57 = vpop.f32.mrb[2].mxu0  ;;  %v4772_v60 = vpop.f32.mrb[2].mxu1 }
  0xed   : > { %v4774_v61 = vpop.f32.mrb[3].mxu0  ;;  %v4777_v63 = vpop.f32.mrb[3].mxu1 }
  0xef   : > { %4070 = vmatmul.mubr.msk.bf16.gmra.mrb[108].mxu0 %vm1086_vm2, %v4342_v55  ;;  %4198 = vmatmul.mubr.msk.bf16.gmra.mrb[108].mxu1 %vm1086_vm2, %v4343_v58 }
  0xf0   : > { %4073 = vmatprep.mubr.msk.bf16.mxu0 %vm1086_vm2, %v4344_v59  ;;  %4201 = vmatprep.mubr.msk.bf16.mxu1 %vm1086_vm2, %v4345_v62 }
  0xf2   : > { %v4783_v0 = vpop.f32.mrb[4].mxu0  ;;  %v4785_v1 = vpop.f32.mrb[4].mxu1 }
  0xf3   : > { %v4787_v2 = vpop.f32.mrb[5].mxu0  ;;  %v4790_v4 = vpop.f32.mrb[5].mxu1 }
  0xf4   : > { %v4792_v5 = vpop.f32.mrb[6].mxu0  ;;  %v4796_v8 = vpop.f32.mrb[6].mxu1 }
  0xf5   : > { %v4798_v9 = vpop.f32.mrb[7].mxu0  ;;  %v4801_v11 = vpop.f32.mrb[7].mxu1 }
  0xf7   : > { %4074 = vmatmul.mubr.msk.bf16.gmra.mrb[112].mxu0 %vm1086_vm2, %v4346_v3  ;;  %4202 = vmatmul.mubr.msk.bf16.gmra.mrb[112].mxu1 %vm1086_vm2, %v4347_v6 }
  0xf8   : > { %4077 = vmatprep.mubr.msk.bf16.mxu0 %vm1086_vm2, %v4348_v7  ;;  %4205 = vmatprep.mubr.msk.bf16.mxu1 %vm1086_vm2, %v4349_v10 }
  0xfa   : > { %v4807_v12 = vpop.f32.mrb[8].mxu0  ;;  %v4809_v13 = vpop.f32.mrb[8].mxu1 }
  0xfb   : > { %v4811_v14 = vpop.f32.mrb[9].mxu0  ;;  %v4814_v16 = vpop.f32.mrb[9].mxu1 }
  0xfc   : > { %v4816_v17 = vpop.f32.mrb[10].mxu0  ;;  %v4820_v20 = vpop.f32.mrb[10].mxu1 }
  0xfd   : > { %v4822_v21 = vpop.f32.mrb[11].mxu0  ;;  %v4825_v23 = vpop.f32.mrb[11].mxu1 }
  0xff   : > { %4078 = vmatmul.mubr.msk.bf16.gmra.mrb[116].mxu0 %vm1086_vm2, %v4350_v15  ;;  %4206 = vmatmul.mubr.msk.bf16.gmra.mrb[116].mxu1 %vm1086_vm2, %v4351_v18 }
 0x100   : > { %4081 = vmatprep.mubr.msk.bf16.mxu0 %vm1086_vm2, %v4352_v19  ;;  %4209 = vmatprep.mubr.msk.bf16.mxu1 %vm1086_vm2, %v4353_v22 }
 0x102   : > { %v4831_v24 = vpop.f32.mrb[12].mxu0  ;;  %v4833_v25 = vpop.f32.mrb[12].mxu1 }
 0x103   : > { %v4835_v26 = vpop.f32.mrb[13].mxu0  ;;  %v4838_v28 = vpop.f32.mrb[13].mxu1 }
 0x104   : > { %v4840_v29 = vpop.f32.mrb[14].mxu0  ;;  %v4844_v32 = vpop.f32.mrb[14].mxu1 }
 0x105   : > { %v4846_v33 = vpop.f32.mrb[15].mxu0  ;;  %v4849_v35 = vpop.f32.mrb[15].mxu1 }
 0x107   : > { %4082 = vmatmul.mubr.msk.bf16.gmra.mrb[120].mxu0 %vm1086_vm2, %v4354_v27  ;;  %4210 = vmatmul.mubr.msk.bf16.gmra.mrb[120].mxu1 %vm1086_vm2, %v4355_v30 }
 0x108   : > { %4085 = vmatprep.mubr.msk.bf16.mxu0 %vm1086_vm2, %v4356_v31  ;;  %4213 = vmatprep.mubr.msk.bf16.mxu1 %vm1086_vm2, %v4357_v34 }
 0x10a   : > { %v4855_v36 = vpop.f32.mrb[16].mxu0  ;;  %v4857_v37 = vpop.f32.mrb[16].mxu1 }
 0x10b   : > { %v4859_v38 = vpop.f32.mrb[17].mxu0  ;;  %v4862_v40 = vpop.f32.mrb[17].mxu1 }
 0x10c   : > { %v4864_v41 = vpop.f32.mrb[18].mxu0  ;;  %v4867_v43 = vpop.f32.mrb[18].mxu1 }
 0x10d   : > { %v4869_v44 = vpop.f32.mrb[19].mxu0  ;;  %v4871_v45 = vpop.f32.mrb[19].mxu1 }
 0x10f   : > { %4086 = vmatmul.mubr.msk.bf16.gmra.mrb[124].mxu0 %vm1086_vm2, %v4358_v39  ;;  %4214 = vmatmul.mubr.msk.bf16.gmra.mrb[124].mxu1 %vm1086_vm2, %v4359_v42 }
 0x112   : > { %v4875_v46 = vpop.f32.mrb[20].mxu0  ;;  %v4877_v47 = vpop.f32.mrb[20].mxu1 }
 0x113   : > { %v4879_v48 = vpop.f32.mrb[21].mxu0  ;;  %v4881_v49 = vpop.f32.mrb[21].mxu1 }
 0x114   : > { %v4883_v50 = vpop.f32.mrb[22].mxu0  ;;  %v4885_v51 = vpop.f32.mrb[22].mxu1 }
 0x115   : > { %v4887_v55 = vpop.f32.mrb[23].mxu0  ;;  %v4889_v58 = vpop.f32.mrb[23].mxu1 }
 0x11a   : > { %v4891_v59 = vpop.f32.mrb[24].mxu0  ;;  %v4893_v62 = vpop.f32.mrb[24].mxu1 }
 0x11b   : > { %5294 = vst [vmem:[#allocation2_spill] sm:$0xff] %v4893_v62  ;;  %v4895_v3 = vpop.f32.mrb[25].mxu0  ;;  %v4897_v6 = vpop.f32.mrb[25].mxu1 }
 0x11c   : > { %5295 = vst [vmem:[#allocation3_spill] sm:$0xff] %v4895_v3  ;;  %5296 = vst [vmem:[#allocation4_spill] sm:$0xff] %v4897_v6  ;;  %v4899_v7 = vpop.f32.mrb[26].mxu0  ;;  %v4901_v10 = vpop.f32.mrb[26].mxu1 }
 0x11d   : > { %5297 = vst [vmem:[#allocation5_spill] sm:$0xff] %v4899_v7  ;;  %5298 = vst [vmem:[#allocation6_spill] sm:$0xff] %v4901_v10  ;;  %v4903_v15 = vpop.f32.mrb[27].mxu0  ;;  %v4905_v18 = vpop.f32.mrb[27].mxu1 }
 0x11e   : > { %5299 = vst [vmem:[#allocation7_spill] sm:$0xff] %v4903_v15  ;;  %5300 = vst [vmem:[#allocation8_spill] sm:$0xff] %v4905_v18 }
 0x122   : > { %v4907_v19 = vpop.f32.mrb[28].mxu0  ;;  %v4909_v22 = vpop.f32.mrb[28].mxu1 }
 0x123   : > { %5301 = vst [vmem:[#allocation9_spill] sm:$0xff] %v4907_v19  ;;  %5302 = vst [vmem:[#allocation10_spill] sm:$0xff] %v4909_v22  ;;  %v4911_v27 = vpop.f32.mrb[29].mxu0  ;;  %v4913_v30 = vpop.f32.mrb[29].mxu1 }
 0x124   : > { %5303 = vst [vmem:[#allocation11_spill] sm:$0xff] %v4911_v27  ;;  %5304 = vst [vmem:[#allocation12_spill] sm:$0xff] %v4913_v30  ;;  %v4915_v31 = vpop.f32.mrb[30].mxu0  ;;  %v4917_v34 = vpop.f32.mrb[30].mxu1 }
 0x125   : > { %5305 = vst [vmem:[#allocation13_spill] sm:$0xff] %v4915_v31  ;;  %5306 = vst [vmem:[#allocation14_spill] sm:$0xff] %v4917_v34  ;;  %v4919_v39 = vpop.f32.mrb[31].mxu0  ;;  %v4921_v42 = vpop.f32.mrb[31].mxu1 }
 0x126   : > { %5307 = vst [vmem:[#allocation15_spill] sm:$0xff] %v4919_v39  ;;  %5308 = vst [vmem:[#allocation16_spill] sm:$0xff] %v4921_v42 }
 0x12a   : > { %v4923_v10 = vpop.f32.mrb[32].mxu0  ;;  %v4925_v15 = vpop.f32.mrb[32].mxu1 }
 0x12b   : > { %5309 = vst [vmem:[#allocation17_spill] sm:$0xff] %v4923_v10  ;;  %5310 = vst [vmem:[#allocation18_spill] sm:$0xff] %v4925_v15  ;;  %v4927_v18 = vpop.f32.mrb[33].mxu0  ;;  %v4929_v19 = vpop.f32.mrb[33].mxu1 }
 0x12c   : > { %5311 = vst [vmem:[#allocation19_spill] sm:$0xff] %v4927_v18  ;;  %5312 = vst [vmem:[#allocation20_spill] sm:$0xff] %v4929_v19  ;;  %v4931_v22 = vpop.f32.mrb[34].mxu0  ;;  %v4933_v27 = vpop.f32.mrb[34].mxu1 }
 0x12d   : > { %5313 = vst [vmem:[#allocation21_spill] sm:$0xff] %v4931_v22  ;;  %5314 = vst [vmem:[#allocation22_spill] sm:$0xff] %v4933_v27  ;;  %v4935_v30 = vpop.f32.mrb[35].mxu0  ;;  %v4937_v31 = vpop.f32.mrb[35].mxu1 }
 0x12e   : > { %5315 = vst [vmem:[#allocation23_spill] sm:$0xff] %v4935_v30  ;;  %5316 = vst [vmem:[#allocation24_spill] sm:$0xff] %v4937_v31 }
 0x132   : > { %v4939_v34 = vpop.f32.mrb[36].mxu0  ;;  %v4941_v39 = vpop.f32.mrb[36].mxu1 }
 0x133   : > { %5317 = vst [vmem:[#allocation25_spill] sm:$0xff] %v4939_v34  ;;  %5318 = vst [vmem:[#allocation26_spill] sm:$0xff] %v4941_v39  ;;  %v4943_v42 = vpop.f32.mrb[37].mxu0  ;;  %v4945_v10 = vpop.f32.mrb[37].mxu1 }
 0x134   : > { %5319 = vst [vmem:[#allocation27_spill] sm:$0xff] %v4943_v42  ;;  %5320 = vst [vmem:[#allocation28_spill] sm:$0xff] %v4945_v10  ;;  %v4947_v15 = vpop.f32.mrb[38].mxu0  ;;  %v4949_v18 = vpop.f32.mrb[38].mxu1 }
 0x135   : > { %5321 = vst [vmem:[#allocation29_spill] sm:$0xff] %v4947_v15  ;;  %5322 = vst [vmem:[#allocation30_spill] sm:$0xff] %v4949_v18  ;;  %v4951_v19 = vpop.f32.mrb[39].mxu0  ;;  %v4953_v22 = vpop.f32.mrb[39].mxu1 }
 0x136   : > { %5323 = vst [vmem:[#allocation31_spill] sm:$0xff] %v4951_v19  ;;  %5324 = vst [vmem:[#allocation32_spill] sm:$0xff] %v4953_v22 }
 0x13a   : > { %v4955_v27 = vpop.f32.mrb[40].mxu0  ;;  %v4957_v30 = vpop.f32.mrb[40].mxu1 }
 0x13b   : > { %5325 = vst [vmem:[#allocation33_spill] sm:$0xff] %v4955_v27  ;;  %5326 = vst [vmem:[#allocation34_spill] sm:$0xff] %v4957_v30  ;;  %v4959_v31 = vpop.f32.mrb[41].mxu0  ;;  %v4961_v34 = vpop.f32.mrb[41].mxu1 }
 0x13c   : > { %5327 = vst [vmem:[#allocation35_spill] sm:$0xff] %v4959_v31  ;;  %5328 = vst [vmem:[#allocation36_spill] sm:$0xff] %v4961_v34  ;;  %v4963_v39 = vpop.f32.mrb[42].mxu0  ;;  %v4965_v42 = vpop.f32.mrb[42].mxu1 }
 0x13d   : > { %5329 = vst [vmem:[#allocation37_spill] sm:$0xff] %v4963_v39  ;;  %5330 = vst [vmem:[#allocation38_spill] sm:$0xff] %v4965_v42  ;;  %v4967_v10 = vpop.f32.mrb[43].mxu0  ;;  %v4969_v15 = vpop.f32.mrb[43].mxu1 }
 0x13e   : > { %5331 = vst [vmem:[#allocation39_spill] sm:$0xff] %v4967_v10  ;;  %5332 = vst [vmem:[#allocation40_spill] sm:$0xff] %v4969_v15 }
 0x142   : > { %v4971_v18 = vpop.f32.mrb[44].mxu0  ;;  %v4973_v19 = vpop.f32.mrb[44].mxu1 }
 0x143   : > { %5333 = vst [vmem:[#allocation41_spill] sm:$0xff] %v4971_v18  ;;  %5334 = vst [vmem:[#allocation42_spill] sm:$0xff] %v4973_v19  ;;  %v4975_v22 = vpop.f32.mrb[45].mxu0  ;;  %v4977_v27 = vpop.f32.mrb[45].mxu1 }
 0x144   : > { %5335 = vst [vmem:[#allocation43_spill] sm:$0xff] %v4975_v22  ;;  %5336 = vst [vmem:[#allocation44_spill] sm:$0xff] %v4977_v27  ;;  %v4979_v30 = vpop.f32.mrb[46].mxu0  ;;  %v4981_v31 = vpop.f32.mrb[46].mxu1 }
 0x145   : > { %5337 = vst [vmem:[#allocation45_spill] sm:$0xff] %v4979_v30  ;;  %5338 = vst [vmem:[#allocation46_spill] sm:$0xff] %v4981_v31  ;;  %v4983_v34 = vpop.f32.mrb[47].mxu0  ;;  %v4985_v39 = vpop.f32.mrb[47].mxu1 }
 0x146   : > { %5339 = vst [vmem:[#allocation47_spill] sm:$0xff] %v4983_v34  ;;  %5340 = vst [vmem:[#allocation48_spill] sm:$0xff] %v4985_v39 }
 0x14a   : > { %v4987_v42 = vpop.f32.mrb[48].mxu0  ;;  %v4989_v10 = vpop.f32.mrb[48].mxu1 }
 0x14b   : > { %5341 = vst [vmem:[#allocation49_spill] sm:$0xff] %v4987_v42  ;;  %5342 = vst [vmem:[#allocation50_spill] sm:$0xff] %v4989_v10  ;;  %v4991_v15 = vpop.f32.mrb[49].mxu0  ;;  %v4993_v18 = vpop.f32.mrb[49].mxu1 }
 0x14c   : > { %5343 = vst [vmem:[#allocation51_spill] sm:$0xff] %v4991_v15  ;;  %5344 = vst [vmem:[#allocation52_spill] sm:$0xff] %v4993_v18  ;;  %v4995_v19 = vpop.f32.mrb[50].mxu0  ;;  %v4997_v22 = vpop.f32.mrb[50].mxu1 }
 0x14d   : > { %5345 = vst [vmem:[#allocation53_spill] sm:$0xff] %v4995_v19  ;;  %5346 = vst [vmem:[#allocation54_spill] sm:$0xff] %v4997_v22  ;;  %v4999_v27 = vpop.f32.mrb[51].mxu0  ;;  %v5001_v30 = vpop.f32.mrb[51].mxu1 }
 0x14e   : > { %5347 = vst [vmem:[#allocation55_spill] sm:$0xff] %v4999_v27  ;;  %5348 = vst [vmem:[#allocation56_spill] sm:$0xff] %v5001_v30 }
 0x152   : > { %v5003_v31 = vpop.f32.mrb[52].mxu0  ;;  %v5005_v34 = vpop.f32.mrb[52].mxu1 }
 0x153   : > { %5349 = vst [vmem:[#allocation57_spill] sm:$0xff] %v5003_v31  ;;  %5350 = vst [vmem:[#allocation58_spill] sm:$0xff] %v5005_v34  ;;  %v5007_v39 = vpop.f32.mrb[53].mxu0  ;;  %v5009_v42 = vpop.f32.mrb[53].mxu1 }
 0x154   : > { %5351 = vst [vmem:[#allocation59_spill] sm:$0xff] %v5007_v39  ;;  %5352 = vst [vmem:[#allocation60_spill] sm:$0xff] %v5009_v42  ;;  %v5011_v10 = vpop.f32.mrb[54].mxu0  ;;  %v5013_v15 = vpop.f32.mrb[54].mxu1 }
 0x155   : > { %5353 = vst [vmem:[#allocation61_spill] sm:$0xff] %v5011_v10  ;;  %5354 = vst [vmem:[#allocation62_spill] sm:$0xff] %v5013_v15  ;;  %v5015_v18 = vpop.f32.mrb[55].mxu0  ;;  %v5017_v19 = vpop.f32.mrb[55].mxu1 }
 0x156   : > { %5355 = vst [vmem:[#allocation63_spill] sm:$0xff] %v5015_v18  ;;  %5356 = vst [vmem:[#allocation64_spill] sm:$0xff] %v5017_v19 }
 0x15a   : > { %v5019_v22 = vpop.f32.mrb[56].mxu0  ;;  %v5021_v27 = vpop.f32.mrb[56].mxu1 }
 0x15b   : > { %5357 = vst [vmem:[#allocation65_spill] sm:$0xff] %v5019_v22  ;;  %5358 = vst [vmem:[#allocation66_spill] sm:$0xff] %v5021_v27  ;;  %v5023_v30 = vpop.f32.mrb[57].mxu0  ;;  %v5025_v31 = vpop.f32.mrb[57].mxu1 }
 0x15c   : > { %5359 = vst [vmem:[#allocation67_spill] sm:$0xff] %v5023_v30  ;;  %5360 = vst [vmem:[#allocation68_spill] sm:$0xff] %v5025_v31  ;;  %v5027_v34 = vpop.f32.mrb[58].mxu0  ;;  %v5029_v39 = vpop.f32.mrb[58].mxu1 }
 0x15d   : > { %5361 = vst [vmem:[#allocation69_spill] sm:$0xff] %v5027_v34  ;;  %5362 = vst [vmem:[#allocation70_spill] sm:$0xff] %v5029_v39  ;;  %v5031_v42 = vpop.f32.mrb[59].mxu0  ;;  %v5033_v10 = vpop.f32.mrb[59].mxu1 }
 0x15e   : > { %5363 = vst [vmem:[#allocation71_spill] sm:$0xff] %v5031_v42  ;;  %5364 = vst [vmem:[#allocation72_spill] sm:$0xff] %v5033_v10 }
 0x162   : > { %v5035_v15 = vpop.f32.mrb[60].mxu0  ;;  %v5037_v18 = vpop.f32.mrb[60].mxu1 }
 0x163   : > { %5365 = vst [vmem:[#allocation73_spill] sm:$0xff] %v5035_v15  ;;  %5366 = vst [vmem:[#allocation74_spill] sm:$0xff] %v5037_v18  ;;  %v5039_v19 = vpop.f32.mrb[61].mxu0  ;;  %v5041_v22 = vpop.f32.mrb[61].mxu1 }
 0x164   : > { %5367 = vst [vmem:[#allocation75_spill] sm:$0xff] %v5039_v19  ;;  %5368 = vst [vmem:[#allocation76_spill] sm:$0xff] %v5041_v22  ;;  %v5043_v27 = vpop.f32.mrb[62].mxu0  ;;  %v5045_v30 = vpop.f32.mrb[62].mxu1 }
 0x165   : > { %5369 = vst [vmem:[#allocation77_spill] sm:$0xff] %v5043_v27  ;;  %5370 = vst [vmem:[#allocation78_spill] sm:$0xff] %v5045_v30  ;;  %v5047_v31 = vpop.f32.mrb[63].mxu0  ;;  %v5049_v34 = vpop.f32.mrb[63].mxu1  ;;  %v5057_v30 = vld [vmem:[%s5292_s2] ss:$0 sm:$0xff] }
 0x166   : > { %5371 = vst [vmem:[#allocation79_spill] sm:$0xff] %v5047_v31  ;;  %5372 = vst [vmem:[#allocation80_spill] sm:$0xff] %v5049_v34 }
 0x16a   : > { %v4027_v39 = vpop.f32.mrb[64].mxu0  ;;  %v4155_v10 = vpop.f32.mrb[64].mxu1 }
 0x16b   : > { %v2537_v42 = vmax.f32 %v4759_v52, %v4027_v39  ;;  %v1768_v7 = vpop.f32.mrb[65].mxu0  ;;  %v2601_v15 = vmax.f32 %v4761_v53, %v4155_v10  ;;  %v2280_v18 = vpop.f32.mrb[65].mxu1 }
 0x16c   : > { %v2535_v19 = vmax.f32 %v4763_v54, %v1768_v7  ;;  %v4028_v22 = vpop.f32.mrb[66].mxu0  ;;  %v2599_v31 = vmax.f32 %v4766_v56, %v2280_v18  ;;  %v4156_v27 = vpop.f32.mrb[66].mxu1 }
 0x16d   : > { %v2538_v34 = vmax.f32 %v4768_v57, %v4028_v22  ;;  %v1771_v52 = vpop.f32.mrb[67].mxu0  ;;  %v2665_v39 = vmax.f32 %v2537_v42, %v2601_v15  ;;  %v2602_v6 = vmax.f32 %v4772_v60, %v4156_v27  ;;  %v2283_v10 = vpop.f32.mrb[67].mxu1 }
 0x16e   : > { %v2536_v53 = vmax.f32 %v4774_v61, %v1771_v52  ;;  %v2663_v54 = vmax.f32 %v2535_v19, %v2599_v31  ;;  %v2600_v7 = vmax.f32 %v4777_v63, %v2283_v10 }
 0x16f   : > { %v2736_v3 = vadd.f32 %v5057_v30, %v2665_v39  ;;  %v2666_v62 = vmax.f32 %v2538_v34, %v2602_v6 }
 0x170   : > { %v2734_v56 = vadd.f32 %v5057_v30, %v2663_v54  ;;  %v2664_v18 = vmax.f32 %v2536_v53, %v2600_v7 }
 0x171   : > { %4360 = vtanh.f32 %v2736_v3  ;;  %v2737_v57 = vadd.f32 %v5057_v30, %v2666_v62 }
 0x172   : > { %v4031_v15 = vpop.f32.mrb[68].mxu0  ;;  %4362 = vtanh.f32 %v2734_v56  ;;  %v2735_v60 = vadd.f32 %v5057_v30, %v2664_v18  ;;  %v4159_v19 = vpop.f32.mrb[68].mxu1 }
 0x173   : > { %v2541_v61 = vmax.f32 %v4783_v0, %v4031_v15  ;;  %v1784_v63 = vpop.f32.mrb[69].mxu0  ;;  %4364 = vtanh.f32 %v2737_v57  ;;  %v2605_v22 = vmax.f32 %v4785_v1, %v4159_v19  ;;  %v2296_v27 = vpop.f32.mrb[69].mxu1 }
 0x174   : > { %v2539_v6 = vmax.f32 %v4787_v2, %v1784_v63  ;;  %v4032_v31 = vpop.f32.mrb[70].mxu0  ;;  %4366 = vtanh.f32 %v2735_v60  ;;  %v2603_v3 = vmax.f32 %v4790_v4, %v2296_v27  ;;  %v4160_v34 = vpop.f32.mrb[70].mxu1 }
 0x175   : > { %v2542_v62 = vmax.f32 %v4792_v5, %v4032_v31  ;;  %v1787_v42 = vpop.f32.mrb[71].mxu0  ;;  %v2669_v52 = vmax.f32 %v2541_v61, %v2605_v22  ;;  %v2606_v39 = vmax.f32 %v4796_v8, %v4160_v34  ;;  %v2299_v53 = vpop.f32.mrb[71].mxu1 }
 0x176   : > { %v2540_v0 = vmax.f32 %v4798_v9, %v1787_v42  ;;  %v2667_v1 = vmax.f32 %v2539_v6, %v2603_v3  ;;  %v2604_v2 = vmax.f32 %v4801_v11, %v2299_v53 }
 0x177   : > { %v2740_v10 = vadd.f32 %v5057_v30, %v2669_v52  ;;  %v2670_v4 = vmax.f32 %v2542_v62, %v2606_v39 }
 0x178   : > { %v2738_v5 = vadd.f32 %v5057_v30, %v2667_v1  ;;  %v2668_v54 = vmax.f32 %v2540_v0, %v2604_v2 }
 0x179   : > { %4368 = vtanh.f32 %v2740_v10  ;;  %v2741_v7 = vadd.f32 %v5057_v30, %v2670_v4 }
 0x17a   : > { %v4035_v8 = vpop.f32.mrb[72].mxu0  ;;  %4370 = vtanh.f32 %v2738_v5  ;;  %v2739_v9 = vadd.f32 %v5057_v30, %v2668_v54  ;;  %v4163_v18 = vpop.f32.mrb[72].mxu1 }
 0x17b   : > { %v2545_v56 = vmax.f32 %v4807_v12, %v4035_v8  ;;  %v1800_v57 = vpop.f32.mrb[73].mxu0  ;;  %v4361_v15 = vpop.eup %4360  ;;  %4372 = vtanh.f32 %v2741_v7  ;;  %v2609_v11 = vmax.f32 %v4809_v13, %v4163_v18 }
 0x17c   : > { %v2543_v60 = vmax.f32 %v4811_v14, %v1800_v57  ;;  %v2312_v61 = vpop.f32.mrb[73].mxu1  ;;  %v4036_v19 = vpop.f32.mrb[74].mxu0  ;;  %4374 = vtanh.f32 %v2739_v9 }
 0x17d   : > { %v4363_v63 = vpop.eup %4362  ;;  %v2607_v22 = vmax.f32 %v4814_v16, %v2312_v61  ;;  %v2546_v6 = vmax.f32 %v4816_v17, %v4036_v19  ;;  %v4164_v27 = vpop.f32.mrb[74].mxu1  ;;  %v2673_v12 = vmax.f32 %v2545_v56, %v2609_v11 }
 0x17e   : > { %v1803_v31 = vpop.f32.mrb[75].mxu0  ;;  %v4365_v3 = vpop.eup %4364  ;;  %v2610_v13 = vmax.f32 %v4820_v20, %v4164_v27 }
 0x17f   : > { %v2544_v14 = vmax.f32 %v4822_v21, %v1803_v31  ;;  %v2315_v62 = vpop.f32.mrb[75].mxu1  ;;  %v4367_v34 = vpop.eup %4366  ;;  %v3644_v16 = vpack.c.bf16 %v4365_v3, %v4361_v15  ;;  %v2671_v42 = vmax.f32 %v2543_v60, %v2607_v22  ;;  %v2744_v39 = vadd.f32 %v5057_v30, %v2673_v12 }
 0x180   : > { %v2608_v17 = vmax.f32 %v4825_v23, %v2315_v62  ;;  %v3639_v52 = vpack.c.bf16 %v4367_v34, %v4363_v63  ;;  %v2674_v0 = vmax.f32 %v2546_v6, %v2610_v13 }
 0x181   : > { %3796 = vst [vmem:[%s5094_s29 + $0x8] sm:$0xff] %v3644_v16   ;;  %v2742_v53 = vadd.f32 %v5057_v30, %v2671_v42  ;;  %4376 = vtanh.f32 %v2744_v39 }
 0x182   : > { %v2672_v1 = vmax.f32 %v2544_v14, %v2608_v17  ;;  %3640 = vst [vmem:[%s5094_s29] sm:$0xff] %v3639_v52   ;;  %v2745_v20 = vadd.f32 %v5057_v30, %v2674_v0  ;;  %v4039_v2 = vpop.f32.mrb[76].mxu0  ;;  %v4167_v4 = vpop.f32.mrb[76].mxu1 }
 0x183   : > { %4378 = vtanh.f32 %v2742_v53  ;;  %v2549_v10 = vmax.f32 %v4831_v24, %v4039_v2  ;;  %v1816_v23 = vpop.f32.mrb[77].mxu0  ;;  %v4369_v5 = vpop.eup %4368  ;;  %v2613_v54 = vmax.f32 %v4833_v25, %v4167_v4 }
 0x184   : > { %v2743_v21 = vadd.f32 %v5057_v30, %v2672_v1  ;;  %4380 = vtanh.f32 %v2745_v20  ;;  %v2547_v7 = vmax.f32 %v4835_v26, %v1816_v23  ;;  %v2328_v8 = vpop.f32.mrb[77].mxu1  ;;  %v4040_v9 = vpop.f32.mrb[78].mxu0 }
 0x185   : > { %v4371_v56 = vpop.eup %4370  ;;  %v2611_v18 = vmax.f32 %v4838_v28, %v2328_v8  ;;  %v2550_v57 = vmax.f32 %v4840_v29, %v4040_v9  ;;  %v4168_v15 = vpop.f32.mrb[78].mxu1  ;;  %v2677_v60 = vmax.f32 %v2549_v10, %v2613_v54 }
 0x186   : > { %4382 = vtanh.f32 %v2743_v21  ;;  %v1819_v11 = vpop.f32.mrb[79].mxu0  ;;  %v4373_v24 = vpop.eup %4372  ;;  %v2614_v61 = vmax.f32 %v4844_v32, %v4168_v15 }
 0x187   : > { %v2548_v25 = vmax.f32 %v4846_v33, %v1819_v11  ;;  %v2331_v19 = vpop.f32.mrb[79].mxu1  ;;  %v4375_v26 = vpop.eup %4374  ;;  %v3654_v63 = vpack.c.bf16 %v4373_v24, %v4369_v5  ;;  %v2675_v22 = vmax.f32 %v2547_v7, %v2611_v18  ;;  %v2748_v28 = vadd.f32 %v5057_v30, %v2677_v60 }
 0x188   : > { %v2612_v6 = vmax.f32 %v4849_v35, %v2331_v19  ;;  %v3649_v27 = vpack.c.bf16 %v4375_v26, %v4371_v56  ;;  %v2678_v31 = vmax.f32 %v2550_v57, %v2614_v61 }
 0x189   : > { %3798 = vst [vmem:[%s5094_s29 + $0x18] sm:$0xff] %v3654_v63   ;;  %v2746_v29 = vadd.f32 %v5057_v30, %v2675_v22  ;;  %4384 = vtanh.f32 %v2748_v28 }
 0x18a   : > { %v2676_v3 = vmax.f32 %v2548_v25, %v2612_v6  ;;  %3797 = vst [vmem:[%s5094_s29 + $0x10] sm:$0xff] %v3649_v27   ;;  %v2749_v32 = vadd.f32 %v5057_v30, %v2678_v31  ;;  %v4043_v12 = vpop.f32.mrb[80].mxu0  ;;  %v4171_v14 = vpop.f32.mrb[80].mxu1 }
 0x18b   : > { %4386 = vtanh.f32 %v2746_v29  ;;  %v2553_v13 = vmax.f32 %v4855_v36, %v4043_v12  ;;  %v1832_v35 = vpop.f32.mrb[81].mxu0  ;;  %v4377_v62 = vpop.eup %4376  ;;  %v2617_v34 = vmax.f32 %v4857_v37, %v4171_v14 }
 0x18c   : > { %v2747_v33 = vadd.f32 %v5057_v30, %v2676_v3  ;;  %4388 = vtanh.f32 %v2749_v32  ;;  %v2551_v16 = vmax.f32 %v4859_v38, %v1832_v35  ;;  %v2344_v42 = vpop.f32.mrb[81].mxu1  ;;  %v4044_v17 = vpop.f32.mrb[82].mxu0  ;;  %v5373_v35 = vld [vmem:[#allocation2_spill] sm:$0xff] }
 0x18d   : > { %v4379_v52 = vpop.eup %4378  ;;  %v2615_v39 = vmax.f32 %v4862_v40, %v2344_v42  ;;  %v2554_v0 = vmax.f32 %v4864_v41, %v4044_v17  ;;  %v4172_v53 = vpop.f32.mrb[82].mxu1  ;;  %v2681_v20 = vmax.f32 %v2553_v13, %v2617_v34  ;;  %v5374_v34 = vld [vmem:[#allocation3_spill] sm:$0xff] }
 0x18e   : > { %4390 = vtanh.f32 %v2747_v33  ;;  %v1835_v1 = vpop.f32.mrb[83].mxu0  ;;  %v4381_v36 = vpop.eup %4380  ;;  %v2618_v2 = vmax.f32 %v4867_v43, %v4172_v53  ;;  %v5376_v53 = vld [vmem:[#allocation5_spill] sm:$0xff] }
 0x18f   : > { %v2552_v37 = vmax.f32 %v4869_v44, %v1835_v1  ;;  %v2347_v21 = vpop.f32.mrb[83].mxu1  ;;  %v3664_v10 = vpack.c.bf16 %v4381_v36, %v4377_v62  ;;  %v2679_v4 = vmax.f32 %v2551_v16, %v2615_v39  ;;  %v2752_v40 = vadd.f32 %v5057_v30, %v2681_v20  ;;  %v5375_v39 = vld [vmem:[#allocation4_spill] sm:$0xff] }
 0x190   : > { %v4383_v38 = vpop.eup %4382  ;;  %v2616_v23 = vmax.f32 %v4871_v45, %v2347_v21  ;;  %v2682_v54 = vmax.f32 %v2554_v0, %v2618_v2 }
 0x191   : > { %v3659_v5 = vpack.c.bf16 %v4383_v38, %v4379_v52  ;;  %3800 = vst [vmem:[%s5094_s29 + $0x28] sm:$0xff] %v3664_v10   ;;  %v2750_v41 = vadd.f32 %v5057_v30, %v2679_v4  ;;  %4392 = vtanh.f32 %v2752_v40  ;;  %v5378_v38 = vld [vmem:[#allocation7_spill] sm:$0xff] }
 0x192   : > { %v2680_v7 = vmax.f32 %v2552_v37, %v2616_v23  ;;  %v2753_v43 = vadd.f32 %v5057_v30, %v2682_v54  ;;  %v4047_v8 = vpop.f32.mrb[84].mxu0  ;;  %v4175_v56 = vpop.f32.mrb[84].mxu1  ;;  %v5377_v37 = vld [vmem:[#allocation6_spill] sm:$0xff]  ;;  %v5379_v54 = vld [vmem:[#allocation8_spill] sm:$0xff] }
 0x193   : > { %3799 = vst [vmem:[%s5094_s29 + $0x20] sm:$0xff] %v3659_v5   ;;  %4394 = vtanh.f32 %v2750_v41  ;;  %v2557_v9 = vmax.f32 %v4875_v46, %v4047_v8  ;;  %v1848_v45 = vpop.f32.mrb[85].mxu0  ;;  %v4385_v18 = vpop.eup %4384  ;;  %v2621_v57 = vmax.f32 %v4877_v47, %v4175_v56 }
 0x194   : > { %v2751_v44 = vadd.f32 %v5057_v30, %v2680_v7  ;;  %4396 = vtanh.f32 %v2753_v43  ;;  %v2555_v15 = vmax.f32 %v4879_v48, %v1848_v45  ;;  %v2360_v11 = vpop.f32.mrb[85].mxu1  ;;  %v4048_v24 = vpop.f32.mrb[86].mxu0 }
 0x195   : > { %v4387_v60 = vpop.eup %4386  ;;  %v2619_v61 = vmax.f32 %v4881_v49, %v2360_v11  ;;  %v2558_v25 = vmax.f32 %v4883_v50, %v4048_v24  ;;  %v4176_v19 = vpop.f32.mrb[86].mxu1  ;;  %v2685_v63 = vmax.f32 %v2557_v9, %v2621_v57  ;;  %v5380_v57 = vld [vmem:[#allocation9_spill] sm:$0xff] }
 0x196   : > { %4398 = vtanh.f32 %v2751_v44  ;;  %v1851_v26 = vpop.f32.mrb[87].mxu0  ;;  %v4389_v46 = vpop.eup %4388  ;;  %v2622_v22 = vmax.f32 %v4885_v51, %v4176_v19  ;;  %v5382_v19 = vld [vmem:[#allocation11_spill] sm:$0xff] }
 0x197   : > { %v2556_v47 = vmax.f32 %v4887_v55, %v1851_v26  ;;  %v2363_v6 = vpop.f32.mrb[87].mxu1  ;;  %v3674_v27 = vpack.c.bf16 %v4389_v46, %v4385_v18  ;;  %v2683_v28 = vmax.f32 %v2555_v15, %v2619_v61  ;;  %v2756_v49 = vadd.f32 %v5057_v30, %v2685_v63  ;;  %v5381_v61 = vld [vmem:[#allocation10_spill] sm:$0xff] }
 0x198   : > { %v4391_v48 = vpop.eup %4390  ;;  %v2620_v31 = vmax.f32 %v4889_v58, %v2363_v6  ;;  %v2686_v3 = vmax.f32 %v2558_v25, %v2622_v22 }
 0x199   : > { %v3669_v29 = vpack.c.bf16 %v4391_v48, %v4387_v60  ;;  %3802 = vst [vmem:[%s5094_s29 + $0x38] sm:$0xff] %v3674_v27   ;;  %v2754_v50 = vadd.f32 %v5057_v30, %v2683_v28  ;;  %4400 = vtanh.f32 %v2756_v49  ;;  %v5384_v48 = vld [vmem:[#allocation13_spill] sm:$0xff] }
 0x19a   : > { %v2684_v32 = vmax.f32 %v2556_v47, %v2620_v31  ;;  %v2757_v51 = vadd.f32 %v5057_v30, %v2686_v3  ;;  %v4051_v12 = vpop.f32.mrb[88].mxu0  ;;  %v4179_v13 = vpop.f32.mrb[88].mxu1  ;;  %v5383_v47 = vld [vmem:[#allocation12_spill] sm:$0xff]  ;;  %v5385_v3 = vld [vmem:[#allocation14_spill] sm:$0xff] }
 0x19b   : > { %3801 = vst [vmem:[%s5094_s29 + $0x30] sm:$0xff] %v3669_v29   ;;  %4402 = vtanh.f32 %v2754_v50  ;;  %v2561_v33 = vmax.f32 %v4891_v59, %v4051_v12  ;;  %v1864_v58 = vpop.f32.mrb[89].mxu0  ;;  %v4393_v14 = vpop.eup %4392  ;;  %v2625_v62 = vmax.f32 %v5373_v35, %v4179_v13 }
 0x19c   : > { %v2755_v55 = vadd.f32 %v5057_v30, %v2684_v32  ;;  %4404 = vtanh.f32 %v2757_v51  ;;  %v2559_v16 = vmax.f32 %v5374_v34, %v1864_v58  ;;  %v2376_v42 = vpop.f32.mrb[89].mxu1  ;;  %v4052_v17 = vpop.f32.mrb[90].mxu0  ;;  %v5386_v32 = vld [vmem:[#allocation15_spill] sm:$0xff]  ;;  %v5387_v58 = vld [vmem:[#allocation16_spill] sm:$0xff] }
 0x19d   : > { %v4395_v52 = vpop.eup %4394  ;;  %v2623_v0 = vmax.f32 %v5375_v39, %v2376_v42  ;;  %v2562_v1 = vmax.f32 %v5376_v53, %v4052_v17  ;;  %v4180_v36 = vpop.f32.mrb[90].mxu1  ;;  %v2689_v2 = vmax.f32 %v2561_v33, %v2625_v62 }
 0x19e   : > { %4406 = vtanh.f32 %v2755_v55  ;;  %v1867_v20 = vpop.f32.mrb[91].mxu0  ;;  %v4397_v59 = vpop.eup %4396  ;;  %v2626_v21 = vmax.f32 %v5377_v37, %v4180_v36  ;;  %v5390_v37 = vld [vmem:[#allocation19_spill] sm:$0xff] }
 0x19f   : > { %v2560_v10 = vmax.f32 %v5378_v38, %v1867_v20  ;;  %v2379_v4 = vpop.f32.mrb[91].mxu1  ;;  %v3684_v5 = vpack.c.bf16 %v4397_v59, %v4393_v14  ;;  %v2687_v40 = vmax.f32 %v2559_v16, %v2623_v0  ;;  %v2760_v43 = vadd.f32 %v5057_v30, %v2689_v2  ;;  %v5388_v0 = vld [vmem:[#allocation17_spill] sm:$0xff]  ;;  %v5389_v59 = vld [vmem:[#allocation18_spill] sm:$0xff] }
 0x1a0   : > { %v4399_v23 = vpop.eup %4398  ;;  %v2624_v41 = vmax.f32 %v5379_v54, %v2379_v4  ;;  %v2690_v8 = vmax.f32 %v2562_v1, %v2626_v21 }
 0x1a1   : > { %v3679_v7 = vpack.c.bf16 %v4399_v23, %v4395_v52  ;;  %3804 = vst [vmem:[%s5094_s29 + $0x48] sm:$0xff] %v3684_v5   ;;  %v2758_v44 = vadd.f32 %v5057_v30, %v2687_v40  ;;  %4408 = vtanh.f32 %v2760_v43  ;;  %v5391_v23 = vld [vmem:[#allocation20_spill] sm:$0xff]  ;;  %v5392_v40 = vld [vmem:[#allocation21_spill] sm:$0xff] }
 0x1a2   : > { %v2688_v9 = vmax.f32 %v2560_v10, %v2624_v41  ;;  %v2761_v56 = vadd.f32 %v5057_v30, %v2690_v8  ;;  %v4055_v45 = vpop.f32.mrb[92].mxu0  ;;  %v4183_v11 = vpop.f32.mrb[92].mxu1 }
 0x1a3   : > { %3803 = vst [vmem:[%s5094_s29 + $0x40] sm:$0xff] %v3679_v7   ;;  %4410 = vtanh.f32 %v2758_v44  ;;  %v2565_v15 = vmax.f32 %v5380_v57, %v4055_v45  ;;  %v1880_v24 = vpop.f32.mrb[93].mxu0  ;;  %v4401_v60 = vpop.eup %4400  ;;  %v2629_v25 = vmax.f32 %v5381_v61, %v4183_v11  ;;  %v5393_v44 = vld [vmem:[#allocation22_spill] sm:$0xff] }
 0x1a4   : > { %v2759_v18 = vadd.f32 %v5057_v30, %v2688_v9  ;;  %4412 = vtanh.f32 %v2761_v56  ;;  %v2563_v26 = vmax.f32 %v5382_v19, %v1880_v24  ;;  %v2392_v46 = vpop.f32.mrb[93].mxu1  ;;  %v4056_v63 = vpop.f32.mrb[94].mxu0  ;;  %v5394_v56 = vld [vmem:[#allocation23_spill] sm:$0xff]  ;;  %v5395_v24 = vld [vmem:[#allocation24_spill] sm:$0xff] }
 0x1a5   : > { %v4403_v22 = vpop.eup %4402  ;;  %v2627_v6 = vmax.f32 %v5383_v47, %v2392_v46  ;;  %v2566_v27 = vmax.f32 %v5384_v48, %v4056_v63  ;;  %v4184_v28 = vpop.f32.mrb[94].mxu1  ;;  %v2693_v49 = vmax.f32 %v2565_v15, %v2629_v25 }
 0x1a6   : > { %4414 = vtanh.f32 %v2759_v18  ;;  %v1883_v31 = vpop.f32.mrb[95].mxu0  ;;  %v4405_v29 = vpop.eup %4404  ;;  %v2630_v50 = vmax.f32 %v5385_v3, %v4184_v28  ;;  %v5398_v3 = vld [vmem:[#allocation27_spill] sm:$0xff] }
 0x1a7   : > { %v2564_v51 = vmax.f32 %v5386_v32, %v1883_v31  ;;  %v2395_v12 = vpop.f32.mrb[95].mxu1  ;;  %v3694_v33 = vpack.c.bf16 %v4405_v29, %v4401_v60  ;;  %v2691_v13 = vmax.f32 %v2563_v26, %v2627_v6  ;;  %v2764_v62 = vadd.f32 %v5057_v30, %v2693_v49  ;;  %v5396_v6 = vld [vmem:[#allocation25_spill] sm:$0xff]  ;;  %v5397_v29 = vld [vmem:[#allocation26_spill] sm:$0xff] }
 0x1a8   : > { %v4407_v55 = vpop.eup %4406  ;;  %v2628_v14 = vmax.f32 %v5387_v58, %v2395_v12  ;;  %v2694_v34 = vmax.f32 %v2566_v27, %v2630_v50 }
 0x1a9   : > { %v3689_v35 = vpack.c.bf16 %v4407_v55, %v4403_v22  ;;  %3806 = vst [vmem:[%s5094_s29 + $0x58] sm:$0xff] %v3694_v33   ;;  %v2762_v16 = vadd.f32 %v5057_v30, %v2691_v13  ;;  %4416 = vtanh.f32 %v2764_v62  ;;  %v5399_v55 = vld [vmem:[#allocation28_spill] sm:$0xff]  ;;  %v5400_v13 = vld [vmem:[#allocation29_spill] sm:$0xff] }
 0x1aa   : > { %v2692_v42 = vmax.f32 %v2564_v51, %v2628_v14  ;;  %v2765_v17 = vadd.f32 %v5057_v30, %v2694_v34  ;;  %v4059_v52 = vpop.f32.mrb[96].mxu0  ;;  %v4187_v1 = vpop.f32.mrb[96].mxu1 }
 0x1ab   : > { %3805 = vst [vmem:[%s5094_s29 + $0x50] sm:$0xff] %v3689_v35   ;;  %4418 = vtanh.f32 %v2762_v16  ;;  %v2569_v53 = vmax.f32 %v5388_v0, %v4059_v52  ;;  %v1896_v36 = vpop.f32.mrb[97].mxu0  ;;  %v4409_v20 = vpop.eup %4408  ;;  %v2633_v2 = vmax.f32 %v5389_v59, %v4187_v1  ;;  %v5401_v16 = vld [vmem:[#allocation30_spill] sm:$0xff] }
 0x1ac   : > { %v2763_v39 = vadd.f32 %v5057_v30, %v2692_v42  ;;  %4420 = vtanh.f32 %v2765_v17  ;;  %v2567_v21 = vmax.f32 %v5390_v37, %v1896_v36  ;;  %v2408_v38 = vpop.f32.mrb[97].mxu1  ;;  %v4060_v10 = vpop.f32.mrb[98].mxu0  ;;  %v5402_v17 = vld [vmem:[#allocation31_spill] sm:$0xff]  ;;  %v5403_v36 = vld [vmem:[#allocation32_spill] sm:$0xff] }
 0x1ad   : > { %v4411_v4 = vpop.eup %4410  ;;  %v2631_v5 = vmax.f32 %v5391_v23, %v2408_v38  ;;  %v2570_v54 = vmax.f32 %v5392_v40, %v4060_v10  ;;  %v4188_v41 = vpop.f32.mrb[98].mxu1  ;;  %v2697_v8 = vmax.f32 %v2569_v53, %v2633_v2 }
 0x1ae   : > { %4422 = vtanh.f32 %v2763_v39  ;;  %v1899_v7 = vpop.f32.mrb[99].mxu0  ;;  %v4413_v43 = vpop.eup %4412  ;;  %v2634_v9 = vmax.f32 %v5393_v44, %v4188_v41  ;;  %v5406_v44 = vld [vmem:[#allocation35_spill] sm:$0xff] }
 0x1af   : > { %v2568_v45 = vmax.f32 %v5394_v56, %v1899_v7  ;;  %v2411_v18 = vpop.f32.mrb[99].mxu1  ;;  %v3704_v15 = vpack.c.bf16 %v4413_v43, %v4409_v20  ;;  %v2695_v11 = vmax.f32 %v2567_v21, %v2631_v5  ;;  %v2768_v25 = vadd.f32 %v5057_v30, %v2697_v8  ;;  %v5404_v5 = vld [vmem:[#allocation33_spill] sm:$0xff]  ;;  %v5405_v43 = vld [vmem:[#allocation34_spill] sm:$0xff] }
 0x1b0   : > { %v4415_v57 = vpop.eup %4414  ;;  %v2632_v60 = vmax.f32 %v5395_v24, %v2411_v18  ;;  %v2698_v19 = vmax.f32 %v2570_v54, %v2634_v9 }
 0x1b1   : > { %v3699_v61 = vpack.c.bf16 %v4415_v57, %v4411_v4  ;;  %3808 = vst [vmem:[%s5094_s29 + $0x68] sm:$0xff] %v3704_v15   ;;  %v2766_v26 = vadd.f32 %v5057_v30, %v2695_v11  ;;  %4424 = vtanh.f32 %v2768_v25  ;;  %v5407_v57 = vld [vmem:[#allocation36_spill] sm:$0xff]  ;;  %v5408_v11 = vld [vmem:[#allocation37_spill] sm:$0xff] }
 0x1b2   : > { %v2696_v46 = vmax.f32 %v2568_v45, %v2632_v60  ;;  %v2769_v63 = vadd.f32 %v5057_v30, %v2698_v19  ;;  %v4063_v22 = vpop.f32.mrb[100].mxu0  ;;  %v4191_v27 = vpop.f32.mrb[100].mxu1 }
 0x1b3   : > { %3807 = vst [vmem:[%s5094_s29 + $0x60] sm:$0xff] %v3699_v61   ;;  %4426 = vtanh.f32 %v2766_v26  ;;  %v2573_v48 = vmax.f32 %v5396_v6, %v4063_v22  ;;  %v1912_v28 = vpop.f32.mrb[101].mxu0  ;;  %v4417_v31 = vpop.eup %4416  ;;  %v2637_v49 = vmax.f32 %v5397_v29, %v4191_v27  ;;  %v5409_v26 = vld [vmem:[#allocation38_spill] sm:$0xff] }
 0x1b4   : > { %v2767_v47 = vadd.f32 %v5057_v30, %v2696_v46  ;;  %4428 = vtanh.f32 %v2769_v63  ;;  %v2571_v50 = vmax.f32 %v5398_v3, %v1912_v28  ;;  %v2424_v32 = vpop.f32.mrb[101].mxu1  ;;  %v4064_v51 = vpop.f32.mrb[102].mxu0  ;;  %v5410_v63 = vld [vmem:[#allocation39_spill] sm:$0xff]  ;;  %v5411_v28 = vld [vmem:[#allocation40_spill] sm:$0xff] }
 0x1b5   : > { %v4419_v12 = vpop.eup %4418  ;;  %v2635_v33 = vmax.f32 %v5399_v55, %v2424_v32  ;;  %v2574_v58 = vmax.f32 %v5400_v13, %v4064_v51  ;;  %v4192_v14 = vpop.f32.mrb[102].mxu1  ;;  %v2701_v34 = vmax.f32 %v2573_v48, %v2637_v49 }
 0x1b6   : > { %4430 = vtanh.f32 %v2767_v47  ;;  %v1915_v35 = vpop.f32.mrb[103].mxu0  ;;  %v4421_v62 = vpop.eup %4420  ;;  %v2638_v42 = vmax.f32 %v5401_v16, %v4192_v14  ;;  %v5414_v16 = vld [vmem:[#allocation43_spill] sm:$0xff] }
 0x1b7   : > { %v2572_v52 = vmax.f32 %v5402_v17, %v1915_v35  ;;  %v2427_v39 = vpop.f32.mrb[103].mxu1  ;;  %v3714_v53 = vpack.c.bf16 %v4421_v62, %v4417_v31  ;;  %v2699_v1 = vmax.f32 %v2571_v50, %v2635_v33  ;;  %v2772_v2 = vadd.f32 %v5057_v30, %v2701_v34  ;;  %v5412_v33 = vld [vmem:[#allocation41_spill] sm:$0xff]  ;;  %v5413_v62 = vld [vmem:[#allocation42_spill] sm:$0xff] }
 0x1b8   : > { %v4423_v0 = vpop.eup %4422  ;;  %v2636_v20 = vmax.f32 %v5403_v36, %v2427_v39  ;;  %v2702_v37 = vmax.f32 %v2574_v58, %v2638_v42 }
 0x1b9   : > { %v3709_v59 = vpack.c.bf16 %v4423_v0, %v4419_v12  ;;  %3810 = vst [vmem:[%s5094_s29 + $0x78] sm:$0xff] %v3714_v53   ;;  %v2770_v21 = vadd.f32 %v5057_v30, %v2699_v1  ;;  %4432 = vtanh.f32 %v2772_v2  ;;  %v5415_v0 = vld [vmem:[#allocation44_spill] sm:$0xff]  ;;  %v5416_v1 = vld [vmem:[#allocation45_spill] sm:$0xff] }
 0x1ba   : > { %v2700_v38 = vmax.f32 %v2572_v52, %v2636_v20  ;;  %v2773_v10 = vadd.f32 %v5057_v30, %v2702_v37  ;;  %v4067_v4 = vpop.f32.mrb[104].mxu0  ;;  %v4195_v54 = vpop.f32.mrb[104].mxu1 }
 0x1bb   : > { %3809 = vst [vmem:[%s5094_s29 + $0x70] sm:$0xff] %v3709_v59   ;;  %4434 = vtanh.f32 %v2770_v21  ;;  %v2577_v40 = vmax.f32 %v5404_v5, %v4067_v4  ;;  %v1928_v41 = vpop.f32.mrb[105].mxu0  ;;  %v4425_v7 = vpop.eup %4424  ;;  %v2641_v8 = vmax.f32 %v5405_v43, %v4195_v54  ;;  %v5417_v21 = vld [vmem:[#allocation46_spill] sm:$0xff] }
 0x1bc   : > { %v2771_v23 = vadd.f32 %v5057_v30, %v2700_v38  ;;  %4436 = vtanh.f32 %v2773_v10  ;;  %v2575_v9 = vmax.f32 %v5406_v44, %v1928_v41  ;;  %v2440_v56 = vpop.f32.mrb[105].mxu1  ;;  %v4068_v45 = vpop.f32.mrb[106].mxu0  ;;  %v5418_v10 = vld [vmem:[#allocation47_spill] sm:$0xff]  ;;  %v5419_v41 = vld [vmem:[#allocation48_spill] sm:$0xff] }
 0x1bd   : > { %v4427_v18 = vpop.eup %4426  ;;  %v2639_v15 = vmax.f32 %v5407_v57, %v2440_v56  ;;  %v2578_v24 = vmax.f32 %v5408_v11, %v4068_v45  ;;  %v4196_v60 = vpop.f32.mrb[106].mxu1  ;;  %v2705_v19 = vmax.f32 %v2577_v40, %v2641_v8 }
 0x1be   : > { %4438 = vtanh.f32 %v2771_v23  ;;  %v1931_v61 = vpop.f32.mrb[107].mxu0  ;;  %v4429_v25 = vpop.eup %4428  ;;  %v2642_v46 = vmax.f32 %v5409_v26, %v4196_v60  ;;  %v5422_v26 = vld [vmem:[#allocation51_spill] sm:$0xff] }
 0x1bf   : > { %v2576_v22 = vmax.f32 %v5410_v63, %v1931_v61  ;;  %v2443_v47 = vpop.f32.mrb[107].mxu1  ;;  %v3724_v48 = vpack.c.bf16 %v4429_v25, %v4425_v7  ;;  %v2703_v27 = vmax.f32 %v2575_v9, %v2639_v15  ;;  %v2776_v49 = vadd.f32 %v5057_v30, %v2705_v19  ;;  %v5420_v15 = vld [vmem:[#allocation49_spill] sm:$0xff]  ;;  %v5421_v25 = vld [vmem:[#allocation50_spill] sm:$0xff] }
 0x1c0   : > { %v4431_v6 = vpop.eup %4430  ;;  %v2640_v31 = vmax.f32 %v5411_v28, %v2443_v47  ;;  %v2706_v3 = vmax.f32 %v2578_v24, %v2642_v46 }
 0x1c1   : > { %v3719_v29 = vpack.c.bf16 %v4431_v6, %v4427_v18  ;;  %3812 = vst [vmem:[%s5094_s29 + $0x88] sm:$0xff] %v3724_v48   ;;  %v2774_v50 = vadd.f32 %v5057_v30, %v2703_v27  ;;  %4440 = vtanh.f32 %v2776_v49  ;;  %v5423_v6 = vld [vmem:[#allocation52_spill] sm:$0xff]  ;;  %v5424_v27 = vld [vmem:[#allocation53_spill] sm:$0xff] }
 0x1c2   : > { %v2704_v32 = vmax.f32 %v2576_v22, %v2640_v31  ;;  %v2777_v51 = vadd.f32 %v5057_v30, %v2706_v3  ;;  %v4071_v12 = vpop.f32.mrb[108].mxu0  ;;  %v4199_v58 = vpop.f32.mrb[108].mxu1 }
 0x1c3   : > { %3811 = vst [vmem:[%s5094_s29 + $0x80] sm:$0xff] %v3719_v29   ;;  %4442 = vtanh.f32 %v2774_v50  ;;  %v2581_v13 = vmax.f32 %v5412_v33, %v4071_v12  ;;  %v1944_v14 = vpop.f32.mrb[109].mxu0  ;;  %v4433_v35 = vpop.eup %4432  ;;  %v2645_v34 = vmax.f32 %v5413_v62, %v4199_v58  ;;  %v5425_v50 = vld [vmem:[#allocation54_spill] sm:$0xff] }
 0x1c4   : > { %v2775_v55 = vadd.f32 %v5057_v30, %v2704_v32  ;;  %4444 = vtanh.f32 %v2777_v51  ;;  %v2579_v42 = vmax.f32 %v5414_v16, %v1944_v14  ;;  %v2456_v17 = vpop.f32.mrb[109].mxu1  ;;  %v4072_v52 = vpop.f32.mrb[110].mxu0  ;;  %v5426_v51 = vld [vmem:[#allocation55_spill] sm:$0xff]  ;;  %v5427_v14 = vld [vmem:[#allocation56_spill] sm:$0xff] }
 0x1c5   : > { %v4435_v39 = vpop.eup %4434  ;;  %v2643_v53 = vmax.f32 %v5415_v0, %v2456_v17  ;;  %v2582_v36 = vmax.f32 %v5416_v1, %v4072_v52  ;;  %v4200_v20 = vpop.f32.mrb[110].mxu1  ;;  %v2709_v37 = vmax.f32 %v2581_v13, %v2645_v34 }
 0x1c6   : > { %4446 = vtanh.f32 %v2775_v55  ;;  %v1947_v59 = vpop.f32.mrb[111].mxu0  ;;  %v4437_v2 = vpop.eup %4436  ;;  %v2646_v38 = vmax.f32 %v5417_v21, %v4200_v20  ;;  %v5430_v21 = vld [vmem:[#allocation59_spill] sm:$0xff] }
 0x1c7   : > { %v2580_v4 = vmax.f32 %v5418_v10, %v1947_v59  ;;  %v2459_v23 = vpop.f32.mrb[111].mxu1  ;;  %v3734_v40 = vpack.c.bf16 %v4437_v2, %v4433_v35  ;;  %v2707_v54 = vmax.f32 %v2579_v42, %v2643_v53  ;;  %v2780_v8 = vadd.f32 %v5057_v30, %v2709_v37  ;;  %v5428_v53 = vld [vmem:[#allocation57_spill] sm:$0xff]  ;;  %v5429_v2 = vld [vmem:[#allocation58_spill] sm:$0xff] }
 0x1c8   : > { %v4439_v5 = vpop.eup %4438  ;;  %v2644_v7 = vmax.f32 %v5419_v41, %v2459_v23  ;;  %v2710_v44 = vmax.f32 %v2582_v36, %v2646_v38 }
 0x1c9   : > { %v3729_v43 = vpack.c.bf16 %v4439_v5, %v4435_v39  ;;  %3814 = vst [vmem:[%s5094_s29 + $0x98] sm:$0xff] %v3734_v40   ;;  %v2778_v9 = vadd.f32 %v5057_v30, %v2707_v54  ;;  %4448 = vtanh.f32 %v2780_v8  ;;  %v5431_v5 = vld [vmem:[#allocation60_spill] sm:$0xff]  ;;  %v5432_v54 = vld [vmem:[#allocation61_spill] sm:$0xff] }
 0x1ca   : > { %v2708_v56 = vmax.f32 %v2580_v4, %v2644_v7  ;;  %v2781_v45 = vadd.f32 %v5057_v30, %v2710_v44  ;;  %v4075_v18 = vpop.f32.mrb[112].mxu0  ;;  %v4203_v24 = vpop.f32.mrb[112].mxu1 }
 0x1cb   : > { %3813 = vst [vmem:[%s5094_s29 + $0x90] sm:$0xff] %v3729_v43   ;;  %4450 = vtanh.f32 %v2778_v9  ;;  %v2585_v11 = vmax.f32 %v5420_v15, %v4075_v18  ;;  %v1960_v60 = vpop.f32.mrb[113].mxu0  ;;  %v4441_v61 = vpop.eup %4440  ;;  %v2649_v19 = vmax.f32 %v5421_v25, %v4203_v24  ;;  %v5433_v9 = vld [vmem:[#allocation62_spill] sm:$0xff] }
 0x1cc   : > { %v2779_v57 = vadd.f32 %v5057_v30, %v2708_v56  ;;  %4452 = vtanh.f32 %v2781_v45  ;;  %v2583_v46 = vmax.f32 %v5422_v26, %v1960_v60  ;;  %v2472_v63 = vpop.f32.mrb[113].mxu1  ;;  %v4076_v22 = vpop.f32.mrb[114].mxu0  ;;  %v5434_v45 = vld [vmem:[#allocation63_spill] sm:$0xff]  ;;  %v5435_v60 = vld [vmem:[#allocation64_spill] sm:$0xff] }
 0x1cd   : > { %v4443_v47 = vpop.eup %4442  ;;  %v2647_v48 = vmax.f32 %v5423_v6, %v2472_v63  ;;  %v2586_v28 = vmax.f32 %v5424_v27, %v4076_v22  ;;  %v4204_v31 = vpop.f32.mrb[114].mxu1  ;;  %v2713_v3 = vmax.f32 %v2585_v11, %v2649_v19 }
 0x1ce   : > { %4454 = vtanh.f32 %v2779_v57  ;;  %v1963_v29 = vpop.f32.mrb[115].mxu0  ;;  %v4445_v49 = vpop.eup %4444  ;;  %v2650_v32 = vmax.f32 %v5425_v50, %v4204_v31  ;;  %v5438_v50 = vld [vmem:[#allocation67_spill] sm:$0xff] }
 0x1cf   : > { %v2584_v12 = vmax.f32 %v5426_v51, %v1963_v29  ;;  %v2475_v55 = vpop.f32.mrb[115].mxu1  ;;  %v3744_v13 = vpack.c.bf16 %v4445_v49, %v4441_v61  ;;  %v2711_v58 = vmax.f32 %v2583_v46, %v2647_v48  ;;  %v2784_v34 = vadd.f32 %v5057_v30, %v2713_v3  ;;  %v5436_v48 = vld [vmem:[#allocation65_spill] sm:$0xff]  ;;  %v5437_v49 = vld [vmem:[#allocation66_spill] sm:$0xff] }
 0x1d0   : > { %v4447_v33 = vpop.eup %4446  ;;  %v2648_v35 = vmax.f32 %v5427_v14, %v2475_v55  ;;  %v2714_v16 = vmax.f32 %v2586_v28, %v2650_v32 }
 0x1d1   : > { %v3739_v62 = vpack.c.bf16 %v4447_v33, %v4443_v47  ;;  %3816 = vst [vmem:[%s5094_s29 + $0xa8] sm:$0xff] %v3744_v13   ;;  %v2782_v42 = vadd.f32 %v5057_v30, %v2711_v58  ;;  %4456 = vtanh.f32 %v2784_v34  ;;  %v5439_v33 = vld [vmem:[#allocation68_spill] sm:$0xff]  ;;  %v5440_v58 = vld [vmem:[#allocation69_spill] sm:$0xff] }
 0x1d2   : > { %v2712_v17 = vmax.f32 %v2584_v12, %v2648_v35  ;;  %v2785_v52 = vadd.f32 %v5057_v30, %v2714_v16  ;;  %v4079_v39 = vpop.f32.mrb[116].mxu0  ;;  %v4207_v36 = vpop.f32.mrb[116].mxu1 }
 0x1d3   : > { %3815 = vst [vmem:[%s5094_s29 + $0xa0] sm:$0xff] %v3739_v62   ;;  %4458 = vtanh.f32 %v2782_v42  ;;  %v2589_v1 = vmax.f32 %v5428_v53, %v4079_v39  ;;  %v1976_v20 = vpop.f32.mrb[117].mxu0  ;;  %v4449_v59 = vpop.eup %4448  ;;  %v2653_v37 = vmax.f32 %v5429_v2, %v4207_v36  ;;  %v5441_v42 = vld [vmem:[#allocation70_spill] sm:$0xff] }
 0x1d4   : > { %v2783_v0 = vadd.f32 %v5057_v30, %v2712_v17  ;;  %4460 = vtanh.f32 %v2785_v52  ;;  %v2587_v38 = vmax.f32 %v5430_v21, %v1976_v20  ;;  %v2488_v10 = vpop.f32.mrb[117].mxu1  ;;  %v4080_v4 = vpop.f32.mrb[118].mxu0  ;;  %v5442_v52 = vld [vmem:[#allocation71_spill] sm:$0xff]  ;;  %v5443_v20 = vld [vmem:[#allocation72_spill] sm:$0xff] }
 0x1d5   : > { %v4451_v23 = vpop.eup %4450  ;;  %v2651_v40 = vmax.f32 %v5431_v5, %v2488_v10  ;;  %v2590_v41 = vmax.f32 %v5432_v54, %v4080_v4  ;;  %v4208_v7 = vpop.f32.mrb[118].mxu1  ;;  %v2717_v44 = vmax.f32 %v2589_v1, %v2653_v37  ;;  %v5444_v54 = vld [vmem:[#allocation73_spill] sm:$0xff] }
 0x1d6   : > { %4462 = vtanh.f32 %v2783_v0  ;;  %v1979_v43 = vpop.f32.mrb[119].mxu0  ;;  %v4453_v8 = vpop.eup %4452  ;;  %v2654_v56 = vmax.f32 %v5433_v9, %v4208_v7  ;;  %v5446_v9 = vld [vmem:[#allocation75_spill] sm:$0xff] }
 0x1d7   : > { %v2588_v18 = vmax.f32 %v5434_v45, %v1979_v43  ;;  %v2491_v57 = vpop.f32.mrb[119].mxu1  ;;  %v3754_v11 = vpack.c.bf16 %v4453_v8, %v4449_v59  ;;  %v2715_v24 = vmax.f32 %v2587_v38, %v2651_v40  ;;  %v2788_v19 = vadd.f32 %v5057_v30, %v2717_v44  ;;  %v4488_v38 = vld [vmem:[%s5292_s2] ss:$0 sm:$0xff] }
 0x1d8   : > { %v4455_v15 = vpop.eup %4454  ;;  %v2652_v61 = vmax.f32 %v5435_v60, %v2491_v57  ;;  %v2718_v26 = vmax.f32 %v2590_v41, %v2654_v56 }
 0x1d9   : > { %v3749_v25 = vpack.c.bf16 %v4455_v15, %v4451_v23  ;;  %3818 = vst [vmem:[%s5094_s29 + $0xb8] sm:$0xff] %v3754_v11   ;;  %v2786_v46 = vadd.f32 %v5057_v30, %v2715_v24  ;;  %4464 = vtanh.f32 %v2788_v19  ;;  %v5447_v15 = vld [vmem:[#allocation76_spill] sm:$0xff]  ;;  %v5448_v24 = vld [vmem:[#allocation77_spill] sm:$0xff] }
 0x1da   : > { %v2716_v63 = vmax.f32 %v2588_v18, %v2652_v61  ;;  %v2789_v22 = vadd.f32 %v5057_v30, %v2718_v26  ;;  %v4083_v47 = vpop.f32.mrb[120].mxu0  ;;  %v4211_v28 = vpop.f32.mrb[120].mxu1 }
 0x1db   : > { %3817 = vst [vmem:[%s5094_s29 + $0xb0] sm:$0xff] %v3749_v25   ;;  %4466 = vtanh.f32 %v2786_v46  ;;  %v2593_v27 = vmax.f32 %v5436_v48, %v4083_v47  ;;  %v1992_v31 = vpop.f32.mrb[121].mxu0  ;;  %v4457_v29 = vpop.eup %4456  ;;  %v2657_v3 = vmax.f32 %v5437_v49, %v4211_v28  ;;  %v5449_v46 = vld [vmem:[#allocation78_spill] sm:$0xff] }
 0x1dc   : > { %v2787_v6 = vadd.f32 %v5057_v30, %v2716_v63  ;;  %4468 = vtanh.f32 %v2789_v22  ;;  %v2591_v32 = vmax.f32 %v5438_v50, %v1992_v31  ;;  %v2504_v51 = vpop.f32.mrb[121].mxu1  ;;  %v4084_v12 = vpop.f32.mrb[122].mxu0  ;;  %v5450_v22 = vld [vmem:[#allocation79_spill] sm:$0xff]  ;;  %v5451_v31 = vld [vmem:[#allocation80_spill] sm:$0xff] }
 0x1dd   : > { %v4459_v55 = vpop.eup %4458  ;;  %v2655_v13 = vmax.f32 %v5439_v33, %v2504_v51  ;;  %v2594_v14 = vmax.f32 %v5440_v58, %v4084_v12  ;;  %v4212_v35 = vpop.f32.mrb[122].mxu1  ;;  %v2721_v16 = vmax.f32 %v2593_v27, %v2657_v3 }
 0x1de   : > { %4470 = vtanh.f32 %v2787_v6  ;;  %v1995_v62 = vpop.f32.mrb[123].mxu0  ;;  %v4461_v34 = vpop.eup %4460  ;;  %v2658_v17 = vmax.f32 %v5441_v42, %v4212_v35 }
 0x1df   : > { %v2592_v39 = vmax.f32 %v5442_v52, %v1995_v62  ;;  %v2507_v0 = vpop.f32.mrb[123].mxu1  ;;  %v3764_v1 = vpack.c.bf16 %v4461_v34, %v4457_v29  ;;  %v2719_v36 = vmax.f32 %v2591_v32, %v2655_v13  ;;  %v2792_v37 = vadd.f32 %v5057_v30, %v2721_v16  ;;  %v5445_v30 = vld [vmem:[#allocation74_spill] sm:$0xff] }
 0x1e0   : > { %v4463_v53 = vpop.eup %4462  ;;  %v2656_v59 = vmax.f32 %v5443_v20, %v2507_v0  ;;  %v2722_v21 = vmax.f32 %v2594_v14, %v2658_v17 }
 0x1e1   : > { %v3759_v2 = vpack.c.bf16 %v4463_v53, %v4459_v55  ;;  %3820 = vst [vmem:[%s5094_s29 + $0xc8] sm:$0xff] %v3764_v1   ;;  %v2790_v10 = vadd.f32 %v4488_v38, %v2719_v36  ;;  %4472 = vtanh.f32 %v2792_v37 }
 0x1e2   : > { %v2720_v4 = vmax.f32 %v2592_v39, %v2656_v59  ;;  %v2793_v23 = vadd.f32 %v4488_v38, %v2722_v21  ;;  %v4087_v5 = vpop.f32.mrb[124].mxu0  ;;  %v4215_v7 = vpop.f32.mrb[124].mxu1 }
 0x1e3   : > { %3819 = vst [vmem:[%s5094_s29 + $0xc0] sm:$0xff] %v3759_v2   ;;  %4474 = vtanh.f32 %v2790_v10  ;;  %v2597_v41 = vmax.f32 %v5444_v54, %v4087_v5  ;;  %v2008_v43 = vpop.f32.mrb[125].mxu0  ;;  %v4465_v8 = vpop.eup %4464  ;;  %v2661_v44 = vmax.f32 %v5445_v30, %v4215_v7 }
 0x1e4   : > { %v2791_v40 = vadd.f32 %v4488_v38, %v2720_v4  ;;  %4476 = vtanh.f32 %v2793_v23  ;;  %v2595_v56 = vmax.f32 %v5446_v9, %v2008_v43  ;;  %v2520_v45 = vpop.f32.mrb[125].mxu1  ;;  %v4088_v18 = vpop.f32.mrb[126].mxu0 }
 0x1e5   : > { %v4467_v57 = vpop.eup %4466  ;;  %v2659_v11 = vmax.f32 %v5447_v15, %v2520_v45  ;;  %v2598_v60 = vmax.f32 %v5448_v24, %v4088_v18  ;;  %v4216_v61 = vpop.f32.mrb[126].mxu1  ;;  %v2725_v26 = vmax.f32 %v2597_v41, %v2661_v44 }
 0x1e6   : > { %4478 = vtanh.f32 %v2791_v40  ;;  %v2011_v25 = vpop.f32.mrb[127].mxu0  ;;  %v4469_v19 = vpop.eup %4468  ;;  %v2662_v63 = vmax.f32 %v5449_v46, %v4216_v61 }
 0x1e7   : > { %v2596_v47 = vmax.f32 %v5450_v22, %v2011_v25  ;;  %v2523_v6 = vpop.f32.mrb[127].mxu1  ;;  %v3774_v27 = vpack.c.bf16 %v4469_v19, %v4465_v8  ;;  %v2723_v28 = vmax.f32 %v2595_v56, %v2659_v11  ;;  %v2796_v3 = vadd.f32 %v4488_v38, %v2725_v26 }
 0x1e8   : > { %v4471_v48 = vpop.eup %4470  ;;  %v2660_v29 = vmax.f32 %v5451_v31, %v2523_v6  ;;  %v2726_v50 = vmax.f32 %v2598_v60, %v2662_v63 }
 0x1e9   : > { %v3769_v49 = vpack.c.bf16 %v4471_v48, %v4467_v57  ;;  %3822 = vst [vmem:[%s5094_s29 + $0xd8] sm:$0xff] %v3774_v27   ;;  %v2794_v32 = vadd.f32 %v4488_v38, %v2723_v28  ;;  %4480 = vtanh.f32 %v2796_v3 }
 0x1ea   : > { %v2724_v51 = vmax.f32 %v2596_v47, %v2660_v29  ;;  %v2797_v12 = vadd.f32 %v4488_v38, %v2726_v50 }
 0x1eb   : > { %3821 = vst [vmem:[%s5094_s29 + $0xd0] sm:$0xff] %v3769_v49   ;;  %4482 = vtanh.f32 %v2794_v32  ;;  %v4473_v33 = vpop.eup %4472 }
 0x1ec   : > { %v2795_v55 = vadd.f32 %v4488_v38, %v2724_v51  ;;  %4484 = vtanh.f32 %v2797_v12 }
 0x1ed   : > { %v4475_v13 = vpop.eup %4474 }
 0x1ee   : > { %4486 = vtanh.f32 %v2795_v55  ;;  %v4477_v58 = vpop.eup %4476 }
 0x1ef   : > { %v3784_v35 = vpack.c.bf16 %v4477_v58, %v4473_v33 }
 0x1f0   : > { %v4479_v14 = vpop.eup %4478 }
 0x1f1   : > { %v3779_v62 = vpack.c.bf16 %v4479_v14, %v4475_v13  ;;  %3824 = vst [vmem:[%s5094_s29 + $0xe8] sm:$0xff] %v3784_v35  }
 0x1f3   : > { %3823 = vst [vmem:[%s5094_s29 + $0xe0] sm:$0xff] %v3779_v62   ;;  %v4481_v34 = vpop.eup %4480 }
 0x1f5   : > { %v4483_v16 = vpop.eup %4482 }
 0x1f6   : > { %v4485_v42 = vpop.eup %4484 }
 0x1f7   : > { %v3794_v52 = vpack.c.bf16 %v4485_v42, %v4481_v34 }
 0x1f8   : > { %v4487_v17 = vpop.eup %4486 }
 0x1f9   : > { %v3789_v39 = vpack.c.bf16 %v4487_v17, %v4483_v16  ;;  %3826 = vst [vmem:[%s5094_s29 + $0xf8] sm:$0xff] %v3794_v52  }
 0x1fb   : > { %3825 = vst [vmem:[%s5094_s29 + $0xf0] sm:$0xff] %v3789_v39  }
 0x1fc PF: > { %s13_s12 = sadd.s32 1, %s4495_s12  }
 0x1fd   : > { %p10_p5 = scmp.ge.s32.totalorder %s13_s12, 6  }
 0x1ff   :  { %12 = sbr.rel (!%p10_p5) target bundleno = 1 (0x1), region = 62 }

// kernel: lenet5_forward.4
= control target key start
LH: loop header
LB: loop body
LE: loop exit
PB: predicated region body
PF: predicated region fallthrough
CT: control target
= control target key end

     0   :  { %v2004_v0 = vmov 0   ;;  %vm641_vm0 = vcmask 179200   ;;  %vm792_vm1 = vcmask 1042432   ;;  %s2624_s1 = inlined_call_operand.vmem [shape: bf16[150,128], index: 1, kind: input, shape index: {}]   ;;  %s2625_s0 = inlined_call_operand.vmem [shape: bf16[800,150], index: 0, kind: input, shape index: {}]   ;;  %s2626_s2 = inlined_call_operand.vmem [shape: f32[1,128], index: 2, kind: input, shape index: {}]   ;;  %s2627_s3 = inlined_call_operand.vmem [shape: bf16[200,128], index: 3, kind: output, shape index: {}]  }
   0x1   :  { %796 = vmatprep.subr.bf16.mxu0 %v2004_v0  ;;  %1773 = vmatprep.subr.bf16.mxu1 %v2004_v0  ;;  %v1794_v1 = vld [vmem:[%s2624_s1] sm:$0xff]   ;;  %v1795_v2 = vld [vmem:[%s2624_s1 + $0x8] sm:$0xff]   ;;  %v1796_v3 = vld [vmem:[%s2624_s1 + $0x10] sm:$0xff]  }
   0x2   :  { %797 = vmatpush1.bf16.msra.mxu0 %v1794_v1  ;;  %1783 = vmatpush1.bf16.msra.mxu1 %v1794_v1  ;;  %v1797_v4 = vld [vmem:[%s2624_s1 + $0x18] sm:$0xff]   ;;  %v1806_v5 = vld [vmem:[%s2625_s0 + $0x4] ss:$8 sps:$4 sm:$0xff]   ;;  %v1800_v9 = vld [vmem:[%s2624_s1 + $0x30] sm:$0xff]  }
   0x3   :  { %798 = vmatprep.subr.bf16.mxu0 %v2004_v0  ;;  %1774 = vmatprep.subr.bf16.mxu1 %v2004_v0  ;;  %v1809_v6 = vld [vmem:[%s2625_s0 + $0x194] ss:$8 sps:$4 sm:$0xff]   ;;  %v1798_v7 = vld [vmem:[%s2624_s1 + $0x20] sm:$0xff]   ;;  %v1799_v8 = vld [vmem:[%s2624_s1 + $0x28] sm:$0xff]  }
   0x4   :  { %1601 = vmatprep.mubr.msk.bf16.mxu0 %vm641_vm0, %v1806_v5  ;;  %1626 = vmatprep.mubr.msk.bf16.mxu1 %vm641_vm0, %v1809_v6  ;;  %v1801_v10 = vld [vmem:[%s2624_s1 + $0x38] sm:$0xff]   ;;  %v1802_v11 = vld [vmem:[%s2624_s1 + $0x40] sm:$0xff]   ;;  %v1803_v12 = vld [vmem:[%s2624_s1 + $0x48] ss:$0 sps:$4 sm:$0x77]  }
   0x5   :  { %v794_v13 = vsel %vm792_vm1, %v1803_v12, 0  ;;  %v1804_v14 = vld [vmem:[%s2625_s0] ss:$8 sps:$4 sm:$0xff]   ;;  %v1807_v15 = vld [vmem:[%s2625_s0 + $0x190] ss:$8 sps:$4 sm:$0xff]  }
   0x6   :  { %799 = vmatpush1.bf16.msra.mxu0 %v1795_v2  ;;  %1784 = vmatpush1.bf16.msra.mxu1 %v1795_v2  ;;  %v1810_v16 = vld [vmem:[%s2625_s0 + $0x14] ss:$8 sps:$4 sm:$0xff]   ;;  %v1812_v17 = vld [vmem:[%s2625_s0 + $0x1a4] ss:$8 sps:$4 sm:$0xff]   ;;  %v1814_v18 = vld [vmem:[%s2625_s0 + $0x10] ss:$8 sps:$4 sm:$0xff]  }
   0x7   :  { %800 = vmatprep.subr.bf16.mxu0 %v2004_v0  ;;  %1775 = vmatprep.subr.bf16.mxu1 %v2004_v0  ;;  %v1815_v19 = vld [vmem:[%s2625_s0 + $0x1a0] ss:$8 sps:$4 sm:$0xff]   ;;  %v1816_v20 = vld [vmem:[%s2625_s0 + $0x24] ss:$8 sps:$4 sm:$0xff]   ;;  %v1818_v21 = vld [vmem:[%s2625_s0 + $0x1b4] ss:$8 sps:$4 sm:$0xff]  }
   0x8   :  { %v1820_v22 = vld [vmem:[%s2625_s0 + $0x20] ss:$8 sps:$4 sm:$0xff]   ;;  %v1821_v23 = vld [vmem:[%s2625_s0 + $0x1b0] ss:$8 sps:$4 sm:$0xff]   ;;  %v1822_v24 = vld [vmem:[%s2625_s0 + $0x34] ss:$8 sps:$4 sm:$0xff]  }
   0x9   :  { %v1824_v25 = vld [vmem:[%s2625_s0 + $0x1c4] ss:$8 sps:$4 sm:$0xff]   ;;  %v1826_v26 = vld [vmem:[%s2625_s0 + $0x30] ss:$8 sps:$4 sm:$0xff]   ;;  %v1827_v27 = vld [vmem:[%s2625_s0 + $0x1c0] ss:$8 sps:$4 sm:$0xff]  }
   0xa   :  { %801 = vmatpush1.bf16.msra.mxu0 %v1796_v3  ;;  %1785 = vmatpush1.bf16.msra.mxu1 %v1796_v3  ;;  %v1828_v28 = vld [vmem:[%s2625_s0 + $0x44] ss:$8 sps:$4 sm:$0xff]   ;;  %v1830_v29 = vld [vmem:[%s2625_s0 + $0x1d4] ss:$8 sps:$4 sm:$0xff]   ;;  %v1832_v30 = vld [vmem:[%s2625_s0 + $0x40] ss:$8 sps:$4 sm:$0xff]  }
   0xb   :  { %802 = vmatprep.subr.bf16.mxu0 %v2004_v0  ;;  %1776 = vmatprep.subr.bf16.mxu1 %v2004_v0  ;;  %v1833_v31 = vld [vmem:[%s2625_s0 + $0x1d0] ss:$8 sps:$4 sm:$0xff]   ;;  %v1834_v32 = vld [vmem:[%s2625_s0 + $0x54] ss:$8 sps:$4 sm:$0xff]   ;;  %v1836_v33 = vld [vmem:[%s2625_s0 + $0x1e4] ss:$8 sps:$4 sm:$0xff]  }
   0xc   :  { %v1838_v34 = vld [vmem:[%s2625_s0 + $0x50] ss:$8 sps:$4 sm:$0xff]   ;;  %v1839_v35 = vld [vmem:[%s2625_s0 + $0x1e0] ss:$8 sps:$4 sm:$0xff]   ;;  %v1840_v36 = vld [vmem:[%s2625_s0 + $0x64] ss:$8 sps:$4 sm:$0xff]  }
   0xd   :  { %v1842_v37 = vld [vmem:[%s2625_s0 + $0x1f4] ss:$8 sps:$4 sm:$0xff]   ;;  %v1844_v38 = vld [vmem:[%s2625_s0 + $0x60] ss:$8 sps:$4 sm:$0xff]   ;;  %v1845_v39 = vld [vmem:[%s2625_s0 + $0x1f0] ss:$8 sps:$4 sm:$0xff]  }
   0xe   :  { %803 = vmatpush1.bf16.msra.mxu0 %v1797_v4  ;;  %1786 = vmatpush1.bf16.msra.mxu1 %v1797_v4  ;;  %v1846_v40 = vld [vmem:[%s2625_s0 + $0x74] ss:$8 sps:$4 sm:$0xff]   ;;  %v1848_v41 = vld [vmem:[%s2625_s0 + $0x204] ss:$8 sps:$4 sm:$0xff]   ;;  %v1850_v42 = vld [vmem:[%s2625_s0 + $0x70] ss:$8 sps:$4 sm:$0xff]  }
   0xf   :  { %804 = vmatprep.subr.bf16.mxu0 %v2004_v0  ;;  %1777 = vmatprep.subr.bf16.mxu1 %v2004_v0  ;;  %v1851_v43 = vld [vmem:[%s2625_s0 + $0x200] ss:$8 sps:$4 sm:$0xff]   ;;  %v1852_v44 = vld [vmem:[%s2625_s0 + $0x84] ss:$8 sps:$4 sm:$0xff]   ;;  %v1854_v45 = vld [vmem:[%s2625_s0 + $0x214] ss:$8 sps:$4 sm:$0xff]  }
  0x10   :  { %v1856_v46 = vld [vmem:[%s2625_s0 + $0x80] ss:$8 sps:$4 sm:$0xff]   ;;  %v1857_v47 = vld [vmem:[%s2625_s0 + $0x210] ss:$8 sps:$4 sm:$0xff]   ;;  %v1858_v48 = vld [vmem:[%s2625_s0 + $0x94] ss:$8 sps:$4 sm:$0xff]  }
  0x11   :  { %v1860_v49 = vld [vmem:[%s2625_s0 + $0x224] ss:$8 sps:$4 sm:$0xff]   ;;  %v1862_v50 = vld [vmem:[%s2625_s0 + $0x90] ss:$8 sps:$4 sm:$0xff]   ;;  %v1863_v51 = vld [vmem:[%s2625_s0 + $0x220] ss:$8 sps:$4 sm:$0xff]  }
  0x12   :  { %805 = vmatpush1.bf16.msra.mxu0 %v1798_v7  ;;  %1787 = vmatpush1.bf16.msra.mxu1 %v1798_v7  ;;  %v1864_v52 = vld [vmem:[%s2625_s0 + $0xa4] ss:$8 sps:$4 sm:$0xff]   ;;  %v1866_v53 = vld [vmem:[%s2625_s0 + $0x234] ss:$8 sps:$4 sm:$0xff]   ;;  %v1868_v54 = vld [vmem:[%s2625_s0 + $0xa0] ss:$8 sps:$4 sm:$0xff]  }
  0x13   :  { %806 = vmatprep.subr.bf16.mxu0 %v2004_v0  ;;  %1778 = vmatprep.subr.bf16.mxu1 %v2004_v0  ;;  %v1869_v55 = vld [vmem:[%s2625_s0 + $0x230] ss:$8 sps:$4 sm:$0xff]   ;;  %v1870_v56 = vld [vmem:[%s2625_s0 + $0xb4] ss:$8 sps:$4 sm:$0xff]   ;;  %v1872_v57 = vld [vmem:[%s2625_s0 + $0x244] ss:$8 sps:$4 sm:$0xff]  }
  0x14   :  { %v1874_v58 = vld [vmem:[%s2625_s0 + $0xb0] ss:$8 sps:$4 sm:$0xff]   ;;  %v1875_v59 = vld [vmem:[%s2625_s0 + $0x240] ss:$8 sps:$4 sm:$0xff]   ;;  %v1876_v60 = vld [vmem:[%s2625_s0 + $0xc4] ss:$8 sps:$4 sm:$0xff]  }
  0x15   :  { %v1878_v61 = vld [vmem:[%s2625_s0 + $0x254] ss:$8 sps:$4 sm:$0xff]   ;;  %v1880_v62 = vld [vmem:[%s2625_s0 + $0xc0] ss:$8 sps:$4 sm:$0xff]   ;;  %v1881_v63 = vld [vmem:[%s2625_s0 + $0x250] ss:$8 sps:$4 sm:$0xff]  }
  0x16   :  { %807 = vmatpush1.bf16.msra.mxu0 %v1799_v8  ;;  %1788 = vmatpush1.bf16.msra.mxu1 %v1799_v8  ;;  %v1884_v1 = vld [vmem:[%s2625_s0 + $0x264] ss:$8 sps:$4 sm:$0xff]   ;;  %v1886_v2 = vld [vmem:[%s2625_s0 + $0xd0] ss:$8 sps:$4 sm:$0xff]   ;;  %v1887_v3 = vld [vmem:[%s2625_s0 + $0x260] ss:$8 sps:$4 sm:$0xff]  }
  0x17   :  { %808 = vmatprep.subr.bf16.mxu0 %v2004_v0  ;;  %1779 = vmatprep.subr.bf16.mxu1 %v2004_v0  ;;  %v1888_v4 = vld [vmem:[%s2625_s0 + $0xe4] ss:$8 sps:$4 sm:$0xff]   ;;  %v1890_v5 = vld [vmem:[%s2625_s0 + $0x274] ss:$8 sps:$4 sm:$0xff]   ;;  %v1892_v6 = vld [vmem:[%s2625_s0 + $0xe0] ss:$8 sps:$4 sm:$0xff]  }
  0x18   :  { %v1893_v7 = vld [vmem:[%s2625_s0 + $0x270] ss:$8 sps:$4 sm:$0xff]   ;;  %v1894_v8 = vld [vmem:[%s2625_s0 + $0xf4] ss:$8 sps:$4 sm:$0xff]   ;;  %v1900_v12 = vld [vmem:[%s2625_s0 + $0x104] ss:$8 sps:$4 sm:$0xff]  }
  0x1a   :  { %809 = vmatpush1.bf16.msra.mxu0 %v1800_v9  ;;  %1789 = vmatpush1.bf16.msra.mxu1 %v1800_v9  ;;  %v1896_v9 = vld [vmem:[%s2625_s0 + $0x284] ss:$8 sps:$4 sm:$0xff]  }
  0x1b   :  { %810 = vmatprep.subr.bf16.mxu0 %v2004_v0  ;;  %1780 = vmatprep.subr.bf16.mxu1 %v2004_v0 }
  0x1e   :  { %811 = vmatpush1.bf16.msra.mxu0 %v1801_v10  ;;  %1790 = vmatpush1.bf16.msra.mxu1 %v1801_v10  ;;  %v1898_v10 = vld [vmem:[%s2625_s0 + $0xf0] ss:$8 sps:$4 sm:$0xff]  }
  0x1f   :  { %812 = vmatprep.subr.bf16.mxu0 %v2004_v0  ;;  %1781 = vmatprep.subr.bf16.mxu1 %v2004_v0 }
  0x22   :  { %813 = vmatpush1.bf16.msra.mxu0 %v1802_v11  ;;  %1791 = vmatpush1.bf16.msra.mxu1 %v1802_v11  ;;  %v1899_v11 = vld [vmem:[%s2625_s0 + $0x280] ss:$8 sps:$4 sm:$0xff]  }
  0x23   :  { %814 = vmatprep.subr.bf16.mxu0 %v2004_v0  ;;  %1782 = vmatprep.subr.bf16.mxu1 %v2004_v0  ;;  %v1882_v0 = vld [vmem:[%s2625_s0 + $0xd4] ss:$8 sps:$4 sm:$0xff]  }
  0x26   :  { %815 = vmatpush1.bf16.msra.mxu0 %v794_v13  ;;  %1792 = vmatpush1.bf16.msra.mxu1 %v794_v13  ;;  %v1902_v13 = vld [vmem:[%s2625_s0 + $0x294] ss:$8 sps:$4 sm:$0xff]  }
  0x29   :  { %829 = vmatmul.mubr.bf16.vlgmr.msra.gmra.mrb[0].mxu0 %v1804_v14  ;;  %1029 = vmatmul.mubr.bf16.vlgmr.msra.gmra.mrb[0].mxu1 %v1807_v15  ;;  %v1904_v14 = vld [vmem:[%s2625_s0 + $0x100] ss:$8 sps:$4 sm:$0xff]   ;;  %v1905_v15 = vld [vmem:[%s2625_s0 + $0x290] ss:$8 sps:$4 sm:$0xff]  }
  0x2a   :  { %1602 = vmatprep.mubr.msk.bf16.mxu0 %vm641_vm0, %v1810_v16  ;;  %1627 = vmatprep.mubr.msk.bf16.mxu1 %vm641_vm0, %v1812_v17  ;;  %v1906_v16 = vld [vmem:[%s2625_s0 + $0x114] ss:$8 sps:$4 sm:$0xff]   ;;  %v1908_v17 = vld [vmem:[%s2625_s0 + $0x2a4] ss:$8 sps:$4 sm:$0xff]  }
  0x31   :  { %837 = vmatmul.mubr.bf16.gmra.mrb[4].mxu0 %v1814_v18  ;;  %1037 = vmatmul.mubr.bf16.gmra.mrb[4].mxu1 %v1815_v19  ;;  %v1910_v18 = vld [vmem:[%s2625_s0 + $0x110] ss:$8 sps:$4 sm:$0xff]   ;;  %v1911_v19 = vld [vmem:[%s2625_s0 + $0x2a0] ss:$8 sps:$4 sm:$0xff]  }
  0x32   :  { %1603 = vmatprep.mubr.msk.bf16.mxu0 %vm641_vm0, %v1816_v20  ;;  %1628 = vmatprep.mubr.msk.bf16.mxu1 %vm641_vm0, %v1818_v21  ;;  %v1912_v20 = vld [vmem:[%s2625_s0 + $0x124] ss:$8 sps:$4 sm:$0xff]   ;;  %v1914_v21 = vld [vmem:[%s2625_s0 + $0x2b4] ss:$8 sps:$4 sm:$0xff]  }
  0x39   :  { %845 = vmatmul.mubr.bf16.gmra.mrb[8].mxu0 %v1820_v22  ;;  %1045 = vmatmul.mubr.bf16.gmra.mrb[8].mxu1 %v1821_v23  ;;  %v1916_v22 = vld [vmem:[%s2625_s0 + $0x120] ss:$8 sps:$4 sm:$0xff]   ;;  %v1917_v23 = vld [vmem:[%s2625_s0 + $0x2b0] ss:$8 sps:$4 sm:$0xff]  }
  0x3a   :  { %1604 = vmatprep.mubr.msk.bf16.mxu0 %vm641_vm0, %v1822_v24  ;;  %1629 = vmatprep.mubr.msk.bf16.mxu1 %vm641_vm0, %v1824_v25  ;;  %v1918_v24 = vld [vmem:[%s2625_s0 + $0x134] ss:$8 sps:$4 sm:$0xff]   ;;  %v1920_v25 = vld [vmem:[%s2625_s0 + $0x2c4] ss:$8 sps:$4 sm:$0xff]  }
  0x41   :  { %853 = vmatmul.mubr.bf16.gmra.mrb[12].mxu0 %v1826_v26  ;;  %1053 = vmatmul.mubr.bf16.gmra.mrb[12].mxu1 %v1827_v27  ;;  %v1922_v26 = vld [vmem:[%s2625_s0 + $0x130] ss:$8 sps:$4 sm:$0xff]   ;;  %v1923_v27 = vld [vmem:[%s2625_s0 + $0x2c0] ss:$8 sps:$4 sm:$0xff]  }
  0x42   :  { %1605 = vmatprep.mubr.msk.bf16.mxu0 %vm641_vm0, %v1828_v28  ;;  %1630 = vmatprep.mubr.msk.bf16.mxu1 %vm641_vm0, %v1830_v29  ;;  %v1924_v28 = vld [vmem:[%s2625_s0 + $0x144] ss:$8 sps:$4 sm:$0xff]   ;;  %v1926_v29 = vld [vmem:[%s2625_s0 + $0x2d4] ss:$8 sps:$4 sm:$0xff]  }
  0x49   :  { %861 = vmatmul.mubr.bf16.gmra.mrb[16].mxu0 %v1832_v30  ;;  %1061 = vmatmul.mubr.bf16.gmra.mrb[16].mxu1 %v1833_v31  ;;  %v1928_v30 = vld [vmem:[%s2625_s0 + $0x140] ss:$8 sps:$4 sm:$0xff]   ;;  %v1929_v31 = vld [vmem:[%s2625_s0 + $0x2d0] ss:$8 sps:$4 sm:$0xff]  }
  0x4a   :  { %1606 = vmatprep.mubr.msk.bf16.mxu0 %vm641_vm0, %v1834_v32  ;;  %1631 = vmatprep.mubr.msk.bf16.mxu1 %vm641_vm0, %v1836_v33  ;;  %v1930_v32 = vld [vmem:[%s2625_s0 + $0x154] ss:$8 sps:$4 sm:$0xff]   ;;  %v1932_v33 = vld [vmem:[%s2625_s0 + $0x2e4] ss:$8 sps:$4 sm:$0xff]  }
  0x51   :  { %869 = vmatmul.mubr.bf16.gmra.mrb[20].mxu0 %v1838_v34  ;;  %1069 = vmatmul.mubr.bf16.gmra.mrb[20].mxu1 %v1839_v35  ;;  %v1934_v34 = vld [vmem:[%s2625_s0 + $0x150] ss:$8 sps:$4 sm:$0xff]   ;;  %v1935_v35 = vld [vmem:[%s2625_s0 + $0x2e0] ss:$8 sps:$4 sm:$0xff]  }
  0x52   :  { %1607 = vmatprep.mubr.msk.bf16.mxu0 %vm641_vm0, %v1840_v36  ;;  %1632 = vmatprep.mubr.msk.bf16.mxu1 %vm641_vm0, %v1842_v37  ;;  %v1936_v36 = vld [vmem:[%s2625_s0 + $0x164] ss:$8 sps:$4 sm:$0xff]   ;;  %v1938_v37 = vld [vmem:[%s2625_s0 + $0x2f4] ss:$8 sps:$4 sm:$0xff]  }
  0x59   :  { %877 = vmatmul.mubr.bf16.gmra.mrb[24].mxu0 %v1844_v38  ;;  %1077 = vmatmul.mubr.bf16.gmra.mrb[24].mxu1 %v1845_v39  ;;  %v1940_v38 = vld [vmem:[%s2625_s0 + $0x160] ss:$8 sps:$4 sm:$0xff]   ;;  %v1941_v39 = vld [vmem:[%s2625_s0 + $0x2f0] ss:$8 sps:$4 sm:$0xff]  }
  0x5a   :  { %1608 = vmatprep.mubr.msk.bf16.mxu0 %vm641_vm0, %v1846_v40  ;;  %1633 = vmatprep.mubr.msk.bf16.mxu1 %vm641_vm0, %v1848_v41  ;;  %v1942_v40 = vld [vmem:[%s2625_s0 + $0x174] ss:$8 sps:$4 sm:$0xff]   ;;  %v1944_v41 = vld [vmem:[%s2625_s0 + $0x304] ss:$8 sps:$4 sm:$0xff]  }
  0x61   :  { %885 = vmatmul.mubr.bf16.gmra.mrb[28].mxu0 %v1850_v42  ;;  %1085 = vmatmul.mubr.bf16.gmra.mrb[28].mxu1 %v1851_v43  ;;  %v1946_v42 = vld [vmem:[%s2625_s0 + $0x170] ss:$8 sps:$4 sm:$0xff]   ;;  %v1947_v43 = vld [vmem:[%s2625_s0 + $0x300] ss:$8 sps:$4 sm:$0xff]  }
  0x62   :  { %1609 = vmatprep.mubr.msk.bf16.mxu0 %vm641_vm0, %v1852_v44  ;;  %1634 = vmatprep.mubr.msk.bf16.mxu1 %vm641_vm0, %v1854_v45  ;;  %v1948_v44 = vld [vmem:[%s2625_s0 + $0x184] ss:$8 sps:$4 sm:$0xff]   ;;  %v1950_v45 = vld [vmem:[%s2625_s0 + $0x314] ss:$8 sps:$4 sm:$0xff]  }
  0x69   :  { %893 = vmatmul.mubr.bf16.gmra.mrb[32].mxu0 %v1856_v46  ;;  %1093 = vmatmul.mubr.bf16.gmra.mrb[32].mxu1 %v1857_v47  ;;  %v1952_v46 = vld [vmem:[%s2625_s0 + $0x180] ss:$8 sps:$4 sm:$0xff]   ;;  %v1953_v47 = vld [vmem:[%s2625_s0 + $0x310] ss:$8 sps:$4 sm:$0xff]  }
  0x6a   :  { %1610 = vmatprep.mubr.msk.bf16.mxu0 %vm641_vm0, %v1858_v48  ;;  %1635 = vmatprep.mubr.msk.bf16.mxu1 %vm641_vm0, %v1860_v49 }
  0x71   :  { %901 = vmatmul.mubr.bf16.gmra.mrb[36].mxu0 %v1862_v50  ;;  %1101 = vmatmul.mubr.bf16.gmra.mrb[36].mxu1 %v1863_v51 }
  0x72   :  { %1611 = vmatprep.mubr.msk.bf16.mxu0 %vm641_vm0, %v1864_v52  ;;  %1636 = vmatprep.mubr.msk.bf16.mxu1 %vm641_vm0, %v1866_v53 }
  0x79   :  { %909 = vmatmul.mubr.bf16.gmra.mrb[40].mxu0 %v1868_v54  ;;  %1109 = vmatmul.mubr.bf16.gmra.mrb[40].mxu1 %v1869_v55 }
  0x7a   :  { %1612 = vmatprep.mubr.msk.bf16.mxu0 %vm641_vm0, %v1870_v56  ;;  %1637 = vmatprep.mubr.msk.bf16.mxu1 %vm641_vm0, %v1872_v57 }
  0x81   :  { %917 = vmatmul.mubr.bf16.gmra.mrb[44].mxu0 %v1874_v58  ;;  %1117 = vmatmul.mubr.bf16.gmra.mrb[44].mxu1 %v1875_v59 }
  0x82   :  { %1613 = vmatprep.mubr.msk.bf16.mxu0 %vm641_vm0, %v1876_v60  ;;  %1638 = vmatprep.mubr.msk.bf16.mxu1 %vm641_vm0, %v1878_v61 }
  0x89   :  { %925 = vmatmul.mubr.bf16.gmra.mrb[48].mxu0 %v1880_v62  ;;  %1125 = vmatmul.mubr.bf16.gmra.mrb[48].mxu1 %v1881_v63 }
  0x8a   :  { %1614 = vmatprep.mubr.msk.bf16.mxu0 %vm641_vm0, %v1882_v0  ;;  %1639 = vmatprep.mubr.msk.bf16.mxu1 %vm641_vm0, %v1884_v1 }
  0x91   :  { %933 = vmatmul.mubr.bf16.gmra.mrb[52].mxu0 %v1886_v2  ;;  %1133 = vmatmul.mubr.bf16.gmra.mrb[52].mxu1 %v1887_v3 }
  0x92   :  { %1615 = vmatprep.mubr.msk.bf16.mxu0 %vm641_vm0, %v1888_v4  ;;  %1640 = vmatprep.mubr.msk.bf16.mxu1 %vm641_vm0, %v1890_v5 }
  0x99   :  { %941 = vmatmul.mubr.bf16.gmra.mrb[56].mxu0 %v1892_v6  ;;  %1141 = vmatmul.mubr.bf16.gmra.mrb[56].mxu1 %v1893_v7 }
  0x9a   :  { %1616 = vmatprep.mubr.msk.bf16.mxu0 %vm641_vm0, %v1894_v8  ;;  %1641 = vmatprep.mubr.msk.bf16.mxu1 %vm641_vm0, %v1896_v9 }
  0xa1   :  { %949 = vmatmul.mubr.bf16.gmra.mrb[60].mxu0 %v1898_v10  ;;  %1149 = vmatmul.mubr.bf16.gmra.mrb[60].mxu1 %v1899_v11 }
  0xa2   :  { %1617 = vmatprep.mubr.msk.bf16.mxu0 %vm641_vm0, %v1900_v12  ;;  %1642 = vmatprep.mubr.msk.bf16.mxu1 %vm641_vm0, %v1902_v13 }
  0xa9   :  { %957 = vmatmul.mubr.bf16.gmra.mrb[64].mxu0 %v1904_v14  ;;  %1157 = vmatmul.mubr.bf16.gmra.mrb[64].mxu1 %v1905_v15 }
  0xaa   :  { %1618 = vmatprep.mubr.msk.bf16.mxu0 %vm641_vm0, %v1906_v16  ;;  %1643 = vmatprep.mubr.msk.bf16.mxu1 %vm641_vm0, %v1908_v17 }
  0xb1   :  { %965 = vmatmul.mubr.bf16.gmra.mrb[68].mxu0 %v1910_v18  ;;  %1165 = vmatmul.mubr.bf16.gmra.mrb[68].mxu1 %v1911_v19 }
  0xb2   :  { %1619 = vmatprep.mubr.msk.bf16.mxu0 %vm641_vm0, %v1912_v20  ;;  %1644 = vmatprep.mubr.msk.bf16.mxu1 %vm641_vm0, %v1914_v21 }
  0xb9   :  { %973 = vmatmul.mubr.bf16.gmra.mrb[72].mxu0 %v1916_v22  ;;  %1173 = vmatmul.mubr.bf16.gmra.mrb[72].mxu1 %v1917_v23 }
  0xba   :  { %1620 = vmatprep.mubr.msk.bf16.mxu0 %vm641_vm0, %v1918_v24  ;;  %1645 = vmatprep.mubr.msk.bf16.mxu1 %vm641_vm0, %v1920_v25 }
  0xc1   :  { %981 = vmatmul.mubr.bf16.gmra.mrb[76].mxu0 %v1922_v26  ;;  %1181 = vmatmul.mubr.bf16.gmra.mrb[76].mxu1 %v1923_v27 }
  0xc2   :  { %1621 = vmatprep.mubr.msk.bf16.mxu0 %vm641_vm0, %v1924_v28  ;;  %1646 = vmatprep.mubr.msk.bf16.mxu1 %vm641_vm0, %v1926_v29 }
  0xc9   :  { %989 = vmatmul.mubr.bf16.gmra.mrb[80].mxu0 %v1928_v30  ;;  %1189 = vmatmul.mubr.bf16.gmra.mrb[80].mxu1 %v1929_v31 }
  0xca   :  { %1622 = vmatprep.mubr.msk.bf16.mxu0 %vm641_vm0, %v1930_v32  ;;  %1647 = vmatprep.mubr.msk.bf16.mxu1 %vm641_vm0, %v1932_v33 }
  0xd1   :  { %997 = vmatmul.mubr.bf16.gmra.mrb[84].mxu0 %v1934_v34  ;;  %1197 = vmatmul.mubr.bf16.gmra.mrb[84].mxu1 %v1935_v35 }
  0xd2   :  { %1623 = vmatprep.mubr.msk.bf16.mxu0 %vm641_vm0, %v1936_v36  ;;  %1648 = vmatprep.mubr.msk.bf16.mxu1 %vm641_vm0, %v1938_v37 }
  0xd9   :  { %1005 = vmatmul.mubr.bf16.gmra.mrb[88].mxu0 %v1940_v38  ;;  %1205 = vmatmul.mubr.bf16.gmra.mrb[88].mxu1 %v1941_v39 }
  0xda   :  { %1624 = vmatprep.mubr.msk.bf16.mxu0 %vm641_vm0, %v1942_v40  ;;  %1649 = vmatprep.mubr.msk.bf16.mxu1 %vm641_vm0, %v1944_v41 }
  0xe1   :  { %1013 = vmatmul.mubr.bf16.gmra.mrb[92].mxu0 %v1946_v42  ;;  %1213 = vmatmul.mubr.bf16.gmra.mrb[92].mxu1 %v1947_v43 }
  0xe2   :  { %1625 = vmatprep.mubr.msk.bf16.mxu0 %vm641_vm0, %v1948_v44  ;;  %1650 = vmatprep.mubr.msk.bf16.mxu1 %vm641_vm0, %v1950_v45 }
  0xe9   :  { %1021 = vmatmul.mubr.bf16.gmra.mrb[96].mxu0 %v1952_v46  ;;  %1221 = vmatmul.mubr.bf16.gmra.mrb[96].mxu1 %v1953_v47 }
  0xfc   :  { %v2405_v48 = vpop.f32.mrb[0].mxu0  ;;  %v2407_v49 = vpop.f32.mrb[0].mxu1 }
  0xfd   :  { %v832_v50 = vpop.f32.mrb[1].mxu0  ;;  %v1032_v51 = vpop.f32.mrb[1].mxu1 }
  0xfe   :  { %v2409_v52 = vpop.f32.mrb[2].mxu0  ;;  %v2411_v53 = vpop.f32.mrb[2].mxu1 }
  0xff   :  { %v835_v54 = vpop.f32.mrb[3].mxu0  ;;  %v1035_v55 = vpop.f32.mrb[3].mxu1 }
 0x104   :  { %v2413_v56 = vpop.f32.mrb[4].mxu0  ;;  %v2415_v57 = vpop.f32.mrb[4].mxu1 }
 0x105   :  { %v840_v58 = vpop.f32.mrb[5].mxu0  ;;  %v1040_v59 = vpop.f32.mrb[5].mxu1 }
 0x106   :  { %v2417_v60 = vpop.f32.mrb[6].mxu0  ;;  %v2419_v61 = vpop.f32.mrb[6].mxu1 }
 0x107   :  { %v843_v62 = vpop.f32.mrb[7].mxu0  ;;  %v1043_v63 = vpop.f32.mrb[7].mxu1 }
 0x10c   :  { %v2421_v0 = vpop.f32.mrb[8].mxu0  ;;  %v2423_v1 = vpop.f32.mrb[8].mxu1 }
 0x10d   :  { %v848_v2 = vpop.f32.mrb[9].mxu0  ;;  %v1048_v3 = vpop.f32.mrb[9].mxu1 }
 0x10e   :  { %v2425_v4 = vpop.f32.mrb[10].mxu0  ;;  %v2427_v5 = vpop.f32.mrb[10].mxu1 }
 0x10f   :  { %v851_v6 = vpop.f32.mrb[11].mxu0  ;;  %v1051_v7 = vpop.f32.mrb[11].mxu1 }
 0x114   :  { %v2429_v8 = vpop.f32.mrb[12].mxu0  ;;  %v2431_v9 = vpop.f32.mrb[12].mxu1 }
 0x115   :  { %v856_v10 = vpop.f32.mrb[13].mxu0  ;;  %v1056_v11 = vpop.f32.mrb[13].mxu1 }
 0x116   :  { %v2433_v12 = vpop.f32.mrb[14].mxu0  ;;  %v2435_v13 = vpop.f32.mrb[14].mxu1 }
 0x117   :  { %v859_v14 = vpop.f32.mrb[15].mxu0  ;;  %v1059_v15 = vpop.f32.mrb[15].mxu1 }
 0x11c   :  { %v2437_v16 = vpop.f32.mrb[16].mxu0  ;;  %v2439_v17 = vpop.f32.mrb[16].mxu1 }
 0x11d   :  { %v864_v18 = vpop.f32.mrb[17].mxu0  ;;  %v1064_v19 = vpop.f32.mrb[17].mxu1 }
 0x11e   :  { %v2441_v20 = vpop.f32.mrb[18].mxu0  ;;  %v2443_v21 = vpop.f32.mrb[18].mxu1 }
 0x11f   :  { %v867_v22 = vpop.f32.mrb[19].mxu0  ;;  %v1067_v23 = vpop.f32.mrb[19].mxu1 }
 0x124   :  { %v2445_v24 = vpop.f32.mrb[20].mxu0  ;;  %v2447_v25 = vpop.f32.mrb[20].mxu1 }
 0x125   :  { %v872_v26 = vpop.f32.mrb[21].mxu0  ;;  %v1072_v27 = vpop.f32.mrb[21].mxu1 }
 0x126   :  { %v2449_v28 = vpop.f32.mrb[22].mxu0  ;;  %v2451_v29 = vpop.f32.mrb[22].mxu1 }
 0x127   :  { %v875_v30 = vpop.f32.mrb[23].mxu0  ;;  %v1075_v31 = vpop.f32.mrb[23].mxu1 }
 0x12c   :  { %v2453_v32 = vpop.f32.mrb[24].mxu0  ;;  %v2455_v33 = vpop.f32.mrb[24].mxu1 }
 0x12d   :  { %v880_v34 = vpop.f32.mrb[25].mxu0  ;;  %v1080_v35 = vpop.f32.mrb[25].mxu1 }
 0x12e   :  { %v2457_v36 = vpop.f32.mrb[26].mxu0  ;;  %v2459_v37 = vpop.f32.mrb[26].mxu1 }
 0x12f   :  { %v883_v38 = vpop.f32.mrb[27].mxu0  ;;  %v1083_v39 = vpop.f32.mrb[27].mxu1 }
 0x134   :  { %v2461_v40 = vpop.f32.mrb[28].mxu0  ;;  %v2463_v41 = vpop.f32.mrb[28].mxu1 }
 0x135   :  { %v888_v42 = vpop.f32.mrb[29].mxu0  ;;  %v1088_v43 = vpop.f32.mrb[29].mxu1 }
 0x136   :  { %v2465_v44 = vpop.f32.mrb[30].mxu0  ;;  %v2467_v45 = vpop.f32.mrb[30].mxu1 }
 0x137   :  { %v891_v46 = vpop.f32.mrb[31].mxu0  ;;  %v1091_v47 = vpop.f32.mrb[31].mxu1 }
 0x13c   :  { %v2469_v50 = vpop.f32.mrb[32].mxu0  ;;  %v2471_v51 = vpop.f32.mrb[32].mxu1 }
 0x13d   :  { %v896_v54 = vpop.f32.mrb[33].mxu0  ;;  %v1096_v55 = vpop.f32.mrb[33].mxu1 }
 0x13e   :  { %v2473_v58 = vpop.f32.mrb[34].mxu0  ;;  %v2475_v59 = vpop.f32.mrb[34].mxu1 }
 0x13f   :  { %v899_v62 = vpop.f32.mrb[35].mxu0  ;;  %v1099_v63 = vpop.f32.mrb[35].mxu1 }
 0x144   :  { %v2477_v2 = vpop.f32.mrb[36].mxu0  ;;  %v2479_v3 = vpop.f32.mrb[36].mxu1 }
 0x145   :  { %v904_v6 = vpop.f32.mrb[37].mxu0  ;;  %v1104_v7 = vpop.f32.mrb[37].mxu1 }
 0x146   :  { %v2481_v10 = vpop.f32.mrb[38].mxu0  ;;  %v2483_v11 = vpop.f32.mrb[38].mxu1 }
 0x147   :  { %v907_v14 = vpop.f32.mrb[39].mxu0  ;;  %v1107_v15 = vpop.f32.mrb[39].mxu1 }
 0x14c   :  { %v2485_v18 = vpop.f32.mrb[40].mxu0  ;;  %v2487_v19 = vpop.f32.mrb[40].mxu1 }
 0x14d   :  { %v912_v22 = vpop.f32.mrb[41].mxu0  ;;  %v1112_v23 = vpop.f32.mrb[41].mxu1 }
 0x14e   :  { %v2489_v26 = vpop.f32.mrb[42].mxu0  ;;  %v2491_v27 = vpop.f32.mrb[42].mxu1 }
 0x14f   :  { %v915_v30 = vpop.f32.mrb[43].mxu0  ;;  %v1115_v31 = vpop.f32.mrb[43].mxu1 }
 0x150   :  { %v2510_v31 = vld [vmem:[%s2626_s2] ss:$0 sm:$0xff] }
 0x154   :  { %v2493_v34 = vpop.f32.mrb[44].mxu0  ;;  %v2495_v35 = vpop.f32.mrb[44].mxu1 }
 0x155   :  { %v920_v38 = vpop.f32.mrb[45].mxu0  ;;  %v1120_v39 = vpop.f32.mrb[45].mxu1 }
 0x156   :  { %v2497_v42 = vpop.f32.mrb[46].mxu0  ;;  %v2499_v43 = vpop.f32.mrb[46].mxu1 }
 0x157   :  { %v923_v46 = vpop.f32.mrb[47].mxu0  ;;  %v1123_v47 = vpop.f32.mrb[47].mxu1 }
 0x15c   :  { %v2501_v54 = vpop.f32.mrb[48].mxu0  ;;  %v2503_v55 = vpop.f32.mrb[48].mxu1 }
 0x15d   :  { %2628 = vst [vmem:[#allocation2_spill] sm:$0xff] %v2501_v54  ;;  %2629 = vst [vmem:[#allocation3_spill] sm:$0xff] %v2503_v55  ;;  %v928_v62 = vpop.f32.mrb[49].mxu0  ;;  %v1128_v63 = vpop.f32.mrb[49].mxu1 }
 0x15e   :  { %v929_v6 = vpop.f32.mrb[50].mxu0  ;;  %v1129_v7 = vpop.f32.mrb[50].mxu1 }
 0x15f   :  { %v1229_v14 = vmax.f32 %v2405_v48, %v929_v6  ;;  %v1254_v15 = vmax.f32 %v2407_v49, %v1129_v7  ;;  %v931_v22 = vpop.f32.mrb[51].mxu0  ;;  %v1131_v23 = vpop.f32.mrb[51].mxu1 }
 0x161   :  { %v1279_v30 = vmax.f32 %v1229_v14, %v1254_v15 }
 0x163   :  { %v1311_v48 = vadd.f32 %v2510_v31, %v1279_v30 }
 0x164   :  { %v934_v38 = vpop.f32.mrb[52].mxu0  ;;  %v1134_v39 = vpop.f32.mrb[52].mxu1 }
 0x165   :  { %v1230_v46 = vmax.f32 %v2409_v52, %v934_v38  ;;  %v1255_v47 = vmax.f32 %v2411_v53, %v1134_v39  ;;  %v936_v62 = vpop.f32.mrb[53].mxu0  ;;  %v1136_v63 = vpop.f32.mrb[53].mxu1  ;;  %1954 = vtanh.f32 %v1311_v48 }
 0x166   :  { %v937_v6 = vpop.f32.mrb[54].mxu0  ;;  %v1137_v49 = vpop.f32.mrb[54].mxu1 }
 0x167   :  { %v1280_v7 = vmax.f32 %v1230_v46, %v1255_v47  ;;  %v1231_v14 = vmax.f32 %v2413_v56, %v937_v6  ;;  %v1256_v15 = vmax.f32 %v2415_v57, %v1137_v49  ;;  %v939_v22 = vpop.f32.mrb[55].mxu0  ;;  %v1139_v23 = vpop.f32.mrb[55].mxu1 }
 0x169   :  { %v1312_v55 = vadd.f32 %v2510_v31, %v1280_v7  ;;  %v1281_v54 = vmax.f32 %v1231_v14, %v1256_v15 }
 0x16b   :  { %1956 = vtanh.f32 %v1312_v55  ;;  %v1313_v46 = vadd.f32 %v2510_v31, %v1281_v54 }
 0x16c   :  { %v942_v52 = vpop.f32.mrb[56].mxu0  ;;  %v1142_v53 = vpop.f32.mrb[56].mxu1 }
 0x16d   :  { %v1232_v38 = vmax.f32 %v2417_v60, %v942_v52  ;;  %v1257_v30 = vmax.f32 %v2419_v61, %v1142_v53  ;;  %v944_v39 = vpop.f32.mrb[57].mxu0  ;;  %v1144_v62 = vpop.f32.mrb[57].mxu1  ;;  %1958 = vtanh.f32 %v1313_v46 }
 0x16e   :  { %v945_v56 = vpop.f32.mrb[58].mxu0  ;;  %v1145_v47 = vpop.f32.mrb[58].mxu1 }
 0x16f   :  { %v1282_v57 = vmax.f32 %v1232_v38, %v1257_v30  ;;  %v1233_v63 = vmax.f32 %v2421_v0, %v945_v56  ;;  %v1258_v6 = vmax.f32 %v2423_v1, %v1145_v47  ;;  %v947_v49 = vpop.f32.mrb[59].mxu0  ;;  %v1147_v48 = vpop.f32.mrb[59].mxu1 }
 0x170   :  { %v1955_v60 = vpop.eup %1954 }
 0x171   :  { %v1314_v55 = vadd.f32 %v2510_v31, %v1282_v57  ;;  %v1283_v7 = vmax.f32 %v1233_v63, %v1258_v6 }
 0x173   :  { %1960 = vtanh.f32 %v1314_v55  ;;  %v1315_v1 = vadd.f32 %v2510_v31, %v1283_v7 }
 0x174   :  { %v950_v61 = vpop.f32.mrb[60].mxu0  ;;  %v1150_v14 = vpop.f32.mrb[60].mxu1 }
 0x175   :  { %v1957_v15 = vpop.eup %1956  ;;  %v1234_v54 = vmax.f32 %v2425_v4, %v950_v61  ;;  %v1259_v22 = vmax.f32 %v2427_v5, %v1150_v14  ;;  %v952_v23 = vpop.f32.mrb[61].mxu0  ;;  %1962 = vtanh.f32 %v1315_v1 }
 0x176   :  { %v1152_v52 = vpop.f32.mrb[61].mxu1  ;;  %v1705_v0 = vpack.c.bf16 %v1957_v15, %v1955_v60  ;;  %v953_v53 = vpop.f32.mrb[62].mxu0 }
 0x177   :  { %v1153_v38 = vpop.f32.mrb[62].mxu1  ;;  %v1284_v30 = vmax.f32 %v1234_v54, %v1259_v22  ;;  %v1235_v39 = vmax.f32 %v2429_v8, %v953_v53  ;;  %v955_v46 = vpop.f32.mrb[63].mxu0 }
 0x178   :  { %v1260_v62 = vmax.f32 %v2431_v9, %v1153_v38  ;;  %v1155_v56 = vpop.f32.mrb[63].mxu1  ;;  %1706 = vst [vmem:[%s2627_s3] sm:$0xff] %v1705_v0   ;;  %v1959_v47 = vpop.eup %1958 }
 0x179   :  { %v1316_v4 = vadd.f32 %v2510_v31, %v1284_v30 }
 0x17a   :  { %v1285_v5 = vmax.f32 %v1235_v39, %v1260_v62 }
 0x17b   :  { %1964 = vtanh.f32 %v1316_v4 }
 0x17c   :  { %v958_v57 = vpop.f32.mrb[64].mxu0  ;;  %v1158_v63 = vpop.f32.mrb[64].mxu1  ;;  %v1317_v7 = vadd.f32 %v2510_v31, %v1285_v5 }
 0x17d   :  { %v1961_v6 = vpop.eup %1960  ;;  %v1236_v49 = vmax.f32 %v2433_v12, %v958_v57  ;;  %v1261_v8 = vmax.f32 %v2435_v13, %v1158_v63  ;;  %v960_v9 = vpop.f32.mrb[65].mxu0 }
 0x17e   :  { %v1160_v48 = vpop.f32.mrb[65].mxu1  ;;  %v1710_v55 = vpack.c.bf16 %v1961_v6, %v1959_v47  ;;  %v961_v60 = vpop.f32.mrb[66].mxu0  ;;  %1966 = vtanh.f32 %v1317_v7 }
 0x17f   :  { %v1161_v61 = vpop.f32.mrb[66].mxu1  ;;  %v1286_v14 = vmax.f32 %v1236_v49, %v1261_v8  ;;  %v1237_v15 = vmax.f32 %v2437_v16, %v961_v60  ;;  %v963_v22 = vpop.f32.mrb[67].mxu0 }
 0x180   :  { %v1262_v54 = vmax.f32 %v2439_v17, %v1161_v61  ;;  %v1163_v23 = vpop.f32.mrb[67].mxu1  ;;  %1762 = vst [vmem:[%s2627_s3 + $0x8] sm:$0xff] %v1710_v55   ;;  %v1963_v52 = vpop.eup %1962 }
 0x181   :  { %v1318_v12 = vadd.f32 %v2510_v31, %v1286_v14 }
 0x182   :  { %v1287_v13 = vmax.f32 %v1237_v15, %v1262_v54 }
 0x183   :  { %1968 = vtanh.f32 %v1318_v12 }
 0x184   :  { %v966_v0 = vpop.f32.mrb[68].mxu0  ;;  %v1166_v1 = vpop.f32.mrb[68].mxu1  ;;  %v1319_v62 = vadd.f32 %v2510_v31, %v1287_v13 }
 0x185   :  { %v1965_v53 = vpop.eup %1964  ;;  %v1238_v38 = vmax.f32 %v2441_v20, %v966_v0  ;;  %v1263_v16 = vmax.f32 %v2443_v21, %v1166_v1  ;;  %v968_v17 = vpop.f32.mrb[69].mxu0 }
 0x186   :  { %v1168_v30 = vpop.f32.mrb[69].mxu1  ;;  %v1715_v39 = vpack.c.bf16 %v1965_v53, %v1963_v52  ;;  %v969_v46 = vpop.f32.mrb[70].mxu0  ;;  %1970 = vtanh.f32 %v1319_v62 }
 0x187   :  { %v1169_v56 = vpop.f32.mrb[70].mxu1  ;;  %v1288_v4 = vmax.f32 %v1238_v38, %v1263_v16  ;;  %v1239_v5 = vmax.f32 %v2445_v24, %v969_v46  ;;  %v971_v57 = vpop.f32.mrb[71].mxu0 }
 0x188   :  { %v1264_v47 = vmax.f32 %v2447_v25, %v1169_v56  ;;  %v1171_v63 = vpop.f32.mrb[71].mxu1  ;;  %1763 = vst [vmem:[%s2627_s3 + $0x10] sm:$0xff] %v1715_v39   ;;  %v1967_v6 = vpop.eup %1966 }
 0x189   :  { %v1320_v20 = vadd.f32 %v2510_v31, %v1288_v4 }
 0x18a   :  { %v1289_v21 = vmax.f32 %v1239_v5, %v1264_v47 }
 0x18b   :  { %1972 = vtanh.f32 %v1320_v20 }
 0x18c   :  { %v974_v49 = vpop.f32.mrb[72].mxu0  ;;  %v1174_v8 = vpop.f32.mrb[72].mxu1  ;;  %v1321_v60 = vadd.f32 %v2510_v31, %v1289_v21 }
 0x18d   :  { %v1969_v9 = vpop.eup %1968  ;;  %v1240_v48 = vmax.f32 %v2449_v28, %v974_v49  ;;  %v1265_v24 = vmax.f32 %v2451_v29, %v1174_v8  ;;  %v976_v25 = vpop.f32.mrb[73].mxu0 }
 0x18e   :  { %v1176_v55 = vpop.f32.mrb[73].mxu1  ;;  %v1720_v7 = vpack.c.bf16 %v1969_v9, %v1967_v6  ;;  %v977_v61 = vpop.f32.mrb[74].mxu0  ;;  %1974 = vtanh.f32 %v1321_v60 }
 0x18f   :  { %v1177_v14 = vpop.f32.mrb[74].mxu1  ;;  %v1290_v15 = vmax.f32 %v1240_v48, %v1265_v24  ;;  %v1241_v54 = vmax.f32 %v2453_v32, %v977_v61  ;;  %v979_v23 = vpop.f32.mrb[75].mxu0 }
 0x190   :  { %v1266_v22 = vmax.f32 %v2455_v33, %v1177_v14  ;;  %v1179_v12 = vpop.f32.mrb[75].mxu1  ;;  %1764 = vst [vmem:[%s2627_s3 + $0x18] sm:$0xff] %v1720_v7   ;;  %v1971_v13 = vpop.eup %1970 }
 0x191   :  { %v1322_v28 = vadd.f32 %v2510_v31, %v1290_v15 }
 0x192   :  { %v1291_v29 = vmax.f32 %v1241_v54, %v1266_v22 }
 0x193   :  { %1976 = vtanh.f32 %v1322_v28 }
 0x194   :  { %v982_v52 = vpop.f32.mrb[76].mxu0  ;;  %v1182_v0 = vpop.f32.mrb[76].mxu1  ;;  %v1323_v17 = vadd.f32 %v2510_v31, %v1291_v29 }
 0x195   :  { %v1973_v1 = vpop.eup %1972  ;;  %v1242_v53 = vmax.f32 %v2457_v36, %v982_v52  ;;  %v1267_v32 = vmax.f32 %v2459_v37, %v1182_v0  ;;  %v984_v33 = vpop.f32.mrb[77].mxu0 }
 0x196   :  { %v1184_v38 = vpop.f32.mrb[77].mxu1  ;;  %v1725_v16 = vpack.c.bf16 %v1973_v1, %v1971_v13  ;;  %v985_v30 = vpop.f32.mrb[78].mxu0  ;;  %1978 = vtanh.f32 %v1323_v17 }
 0x197   :  { %v1185_v39 = vpop.f32.mrb[78].mxu1  ;;  %v1292_v62 = vmax.f32 %v1242_v53, %v1267_v32  ;;  %v1243_v46 = vmax.f32 %v2461_v40, %v985_v30  ;;  %v987_v4 = vpop.f32.mrb[79].mxu0 }
 0x198   :  { %v1268_v56 = vmax.f32 %v2463_v41, %v1185_v39  ;;  %v1187_v5 = vpop.f32.mrb[79].mxu1  ;;  %1765 = vst [vmem:[%s2627_s3 + $0x20] sm:$0xff] %v1725_v16   ;;  %v1975_v47 = vpop.eup %1974 }
 0x199   :  { %v1324_v36 = vadd.f32 %v2510_v31, %v1292_v62 }
 0x19a   :  { %v1293_v37 = vmax.f32 %v1243_v46, %v1268_v56 }
 0x19b   :  { %1980 = vtanh.f32 %v1324_v36 }
 0x19c   :  { %v990_v57 = vpop.f32.mrb[80].mxu0  ;;  %v1190_v63 = vpop.f32.mrb[80].mxu1  ;;  %v1325_v8 = vadd.f32 %v2510_v31, %v1293_v37 }
 0x19d   :  { %v1977_v20 = vpop.eup %1976  ;;  %v1244_v21 = vmax.f32 %v2465_v44, %v990_v57  ;;  %v1269_v40 = vmax.f32 %v2467_v45, %v1190_v63  ;;  %v992_v41 = vpop.f32.mrb[81].mxu0 }
 0x19e   :  { %v1192_v6 = vpop.f32.mrb[81].mxu1  ;;  %v1730_v49 = vpack.c.bf16 %v1977_v20, %v1975_v47  ;;  %v993_v9 = vpop.f32.mrb[82].mxu0  ;;  %1982 = vtanh.f32 %v1325_v8 }
 0x19f   :  { %v1193_v48 = vpop.f32.mrb[82].mxu1  ;;  %v1294_v24 = vmax.f32 %v1244_v21, %v1269_v40  ;;  %v1245_v25 = vmax.f32 %v2469_v50, %v993_v9  ;;  %v995_v7 = vpop.f32.mrb[83].mxu0 }
 0x1a0   :  { %v1270_v55 = vmax.f32 %v2471_v51, %v1193_v48  ;;  %v1195_v60 = vpop.f32.mrb[83].mxu1  ;;  %1766 = vst [vmem:[%s2627_s3 + $0x28] sm:$0xff] %v1730_v49   ;;  %v1979_v61 = vpop.eup %1978 }
 0x1a1   :  { %v1326_v44 = vadd.f32 %v2510_v31, %v1294_v24 }
 0x1a2   :  { %v1295_v45 = vmax.f32 %v1245_v25, %v1270_v55 }
 0x1a3   :  { %1984 = vtanh.f32 %v1326_v44 }
 0x1a4   :  { %v998_v14 = vpop.f32.mrb[84].mxu0  ;;  %v1198_v15 = vpop.f32.mrb[84].mxu1  ;;  %v1327_v28 = vadd.f32 %v2510_v31, %v1295_v45 }
 0x1a5   :  { %v1981_v54 = vpop.eup %1980  ;;  %v1246_v22 = vmax.f32 %v2473_v58, %v998_v14  ;;  %v1271_v50 = vmax.f32 %v2475_v59, %v1198_v15  ;;  %v1000_v51 = vpop.f32.mrb[85].mxu0 }
 0x1a6   :  { %v1200_v23 = vpop.f32.mrb[85].mxu1  ;;  %v1735_v12 = vpack.c.bf16 %v1981_v54, %v1979_v61  ;;  %v1001_v29 = vpop.f32.mrb[86].mxu0  ;;  %1986 = vtanh.f32 %v1327_v28  ;;  %v2630_v28 = vld [vmem:[#allocation2_spill] sm:$0xff] }
 0x1a7   :  { %v1201_v13 = vpop.f32.mrb[86].mxu1  ;;  %v1296_v52 = vmax.f32 %v1246_v22, %v1271_v50  ;;  %v1247_v0 = vmax.f32 %v2477_v2, %v1001_v29  ;;  %v1003_v53 = vpop.f32.mrb[87].mxu0 }
 0x1a8   :  { %v1272_v1 = vmax.f32 %v2479_v3, %v1201_v13  ;;  %v1203_v32 = vpop.f32.mrb[87].mxu1  ;;  %1767 = vst [vmem:[%s2627_s3 + $0x30] sm:$0xff] %v1735_v12   ;;  %v1983_v33 = vpop.eup %1982  ;;  %v2631_v13 = vld [vmem:[#allocation3_spill] sm:$0xff] }
 0x1a9   :  { %v1328_v58 = vadd.f32 %v2510_v31, %v1296_v52 }
 0x1aa   :  { %v1297_v59 = vmax.f32 %v1247_v0, %v1272_v1 }
 0x1ab   :  { %1988 = vtanh.f32 %v1328_v58 }
 0x1ac   :  { %v1006_v38 = vpop.f32.mrb[88].mxu0  ;;  %v1206_v16 = vpop.f32.mrb[88].mxu1  ;;  %v1329_v46 = vadd.f32 %v2510_v31, %v1297_v59 }
 0x1ad   :  { %v1985_v17 = vpop.eup %1984  ;;  %v1248_v30 = vmax.f32 %v2481_v10, %v1006_v38  ;;  %v1273_v2 = vmax.f32 %v2483_v11, %v1206_v16  ;;  %v1008_v3 = vpop.f32.mrb[89].mxu0 }
 0x1ae   :  { %v1208_v39 = vpop.f32.mrb[89].mxu1  ;;  %v1740_v62 = vpack.c.bf16 %v1985_v17, %v1983_v33  ;;  %v1009_v56 = vpop.f32.mrb[90].mxu0  ;;  %1990 = vtanh.f32 %v1329_v46 }
 0x1af   :  { %v1209_v4 = vpop.f32.mrb[90].mxu1  ;;  %v1298_v5 = vmax.f32 %v1248_v30, %v1273_v2  ;;  %v1249_v36 = vmax.f32 %v2485_v18, %v1009_v56  ;;  %v1011_v47 = vpop.f32.mrb[91].mxu0 }
 0x1b0   :  { %v1274_v37 = vmax.f32 %v2487_v19, %v1209_v4  ;;  %v1211_v57 = vpop.f32.mrb[91].mxu1  ;;  %1768 = vst [vmem:[%s2627_s3 + $0x38] sm:$0xff] %v1740_v62   ;;  %v1987_v63 = vpop.eup %1986 }
 0x1b1   :  { %v1330_v10 = vadd.f32 %v2510_v31, %v1298_v5 }
 0x1b2   :  { %v1299_v11 = vmax.f32 %v1249_v36, %v1274_v37 }
 0x1b3   :  { %1992 = vtanh.f32 %v1330_v10 }
 0x1b4   :  { %v1014_v20 = vpop.f32.mrb[92].mxu0  ;;  %v1214_v21 = vpop.f32.mrb[92].mxu1  ;;  %v1331_v8 = vadd.f32 %v2510_v31, %v1299_v11 }
 0x1b5   :  { %v1989_v40 = vpop.eup %1988  ;;  %v1250_v41 = vmax.f32 %v2489_v26, %v1014_v20  ;;  %v1275_v18 = vmax.f32 %v2491_v27, %v1214_v21  ;;  %v1016_v19 = vpop.f32.mrb[93].mxu0 }
 0x1b6   :  { %v1216_v6 = vpop.f32.mrb[93].mxu1  ;;  %v1745_v49 = vpack.c.bf16 %v1989_v40, %v1987_v63  ;;  %v1017_v9 = vpop.f32.mrb[94].mxu0  ;;  %1994 = vtanh.f32 %v1331_v8 }
 0x1b7   :  { %v1217_v48 = vpop.f32.mrb[94].mxu1  ;;  %v1300_v24 = vmax.f32 %v1250_v41, %v1275_v18  ;;  %v1251_v25 = vmax.f32 %v2493_v34, %v1017_v9  ;;  %v1019_v7 = vpop.f32.mrb[95].mxu0 }
 0x1b8   :  { %v1276_v55 = vmax.f32 %v2495_v35, %v1217_v48  ;;  %v1219_v60 = vpop.f32.mrb[95].mxu1  ;;  %1769 = vst [vmem:[%s2627_s3 + $0x40] sm:$0xff] %v1745_v49   ;;  %v1991_v44 = vpop.eup %1990 }
 0x1b9   :  { %v1332_v26 = vadd.f32 %v2510_v31, %v1300_v24 }
 0x1ba   :  { %v1301_v27 = vmax.f32 %v1251_v25, %v1276_v55 }
 0x1bb   :  { %1996 = vtanh.f32 %v1332_v26 }
 0x1bc   :  { %v1022_v45 = vpop.f32.mrb[96].mxu0  ;;  %v1222_v61 = vpop.f32.mrb[96].mxu1  ;;  %v1333_v50 = vadd.f32 %v2510_v31, %v1301_v27 }
 0x1bd   :  { %v1993_v14 = vpop.eup %1992  ;;  %v1252_v15 = vmax.f32 %v2497_v42, %v1022_v45  ;;  %v1277_v34 = vmax.f32 %v2499_v43, %v1222_v61  ;;  %v1024_v35 = vpop.f32.mrb[97].mxu0 }
 0x1be   :  { %v1224_v54 = vpop.f32.mrb[97].mxu1  ;;  %v1750_v22 = vpack.c.bf16 %v1993_v14, %v1991_v44  ;;  %v1025_v51 = vpop.f32.mrb[98].mxu0  ;;  %1998 = vtanh.f32 %v1333_v50 }
 0x1bf   :  { %v1225_v23 = vpop.f32.mrb[98].mxu1  ;;  %v1302_v12 = vmax.f32 %v1252_v15, %v1277_v34  ;;  %v1253_v29 = vmax.f32 %v2630_v28, %v1025_v51  ;;  %v1027_v0 = vpop.f32.mrb[99].mxu0 }
 0x1c0   :  { %v1278_v52 = vmax.f32 %v2631_v13, %v1225_v23  ;;  %v1227_v1 = vpop.f32.mrb[99].mxu1  ;;  %1770 = vst [vmem:[%s2627_s3 + $0x48] sm:$0xff] %v1750_v22   ;;  %v1995_v32 = vpop.eup %1994 }
 0x1c1   :  { %v1334_v42 = vadd.f32 %v2510_v31, %v1302_v12 }
 0x1c2   :  { %v1303_v43 = vmax.f32 %v1253_v29, %v1278_v52 }
 0x1c3   :  { %2000 = vtanh.f32 %v1334_v42 }
 0x1c4   :  { %v1335_v53 = vadd.f32 %v2510_v31, %v1303_v43 }
 0x1c5   :  { %v1997_v58 = vpop.eup %1996 }
 0x1c6   :  { %2002 = vtanh.f32 %v1335_v53  ;;  %v1755_v59 = vpack.c.bf16 %v1997_v58, %v1995_v32 }
 0x1c8   :  { %1771 = vst [vmem:[%s2627_s3 + $0x50] sm:$0xff] %v1755_v59   ;;  %v1999_v33 = vpop.eup %1998 }
 0x1cd   :  { %v2001_v38 = vpop.eup %2000 }
 0x1ce   :  { %v1760_v16 = vpack.c.bf16 %v2001_v38, %v1999_v33 }
 0x1d0   :  { %v2003_v17 = vpop.eup %2002  ;;  %1772 = vst [vmem:[%s2627_s3 + $0x58] sm:$0xff] %v1760_v16  }
 0x1d1   :  { %v1701_v30 = vpack.c.bf16 %v2003_v17, %v2003_v17 }
 0x1d3   :  { %1486 = vst [vmem:[%s2627_s3 + $0x60] sm:$0xf] %v1701_v30 }

// kernel: lenet5_forward.5
= control target key start
LH: loop header
LB: loop body
LE: loop exit
PB: predicated region body
PF: predicated region fallthrough
CT: control target
= control target key end

     0   :  { %14 = vsyncpa [#allocation3], 0  ;;  %v929_v39 = vmov 0.0   ;;  %s1179_s0 = inlined_call_operand.vmem [shape: bf16[8,512], index: 0, kind: input, shape index: {}]   ;;  %s1180_s1 = inlined_call_operand.vmem [shape: bf16[512,128], index: 1, kind: input, shape index: {}]   ;;  %s1181_s2 = inlined_call_operand.vmem [shape: f32[1,128], index: 2, kind: input, shape index: {}]   ;;  %s1182_s3 = inlined_call_operand.vmem [shape: bf16[128,128], index: 3, kind: input, shape index: {}]   ;;  %s1183_s4 = inlined_call_operand.vmem [shape: f32[1,128], index: 4, kind: input, shape index: {}]   ;;  %s1184_s5 = inlined_call_operand.vmem [shape: bf16[128,128], index: 5, kind: input, shape index: {}]   ;;  %s1185_s6 = inlined_call_operand.vmem [shape: f32[1,128], index: 6, kind: input, shape index: {}]   ;;  %s1186_s7 = inlined_call_operand.hbm [shape: f32[8,128], index: 7, kind: output, shape index: {0}]   ;;  %s1187_s8 = inlined_call_operand.hbm [shape: f32[8,128], index: 8, kind: output, shape index: {1}]  }
   0x1   :  { %v821_v0 = vld [vmem:[%s1180_s1 + $0x40] sm:$0xff]   ;;  %v825_v4 = vld [vmem:[%s1180_s1 + $0x48] sm:$0xff]   ;;  %v829_v8 = vld [vmem:[%s1180_s1 + $0x50] sm:$0xff]  }
   0x2   :  { %v822_v1 = vld [vmem:[%s1180_s1 + $0xc0] sm:$0xff]   ;;  %715 = vmatprep.subr.bf16.mxu0 %v821_v0  ;;  %v826_v5 = vld [vmem:[%s1180_s1 + $0xc8] sm:$0xff]   ;;  %v830_v9 = vld [vmem:[%s1180_s1 + $0xd0] sm:$0xff]  }
   0x3   :  { %v823_v2 = vld [vmem:[%s1180_s1] sm:$0xff]   ;;  %737 = vmatprep.subr.bf16.mxu1 %v822_v1  ;;  %v827_v6 = vld [vmem:[%s1180_s1 + $0x8] sm:$0xff]   ;;  %v831_v10 = vld [vmem:[%s1180_s1 + $0x10] sm:$0xff]  }
   0x4   :  { %v824_v3 = vld [vmem:[%s1180_s1 + $0x80] sm:$0xff]   ;;  %716 = vmatpush3.bf16.msra.mxu0 %v823_v2  ;;  %v828_v7 = vld [vmem:[%s1180_s1 + $0x88] sm:$0xff]   ;;  %v832_v11 = vld [vmem:[%s1180_s1 + $0x90] sm:$0xff]  }
   0x5   :  { %738 = vmatpush3.bf16.msra.mxu1 %v824_v3  ;;  %717 = vmatprep.subr.bf16.mxu0 %v825_v4  ;;  %v833_v12 = vld [vmem:[%s1180_s1 + $0x58] sm:$0xff]   ;;  %v837_v16 = vld [vmem:[%s1180_s1 + $0x60] sm:$0xff]   ;;  %v841_v20 = vld [vmem:[%s1180_s1 + $0x68] sm:$0xff]  }
   0x6   :  { %739 = vmatprep.subr.bf16.mxu1 %v826_v5  ;;  %v834_v13 = vld [vmem:[%s1180_s1 + $0xd8] sm:$0xff]   ;;  %v838_v17 = vld [vmem:[%s1180_s1 + $0xe0] sm:$0xff]   ;;  %v842_v21 = vld [vmem:[%s1180_s1 + $0xe8] sm:$0xff]  }
   0x7   :  { %v835_v14 = vld [vmem:[%s1180_s1 + $0x18] sm:$0xff]   ;;  %v839_v18 = vld [vmem:[%s1180_s1 + $0x20] sm:$0xff]   ;;  %v843_v22 = vld [vmem:[%s1180_s1 + $0x28] sm:$0xff]  }
   0x8   :  { %718 = vmatpush3.bf16.msra.mxu0 %v827_v6  ;;  %v836_v15 = vld [vmem:[%s1180_s1 + $0x98] sm:$0xff]   ;;  %v840_v19 = vld [vmem:[%s1180_s1 + $0xa0] sm:$0xff]   ;;  %v844_v23 = vld [vmem:[%s1180_s1 + $0xa8] sm:$0xff]  }
   0x9   :  { %740 = vmatpush3.bf16.msra.mxu1 %v828_v7  ;;  %719 = vmatprep.subr.bf16.mxu0 %v829_v8  ;;  %v845_v24 = vld [vmem:[%s1180_s1 + $0x70] sm:$0xff]   ;;  %v849_v28 = vld [vmem:[%s1180_s1 + $0x78] sm:$0xff]   ;;  %v31_v32 = vld [vmem:[%s1179_s0] sm:$0xff] }
   0xa   :  { %741 = vmatprep.subr.bf16.mxu1 %v830_v9  ;;  %v846_v25 = vld [vmem:[%s1180_s1 + $0xf0] sm:$0xff]   ;;  %v850_v29 = vld [vmem:[%s1180_s1 + $0xf8] sm:$0xff]   ;;  %v32_v33 = vld [vmem:[%s1179_s0 + $0x8] sm:$0xff]  ;;  %v661_v34 = vcombine.low %v31_v32, %v31_v32  ;;  %v662_v35 = vcombine.high %v31_v32, %v31_v32 }
   0xb   :  { %v847_v26 = vld [vmem:[%s1180_s1 + $0x30] sm:$0xff]   ;;  %v851_v30 = vld [vmem:[%s1180_s1 + $0x38] sm:$0xff]   ;;  %v663_v36 = vcombine.low %v32_v33, %v32_v33  ;;  %v664_v37 = vcombine.high %v32_v33, %v32_v33  ;;  %v857_v38 = vld [vmem:[%s1182_s3] sm:$0xff]  }
   0xc   :  { %720 = vmatpush3.bf16.msra.mxu0 %v831_v10  ;;  %v848_v27 = vld [vmem:[%s1180_s1 + $0xb0] sm:$0xff]   ;;  %v852_v31 = vld [vmem:[%s1180_s1 + $0xb8] sm:$0xff]   ;;  %342 = vmatprep.mubr.bf16.mxu0 %v662_v35  ;;  %v858_v40 = vld [vmem:[%s1182_s3 + $0x8] sm:$0xff]  }
   0xd   :  { %742 = vmatpush3.bf16.msra.mxu1 %v832_v11  ;;  %721 = vmatprep.subr.bf16.mxu0 %v833_v12  ;;  %v859_v41 = vld [vmem:[%s1182_s3 + $0x10] sm:$0xff]  }
   0xe   :  { %743 = vmatprep.subr.bf16.mxu1 %v834_v13  ;;  %382 = vmatprep.mubr.bf16.mxu1 %v664_v37 }
  0x10   :  { %722 = vmatpush3.bf16.msra.mxu0 %v835_v14 }
  0x11   :  { %744 = vmatpush3.bf16.msra.mxu1 %v836_v15  ;;  %723 = vmatprep.subr.bf16.mxu0 %v837_v16 }
  0x12   :  { %745 = vmatprep.subr.bf16.mxu1 %v838_v17 }
  0x14   :  { %724 = vmatpush3.bf16.msra.mxu0 %v839_v18 }
  0x15   :  { %746 = vmatpush3.bf16.msra.mxu1 %v840_v19  ;;  %725 = vmatprep.subr.bf16.mxu0 %v841_v20 }
  0x16   :  { %747 = vmatprep.subr.bf16.mxu1 %v842_v21 }
  0x18   :  { %726 = vmatpush3.bf16.msra.mxu0 %v843_v22 }
  0x19   :  { %748 = vmatpush3.bf16.msra.mxu1 %v844_v23  ;;  %727 = vmatprep.subr.bf16.mxu0 %v845_v24 }
  0x1a   :  { %749 = vmatprep.subr.bf16.mxu1 %v846_v25 }
  0x1c   :  { %728 = vmatpush3.bf16.msra.mxu0 %v847_v26 }
  0x1d   :  { %750 = vmatpush3.bf16.msra.mxu1 %v848_v27  ;;  %729 = vmatprep.subr.bf16.mxu0 %v849_v28 }
  0x1e   :  { %751 = vmatprep.subr.bf16.mxu1 %v850_v29 }
  0x20   :  { %730 = vmatpush3.bf16.msra.mxu0 %v851_v30 }
  0x21   :  { %752 = vmatpush3.bf16.msra.mxu1 %v852_v31  ;;  %777 = vmatprep.subr.bf16.mxu0 %v929_v39 }
  0x22   :  { %797 = vmatprep.subr.bf16.mxu1 %v929_v39 }
  0x23   :  { %343 = vmatmul.mubr.bf16.vlgmr.msra.gmra.mrb[0].mxu0 %v661_v34 }
  0x24   :  { %383 = vmatmul.mubr.bf16.vlgmr.msra.gmra.mrb[0].mxu1 %v663_v36  ;;  %778 = vmatpush3.bf16.msra.mxu0 %v857_v38 }
  0x25   :  { %779 = vmatprep.subr.bf16.mxu0 %v929_v39 }
  0x28   :  { %780 = vmatpush3.bf16.msra.mxu0 %v858_v40 }
  0x29   :  { %781 = vmatprep.subr.bf16.mxu0 %v929_v39 }
  0x2a   :  { %15 = vsyncpa [#allocation5], 0  ;;  %v860_v42 = vld [vmem:[%s1182_s3 + $0x18] sm:$0xff]   ;;  %v861_v43 = vld [vmem:[%s1182_s3 + $0x20] sm:$0xff]   ;;  %vm930_vm0 = vmmov 0   ;;  %v616_v14 = vlaneseq }
  0x2b   :  { %v862_v44 = vld [vmem:[%s1182_s3 + $0x28] sm:$0xff]   ;;  %v863_v45 = vld [vmem:[%s1182_s3 + $0x30] sm:$0xff]   ;;  %v864_v46 = vld [vmem:[%s1182_s3 + $0x38] sm:$0xff]   ;;  %793 = vmatprep.mubr.msk.bf16.mxu0 %vm930_vm0, %v929_v39  ;;  %813 = vmatprep.mubr.msk.bf16.mxu1 %vm930_vm0, %v929_v39 }
  0x2c   :  { %782 = vmatpush3.bf16.msra.mxu0 %v859_v41  ;;  %v865_v47 = vld [vmem:[%s1184_s5] sm:$0xff]   ;;  %v866_v48 = vld [vmem:[%s1184_s5 + $0x8] sm:$0xff]   ;;  %v867_v49 = vld [vmem:[%s1184_s5 + $0x10] sm:$0xff]   ;;  %v617_v15 = vand.u32 127, %v616_v14 }
  0x2d   :  { %783 = vmatprep.subr.bf16.mxu0 %v929_v39  ;;  %798 = vmatpush3.bf16.msra.mxu1 %v865_v47  ;;  %v868_v50 = vld [vmem:[%s1184_s5 + $0x18] sm:$0xff]   ;;  %v660_v53 = vld [vmem:[%s1181_s2] ss:$0 sm:$0xff]  ;;  %v870_v3 = vld [vmem:[%s1184_s5 + $0x28] sm:$0xff]  }
  0x2e   :  { %799 = vmatprep.subr.bf16.mxu1 %v929_v39  ;;  %v869_v2 = vld [vmem:[%s1184_s5 + $0x20] sm:$0xff]   ;;  %v871_v4 = vld [vmem:[%s1184_s5 + $0x30] sm:$0xff]   ;;  %v872_v5 = vld [vmem:[%s1184_s5 + $0x38] sm:$0xff]   ;;  %vm618_vm1 = vcmp.lt.s32.totalorder %v617_v15, 10 }
  0x2f   :  { %v697_v6 = vld [vmem:[%s1183_s4] ss:$0 sm:$0xff]  ;;  %s931_s4 = smov [#allocation2]  }
  0x30   :  { %784 = vmatpush3.bf16.msra.mxu0 %v860_v42  ;;  %v706_v16 = vld [vmem:[%s1185_s6] ss:$0 sm:$0xff]  ;;  %s638_s5 = sshll.u32 %s931_s4, 4  ;;  %s639_s5 = int_to_ptr.vmem [resolvable:$true] %s638_s5 }
  0x31   :  { %785 = vmatprep.subr.bf16.mxu0 %v929_v39  ;;  %800 = vmatpush3.bf16.msra.mxu1 %v866_v48  ;;  %s881_s6 = scalar_lea.vmem %s639_s5, 128  ;;  %p886_p1 = scmp.lt.s32.totalorder %s639_s5, %s639_s5 }
  0x32   :  { %801 = vmatprep.subr.bf16.mxu1 %v929_v39  ;;  %p882_p0 = scmp.ne.s32.totalorder %s639_s5, %s881_s6  ;;  %p887_p2 = scmp.lt.s32.totalorder %s881_s6, %s881_s6 }
  0x34   :  { %786 = vmatpush3.bf16.msra.mxu0 %v861_v43  ;;  %p888_p3 = por %p887_p2, %p886_p1 }
  0x35   :  { %787 = vmatprep.subr.bf16.mxu0 %v929_v39  ;;  %802 = vmatpush3.bf16.msra.mxu1 %v867_v49 }
  0x36   :  { %803 = vmatprep.subr.bf16.mxu1 %v929_v39  ;;  %p889_p4 = pnand %p888_p3, %p882_p0 }
  0x38   :  { %788 = vmatpush3.bf16.msra.mxu0 %v862_v44 }
  0x39   :  { %789 = vmatprep.subr.bf16.mxu0 %v929_v39  ;;  %804 = vmatpush3.bf16.msra.mxu1 %v868_v50 }
  0x3a   :  { %805 = vmatprep.subr.bf16.mxu1 %v929_v39 }
  0x3c   :  { %790 = vmatpush3.bf16.msra.mxu0 %v863_v45 }
  0x3d   :  { %791 = vmatprep.subr.bf16.mxu0 %v929_v39  ;;  %806 = vmatpush3.bf16.msra.mxu1 %v869_v2 }
  0x3e   :  { %807 = vmatprep.subr.bf16.mxu1 %v929_v39 }
  0x40   :  { %792 = vmatpush3.bf16.msra.mxu0 %v864_v46 }
  0x41   :  { %808 = vmatpush3.bf16.msra.mxu1 %v870_v3 }
  0x42   :  { %809 = vmatprep.subr.bf16.mxu1 %v929_v39 }
  0x45   :  { %810 = vmatpush3.bf16.msra.mxu1 %v871_v4 }
  0x46   :  { %811 = vmatprep.subr.bf16.mxu1 %v929_v39 }
  0x49   :  { %812 = vmatpush3.bf16.msra.mxu1 %v872_v5 }
  0xf6   :  { %v731_v51 = vpop.f32.mrb[0].mxu0 }
  0xf7   :  { %v753_v52 = vpop.f32.mrb[0].mxu1  ;;  %v732_v54 = vpop.f32.mrb[1].mxu0 }
  0xf8   :  { %v754_v55 = vpop.f32.mrb[1].mxu1  ;;  %v733_v56 = vadd.f32 %v732_v54, %v731_v51  ;;  %v734_v58 = vpop.f32.mrb[2].mxu0 }
  0xf9   :  { %v755_v57 = vadd.f32 %v754_v55, %v753_v52  ;;  %v756_v59 = vpop.f32.mrb[2].mxu1  ;;  %v735_v60 = vpop.f32.mrb[3].mxu0 }
  0xfa   :  { %v757_v61 = vpop.f32.mrb[3].mxu1  ;;  %v345_v62 = vadd.f32 %v733_v56, %v660_v53 }
  0xfc   :  { %v385_v63 = vadd.f32 %v755_v57, %v345_v62 }
  0xfe   :  { %873 = vtanh.f32 %v385_v63 }
 0x108   :  { %v874_v0 = vpop.eup %873 }
 0x109   :  { %v391_v1 = vpack.c.bf16 %v874_v0, %v874_v0 }
 0x10b   :  { %794 = vmatmul.mubr.bf16.vlgmr.msra.gmra.mrb[4].mxu0 %v391_v1 }
 0x1de   :  { %v497_v7 = vpop.f32.mrb[4].mxu0 }
 0x1df   :  { %v498_v8 = vadd.f32 %v697_v6, %v497_v7  ;;  %v795_v9 = vpop.f32.mrb[5].mxu0 }
 0x1e0   :  { %v500_v10 = vpop.f32.mrb[6].mxu0 }
 0x1e1   :  { %875 = vtanh.f32 %v498_v8  ;;  %v796_v11 = vpop.f32.mrb[7].mxu0 }
 0x1eb   :  { %v876_v12 = vpop.eup %875 }
 0x1ec   :  { %v504_v13 = vpack.c.bf16 %v876_v12, %v876_v12 }
 0x1ee   :  { %814 = vmatmul.mubr.bf16.vlgmr.msra.gmra.mrb[4].mxu1 %v504_v13 }
 0x2c1   :  { %v610_v17 = vpop.f32.mrb[4].mxu1 }
 0x2c2   :  { %v611_v18 = vadd.f32 %v706_v16, %v610_v17  ;;  %v815_v19 = vpop.f32.mrb[5].mxu1 }
 0x2c3   :  { %v613_v20 = vpop.f32.mrb[6].mxu1 }
 0x2c4   :  { %630 = vst [vmem:[#allocation2] sm:$0xff] %v611_v18  ;;  %v816_v21 = vpop.f32.mrb[7].mxu1  ;;  %v619_v22 = vsel %vm618_vm1, %v611_v18, -1e+30 }
 0x2c5   :  { %620 = vmax.xlane.f32.xlu0 %v619_v22 }
 0x352   :  { %v621_v23 = vpop.xlane.xlu0 %620 }
 0x353   :  { %v622_v24 = vsub.f32 %v619_v22, %v621_v23 }
 0x355   :  { %v623_v25 = vmul.f32 1.442695, %v622_v24 }
 0x357   :  { %877 = vpow2.f32 %v623_v25 }
 0x361   :  { %v878_v26 = vpop.eup %877 }
 0x362   :  { %v625_v27 = vsel %vm618_vm1, %v878_v26, 0.0 }
 0x363   :  { %626 = vadd.xlane.f32.xlu0 %v625_v27 }
 0x364   :  { %892 = shalt.err (!%p889_p4)
}
 0x365   :  { %s893_s19 = scalar_lea.hbm %s1186_s7, 128 }
 0x366   :  { %p894_p5 = scmp.ne.s32.totalorder %s1186_s7, %s893_s19  ;;  %p897_p6 = scmp.lt.u32.totalorder %s893_s19, %s1186_s7 }
 0x368   :  { %p899_p7 = pnand %p897_p6, %p894_p5 }
 0x36a   :  { %902 = shalt.err (!%p899_p7)
}
 0x36b   :  { %641 = dma.vmem_to_hbm [thread:$0]  %s639_s5, 128, %s1186_s7, [#allocation3]  }
 0x36c   :  { %s932_s3 = smov [#allocation4]  }
 0x36d   :  { %s648_s26 = sshll.u32 %s932_s3, 4  ;;  %s649_s26 = int_to_ptr.vmem [resolvable:$true] %s648_s26 }
 0x36e   :  { %s903_s27 = scalar_lea.vmem %s649_s26, 128  ;;  %p908_p9 = scmp.lt.s32.totalorder %s649_s26, %s649_s26 }
 0x36f   :  { %p904_p8 = scmp.ne.s32.totalorder %s649_s26, %s903_s27  ;;  %p909_p10 = scmp.lt.s32.totalorder %s903_s27, %s903_s27 }
 0x371   :  { %p910_p11 = por %p909_p10, %p908_p9 }
 0x373   :  { %p911_p12 = pnand %p910_p11, %p904_p8 }
 0x3f0   :  { %v627_v28 = vpop.xlane.xlu0 %626 }
 0x3f1   :  { %879 = vrcp.f32 %v627_v28 }
 0x3fb   :  { %v880_v29 = vpop.eup %879 }
 0x3fc   :  { %v629_v30 = vmul.f32 %v880_v29, %v625_v27 }
 0x3fe   :  { %631 = vst [vmem:[#allocation4] sm:$0xff] %v629_v30 }
 0x3ff   :  { %914 = shalt.err (!%p911_p12)
}
 0x400   :  { %s915_s30 = scalar_lea.hbm %s1187_s8, 128 }
 0x401   :  { %p916_p13 = scmp.ne.s32.totalorder %s1187_s8, %s915_s30  ;;  %p919_p0 = scmp.lt.u32.totalorder %s915_s30, %s1187_s8 }
 0x403   :  { %p921_p1 = pnand %p919_p0, %p916_p13 }
 0x405   :  { %924 = shalt.err (!%p921_p1)
}
 0x406   :  { %651 = dma.vmem_to_hbm [thread:$0]  %s649_s26, 128, %s1187_s8, [#allocation5]  }
 0x407   :  { %925 = dma.done.wait [#allocation3], 128  }
 0x408   :  { %926 = vsyncadd [#allocation3], 4294967168 }
 0x409   :  { %927 = dma.done.wait [#allocation5], 128  }
 0x40a   :  { %928 = vsyncadd [#allocation5], 4294967168 }
 0x40b   :  { %658 = vsyncpa [#allocation3], 1 }
 0x40c   :  { %659 = vsyncpa [#allocation5], 1 }

</bundles_post_ra>
